<compile_context>
chip_gen: v7x
topology: tpu7x:2x2x1
jax: 0.10.0
libtpu: 0.0.40
codegen_flags: <defaults>
</compile_context>

<pallas_src>
import functools

import jax
import jax.numpy as jnp
from jax.experimental import pallas as pl
from jax.experimental.pallas import tpu as pltpu

EPS = 1e-5
NEG_SLOPE = 0.2
MAX_TILE_ROWS = 1024          # ~86% HBM roofline; fits v7x's smaller VMEM
VMEM_LIMIT_BYTES = 32 * 1024 * 1024   # > v5e's 16 MiB default, <= every chip


def _leaky(x):
    return jnp.where(x > 0, x, NEG_SLOPE * x)


# ---------------------------------------------------------------------------
# Kernels
# ---------------------------------------------------------------------------
def _l12_kernel(x_ref, w1_ref, s1_ref, t1_ref, w2_ref, y_ref, st_ref,
                *, channels):
    """Fused point layers 1+2 for one row tile.

    x (tn, C) f32 -> y1 = x @ W1 (VPU broadcast-FMA, K=C is tiny)
                  -> BN1 (precomputed scale/shift) + LeakyReLU
                  -> y2 = h1 @ W2 (bf16 MXU, f32 accumulate), stored bf16.
    Also accumulates per-(batch,split) partial (sum, sum_sq) of y2 for BN2.
    Grid = (batch*splits, tiles); axis 0 parallel, axis 1 accumulates.
    """
    j = pl.program_id(1)
    x = x_ref[...]                                   # (tn, C) f32
    w1 = w1_ref[...]                                 # (C, 64) f32

    # Layer 1: K=C matmul as C broadcast-FMAs on the VPU (no K padding).
    y1 = x[:, 0:1] * w1[0:1, :]                      # (tn, 64) f32
    for c in range(1, channels):
        y1 = y1 + x[:, c:c + 1] * w1[c:c + 1, :]

    h1 = _leaky(y1 * s1_ref[...] + t1_ref[...])      # BN1 + act, f32
    y2 = jnp.dot(h1.astype(jnp.bfloat16), w2_ref[...],
                 preferred_element_type=jnp.float32)  # (tn, 128) f32
    y_ref[...] = y2.astype(jnp.bfloat16)

    # BN2 partial stats: column sum via MXU linearity (reduce K=64, not D=128);
    # only the sum-of-squares reduction stays on the VPU.
    cs = jnp.sum(h1, axis=0, keepdims=True)                       # (1, 64)
    su = jnp.dot(cs.astype(jnp.bfloat16), w2_ref[...],
                 preferred_element_type=jnp.float32)              # (1, 128)
    sq = jnp.sum(y2 * y2, axis=0, keepdims=True)                  # (1, 128)

    @pl.when(j == 0)
    def _():
        st_ref[0, 0:1, :] = su
        st_ref[0, 1:2, :] = sq

    @pl.when(j > 0)
    def _():
        st_ref[0, 0:1, :] += su
        st_ref[0, 1:2, :] += sq


def _l3_maxpool_kernel(y2_ref, s2_ref, t2_ref, w3_ref, mm_ref, st_ref):
    """Last point block (128 -> 1024) fused with the points-axis max pooling.

    Never writes the (B*N, 1024) activation; accumulates per (batch, split):
      mm[:, 0, :] = max_n y      mm[:, 1, :] = min_n y
    plus the global-BN3 partial (sum, sum_sq).
    """
    j = pl.program_id(1)
    h = _leaky(y2_ref[...].astype(jnp.float32) * s2_ref[...] + t2_ref[...])
    y = jnp.dot(h.astype(jnp.bfloat16), w3_ref[...],
                preferred_element_type=jnp.float32)               # (tn, 1024)

    # Column sum via MXU linearity: reduce over K=128 instead of D=1024.
    cs = jnp.sum(h, axis=0, keepdims=True)                        # (1, 128)
    su = jnp.dot(cs.astype(jnp.bfloat16), w3_ref[...],
                 preferred_element_type=jnp.float32)              # (1, 1024)
    sq = jnp.sum(y * y, axis=0, keepdims=True)                    # (1, 1024)
    mx = jnp.max(y, axis=0, keepdims=True)                        # (1, 1024)
    mn = jnp.min(y, axis=0, keepdims=True)                        # (1, 1024)

    @pl.when(j == 0)
    def _():
        st_ref[0, 0:1, :] = su
        st_ref[0, 1:2, :] = sq
        mm_ref[0, 0:1, :] = mx
        mm_ref[0, 1:2, :] = mn

    @pl.when(j > 0)
    def _():
        st_ref[0, 0:1, :] += su
        st_ref[0, 1:2, :] += sq
        mm_ref[0, 0:1, :] = jnp.maximum(mm_ref[0, 0:1, :], mx)
        mm_ref[0, 1:2, :] = jnp.minimum(mm_ref[0, 1:2, :], mn)


def _fc_head_kernel(mm_ref, s3_ref, t3_ref,
                    w4_ref, g4_ref, b4_ref,
                    w5_ref, g5_ref, b5_ref,
                    w6_ref, bias_ref, eye_ref, o_ref):
    """Fused FC head: finish BN3+act+max selection, then
    (1024->512 BN act) -> (512->256 BN act) -> (256->C^2 + bias + eye)."""
    mm = mm_ref[...]                                 # (B, 2, 1024)
    s3 = s3_ref[...]                                 # (1, 1024) BN3 scale
    # Exact argmax of act(BN(y)): max y where scale >= 0, else min y.
    sel = jnp.where(s3 >= 0, mm[:, 0, :], mm[:, 1, :])
    h = _leaky(sel * s3 + t3_ref[...])               # (B, 1024) pooled feats

    def lin_bn_act(h, w_ref, gamma_ref, beta_ref):
        z = jnp.dot(h.astype(jnp.bfloat16), w_ref[...],
                    preferred_element_type=jnp.float32)
        mean = jnp.mean(z, axis=0, keepdims=True)
        var = jnp.maximum(jnp.mean(z * z, axis=0, keepdims=True) - mean * mean,
                          0.0)                       # biased var (BN training)
        zh = (z - mean) * jax.lax.rsqrt(var + EPS) * gamma_ref[...] + beta_ref[...]
        return _leaky(zh)

    h = lin_bn_act(h, w4_ref, g4_ref, b4_ref)        # (B, 512)
    h = lin_bn_act(h, w5_ref, g5_ref, b5_ref)        # (B, 256)
    y = jnp.dot(h.astype(jnp.bfloat16), w6_ref[...],
                preferred_element_type=jnp.float32)  # (B, C^2)
    o_ref[...] = y + bias_ref[...] + eye_ref[...]


# ---------------------------------------------------------------------------
# Wrappers
# ---------------------------------------------------------------------------
def _choose_point_tile(n, max_rows=MAX_TILE_ROWS):
    """Largest 8-aligned row tile <= max_rows that divides N."""
    t = min((max_rows // 8) * 8, (n // 8) * 8)
    while t >= 8:
        if n % t == 0:
            return t
        t -= 8
    # TODO(synk): pad N (with masked stats/max) when no 8-aligned divisor exists.
    raise ValueError(f"N={n} needs an 8-aligned divisor <= {max_rows}")


def _choose_splits(batch, gn):
    """Split each batch's tile range so grid axis 0 >= 2 (v7x megacore)."""
    if batch >= 2:
        return 1
    return 2 if gn % 2 == 0 else 1


def _point_block12(x2d, w1, s1, t1, w2, *, batch, tile_rows, splits):
    m, c = x2d.shape
    d1, d2 = w1.shape[1], w2.shape[1]
    gns = ((m // batch) // tile_rows) // splits
    kernel = functools.partial(_l12_kernel, channels=c)
    return pl.pallas_call(
        kernel,
        out_shape=(jax.ShapeDtypeStruct((m, d2), jnp.bfloat16),
                   jax.ShapeDtypeStruct((batch * splits, 2, d2), jnp.float32)),
        grid=(batch * splits, gns),
        in_specs=[
            pl.BlockSpec((tile_rows, c), lambda p, j: (p * gns + j, 0)),
            pl.BlockSpec((c, d1), lambda p, j: (0, 0)),
            pl.BlockSpec((1, d1), lambda p, j: (0, 0)),
            pl.BlockSpec((1, d1), lambda p, j: (0, 0)),
            pl.BlockSpec((d1, d2), lambda p, j: (0, 0)),
        ],
        out_specs=(pl.BlockSpec((tile_rows, d2), lambda p, j: (p * gns + j, 0)),
                   pl.BlockSpec((1, 2, d2), lambda p, j: (p, 0, 0))),
        compiler_params=pltpu.CompilerParams(
            dimension_semantics=("parallel", "arbitrary"),
            vmem_limit_bytes=VMEM_LIMIT_BYTES),
    )(x2d, w1, s1, t1, w2)


def _point_block_maxpool(y2, s2, t2, w3, *, batch, tile_rows, splits):
    m, k = y2.shape
    d = w3.shape[1]
    gns = ((m // batch) // tile_rows) // splits
    return pl.pallas_call(
        _l3_maxpool_kernel,
        out_shape=(jax.ShapeDtypeStruct((batch * splits, 2, d), jnp.float32),
                   jax.ShapeDtypeStruct((batch * splits, 2, d), jnp.float32)),
        grid=(batch * splits, gns),
        in_specs=[
            pl.BlockSpec((tile_rows, k), lambda p, j: (p * gns + j, 0)),
            pl.BlockSpec((1, k), lambda p, j: (0, 0)),
            pl.BlockSpec((1, k), lambda p, j: (0, 0)),
            pl.BlockSpec((k, d), lambda p, j: (0, 0)),
        ],
        out_specs=(pl.BlockSpec((1, 2, d), lambda p, j: (p, 0, 0)),
                   pl.BlockSpec((1, 2, d), lambda p, j: (p, 0, 0))),
        compiler_params=pltpu.CompilerParams(
            dimension_semantics=("parallel", "arbitrary"),
            vmem_limit_bytes=VMEM_LIMIT_BYTES),
    )(y2, s2, t2, w3)


def _fc_head(mm, s3, t3, params):
    b, _, d3 = mm.shape
    (w4, g4, b4), (w5, g5, b5) = params["fc_blocks"]
    w6, bias, eye = params["w_out"], params["b_out"], params["eye_flat"]
    d4, d5, c2 = w4.shape[1], w5.shape[1], w6.shape[1]

    def full(shape):
        return pl.BlockSpec(shape, lambda i: (0,) * len(shape))

    return pl.pallas_call(
        _fc_head_kernel,
        out_shape=jax.ShapeDtypeStruct((b, c2), jnp.float32),
        grid=(1,),
        in_specs=[
            full((b, 2, d3)), full((1, d3)), full((1, d3)),
            full((d3, d4)), full((1, d4)), full((1, d4)),
            full((d4, d5)), full((1, d5)), full((1, d5)),
            full((d5, c2)), full((1, c2)), full((1, c2)),
        ],
        out_specs=full((b, c2)),
        compiler_params=pltpu.CompilerParams(
            dimension_semantics=("arbitrary",)),
    )(mm, s3, t3, w4, g4, b4, w5, g5, b5, w6, bias, eye)


# ---------------------------------------------------------------------------
# BatchNorm helpers (training-mode batch stats, biased variance)
# ---------------------------------------------------------------------------
def _affine_from_moments(mean, var, gamma, beta):
    scale = gamma.reshape(-1) * jax.lax.rsqrt(var + EPS)
    shift = beta.reshape(-1) - mean * scale
    return scale.reshape(1, -1), shift.reshape(1, -1)


def _bn_scale_shift(stats, count, gamma, beta):
    """BatchNorm as y*scale + shift from accumulated (sum, sum_sq) partials."""
    s = jnp.sum(stats, axis=0)                        # (2, D)
    mean = s[0] / count
    var = jnp.maximum(s[1] / count - mean * mean, 0.0)
    return _affine_from_moments(mean, var, gamma, beta)


def _combine_minmax(mm, batch, splits):
    if splits == 1:
        return mm
    mm = mm.reshape(batch, splits, 2, mm.shape[-1])
    return jnp.stack([mm[:, :, 0, :].max(axis=1),
                      mm[:, :, 1, :].min(axis=1)], axis=1)


# ---------------------------------------------------------------------------
# Parameters (deterministic synthetic init; PyTorch shapes from STN.__init__)
# ---------------------------------------------------------------------------
def init_params(key, channels=3):
    keys = jax.random.split(key, 8)

    def lin(k, din, dout):
        return (jax.random.normal(k, (din, dout), jnp.float32)
                / jnp.sqrt(jnp.float32(din)))

    def bn(dout):
        return (jnp.ones((1, dout), jnp.float32),    # BatchNorm weight (gamma)
                jnp.zeros((1, dout), jnp.float32))   # BatchNorm bias (beta)

    # Point blocks: channels -> 64 -> 128 -> 1024.
    w1 = lin(keys[0], channels, 64)                  # f32 (used on the VPU)
    g1, b1 = bn(64)
    w2 = lin(keys[1], 64, 128).astype(jnp.bfloat16)
    g2, b2 = bn(128)
    w3 = lin(keys[2], 128, 1024).astype(jnp.bfloat16)
    g3, b3 = bn(1024)

    # FC head: 1024 -> 512 -> 256 -> channels^2.
    w4 = lin(keys[3], 1024, 512).astype(jnp.bfloat16)
    g4, b4 = bn(512)
    w5 = lin(keys[4], 512, 256).astype(jnp.bfloat16)
    g5, b5 = bn(256)
    c2 = channels * channels
    w_out = lin(keys[5], 256, c2).astype(jnp.bfloat16)
    b_out = 0.01 * jax.random.normal(keys[6], (1, c2), jnp.float32)
    eye_flat = jnp.eye(channels, dtype=jnp.float32).reshape(1, c2)

    return {
        "channels": channels,
        "pb1": (w1, g1, b1),
        "pb2": (w2, g2, b2),
        "pb3": (w3, g3, b3),
        "fc_blocks": [(w4, g4, b4), (w5, g5, b5)],
        "w_out": w_out,
        "b_out": b_out,
        "eye_flat": eye_flat,
    }


# ---------------------------------------------------------------------------
# Forward (tiny glue in plain JAX, hot paths in Pallas kernels)
# ---------------------------------------------------------------------------
def stn_forward(x, params):
    B, N, C = x.shape
    assert C == params["channels"]
    M = B * N
    count = float(M)
    tn = _choose_point_tile(N)
    splits = _choose_splits(B, N // tn)

    w1, g1, b1 = params["pb1"]
    w2, g2, b2 = params["pb2"]
    w3, g3, b3 = params["pb3"]

    x2d = x.reshape(M, C).astype(jnp.float32)

    # BN1 global stats analytically from tiny moments of X (linearity /
    # quadratic-form trick): y1 = X @ W1 never needs to be materialized.
    xsum = jnp.sum(x2d, axis=0)                             # (C,)
    xtx = x2d.T @ x2d                                       # (C, C)
    y1_sum = xsum @ w1                                      # (64,)
    y1_sumsq = jnp.einsum("kd,kl,ld->d", w1, xtx, w1)       # (64,)
    mean1 = y1_sum / count
    var1 = jnp.maximum(y1_sumsq / count - mean1 * mean1, 0.0)
    s1, t1 = _affine_from_moments(mean1, var1, g1, b1)

    # Fused layers 1+2: x -> L1 -> BN1+act -> L2; writes only y2 (bf16).
    y2, st2 = _point_block12(x2d, w1, s1, t1, w2,
                             batch=B, tile_rows=tn, splits=splits)
    s2, t2 = _bn_scale_shift(st2, count, g2, b2)

    # Layer 3 fused with max-over-points: (B*N, 1024) never hits HBM.
    mm, st3 = _point_block_maxpool(y2, s2, t2, w3,
                                   batch=B, tile_rows=tn, splits=splits)
    s3, t3 = _bn_scale_shift(st3, count, g3, b3)
    mm = _combine_minmax(mm, B, splits)

    # Fused FC head (BN3+act+max-select, two LinearBlocks, final linear + eye).
    out = _fc_head(mm, s3, t3, params)
    return out.reshape(B, C, C)


if __name__ == "__main__":
    key = jax.random.PRNGKey(0)
    k_x, k_p = jax.random.split(key)

    B, N, C = 2, 16, 3  # small shapes consistent with STN(channels=3)
    x = jax.random.normal(k_x, (B, N, C), dtype=jnp.float32)
    params = init_params(k_p, channels=C)

    fwd = jax.jit(lambda inp: stn_forward(inp, params))
    out = jax.block_until_ready(fwd(x))
    assert out.shape == (B, C, C)
    assert bool(jnp.all(jnp.isfinite(out)))
    print("KERNEL_OK")
</pallas_src>

<mosaic_0001>
module attributes {stable_mosaic.version = 11 : i64} {
  func.func @_l12_kernel(%arg0: i32, %arg1: i32, %arg2: memref<16x3xf32, #tpu.memory_space<vmem>>, %arg3: memref<3x64xf32, #tpu.memory_space<vmem>>, %arg4: memref<1x64xf32, #tpu.memory_space<vmem>>, %arg5: memref<1x64xf32, #tpu.memory_space<vmem>>, %arg6: memref<64x128xbf16, #tpu.memory_space<vmem>>, %arg7: memref<16x128xbf16, #tpu.memory_space<vmem>>, %arg8: memref<1x2x128xf32, #tpu.memory_space<vmem>>) attributes {dimension_semantics = [#tpu.dimension_semantics<parallel>, #tpu.dimension_semantics<arbitrary>], iteration_bounds = array<i64: 2, 1>, scalar_prefetch = 0 : i64, scratch_operands = 0 : i64, tpu.core_type = #tpu.core_type<tc>, window_params = [{transform_indices = @transform_0, window_bounds = array<i64: 16, 3>}, {pipeline_mode = #tpu.pipeline_mode<synchronous>, transform_indices = @transform_1, window_bounds = array<i64: 3, 64>}, {pipeline_mode = #tpu.pipeline_mode<synchronous>, transform_indices = @transform_2, window_bounds = array<i64: 1, 64>}, {pipeline_mode = #tpu.pipeline_mode<synchronous>, transform_indices = @transform_3, window_bounds = array<i64: 1, 64>}, {pipeline_mode = #tpu.pipeline_mode<synchronous>, transform_indices = @transform_4, window_bounds = array<i64: 64, 128>}, {transform_indices = @transform_5, window_bounds = array<i64: 16, 128>}, {transform_indices = @transform_6, window_bounds = array<i64: 1, 2, 128>}]} {
    %c0 = arith.constant 0 : index
    %c0_0 = arith.constant 0 : index
    %0 = vector.load %arg2[%c0, %c0_0] : memref<16x3xf32, #tpu.memory_space<vmem>>, vector<16x3xf32>
    %c0_1 = arith.constant 0 : index
    %c0_2 = arith.constant 0 : index
    %1 = vector.load %arg3[%c0_1, %c0_2] : memref<3x64xf32, #tpu.memory_space<vmem>>, vector<3x64xf32>
    %2 = vector.extract_strided_slice %0 {offsets = [0, 0], sizes = [16, 1], strides = [1, 1]} : vector<16x3xf32> to vector<16x1xf32>
    %3 = vector.extract_strided_slice %1 {offsets = [0, 0], sizes = [1, 64], strides = [1, 1]} : vector<3x64xf32> to vector<1x64xf32>
    %4 = vector.broadcast %2 : vector<16x1xf32> to vector<16x64xf32>
    %5 = vector.broadcast %3 : vector<1x64xf32> to vector<16x64xf32>
    %6 = arith.mulf %4, %5 : vector<16x64xf32>
    %7 = vector.extract_strided_slice %0 {offsets = [0, 1], sizes = [16, 1], strides = [1, 1]} : vector<16x3xf32> to vector<16x1xf32>
    %8 = vector.extract_strided_slice %1 {offsets = [1, 0], sizes = [1, 64], strides = [1, 1]} : vector<3x64xf32> to vector<1x64xf32>
    %9 = vector.broadcast %7 : vector<16x1xf32> to vector<16x64xf32>
    %10 = vector.broadcast %8 : vector<1x64xf32> to vector<16x64xf32>
    %11 = arith.mulf %9, %10 : vector<16x64xf32>
    %12 = arith.addf %6, %11 : vector<16x64xf32>
    %13 = vector.extract_strided_slice %0 {offsets = [0, 2], sizes = [16, 1], strides = [1, 1]} : vector<16x3xf32> to vector<16x1xf32>
    %14 = vector.extract_strided_slice %1 {offsets = [2, 0], sizes = [1, 64], strides = [1, 1]} : vector<3x64xf32> to vector<1x64xf32>
    %15 = vector.broadcast %13 : vector<16x1xf32> to vector<16x64xf32>
    %16 = vector.broadcast %14 : vector<1x64xf32> to vector<16x64xf32>
    %17 = arith.mulf %15, %16 : vector<16x64xf32>
    %18 = arith.addf %12, %17 : vector<16x64xf32>
    %c0_3 = arith.constant 0 : index
    %c0_4 = arith.constant 0 : index
    %19 = vector.load %arg4[%c0_3, %c0_4] : memref<1x64xf32, #tpu.memory_space<vmem>>, vector<1x64xf32>
    %20 = vector.broadcast %19 : vector<1x64xf32> to vector<16x64xf32>
    %21 = arith.mulf %18, %20 : vector<16x64xf32>
    %c0_5 = arith.constant 0 : index
    %c0_6 = arith.constant 0 : index
    %22 = vector.load %arg5[%c0_5, %c0_6] : memref<1x64xf32, #tpu.memory_space<vmem>>, vector<1x64xf32>
    %23 = vector.broadcast %22 : vector<1x64xf32> to vector<16x64xf32>
    %24 = arith.addf %21, %23 : vector<16x64xf32>
    %cst = arith.constant 0.000000e+00 : f32
    %25 = vector.broadcast %cst : f32 to vector<16x64xf32>
    %26 = arith.cmpf ogt, %24, %25 : vector<16x64xf32>
    %cst_7 = arith.constant 2.000000e-01 : f32
    %27 = vector.broadcast %cst_7 : f32 to vector<16x64xf32>
    %28 = arith.mulf %27, %24 : vector<16x64xf32>
    %29 = arith.select %26, %24, %28 : vector<16x64xi1>, vector<16x64xf32>
    %30 = arith.truncf %29 : vector<16x64xf32> to vector<16x64xbf16>
    %c0_8 = arith.constant 0 : index
    %c0_9 = arith.constant 0 : index
    %31 = vector.load %arg6[%c0_8, %c0_9] : memref<64x128xbf16, #tpu.memory_space<vmem>>, vector<64x128xbf16>
    %cst_10 = arith.constant dense<0.000000e+00> : vector<16x128xf32>
    %32 = tpu.matmul %30, %31, %cst_10 {dimension_numbers = #tpu.dot_dimension_numbers<[1], [0], [0], [1], [0, 0, 1, 1], [], []>} : vector<16x64xbf16>, vector<64x128xbf16>, vector<16x128xf32> -> vector<16x128xf32>
    %33 = arith.truncf %32 : vector<16x128xf32> to vector<16x128xbf16>
    %c0_11 = arith.constant 0 : index
    %c0_12 = arith.constant 0 : index
    %34 = vector.load %arg7[%c0_11, %c0_12] : memref<16x128xbf16, #tpu.memory_space<vmem>>, vector<16x128xbf16>
    tpu.vector_store %arg7[%c0_11, %c0_12], %33 {strides = array<i32>} : memref<16x128xbf16, #tpu.memory_space<vmem>>, vector<16x128xbf16>,
    %cst_13 = arith.constant dense<0.000000e+00> : vector<64xf32>
    %35 = vector.multi_reduction <add>, %29, %cst_13 [0] : vector<16x64xf32> to vector<64xf32>
    %36 = vector.shape_cast %35 : vector<64xf32> to vector<1x64xf32>
    %37 = arith.truncf %36 : vector<1x64xf32> to vector<1x64xbf16>
    %c0_14 = arith.constant 0 : index
    %c0_15 = arith.constant 0 : index
    %38 = vector.load %arg6[%c0_14, %c0_15] : memref<64x128xbf16, #tpu.memory_space<vmem>>, vector<64x128xbf16>
    %cst_16 = arith.constant dense<0.000000e+00> : vector<1x128xf32>
    %39 = tpu.matmul %37, %38, %cst_16 {dimension_numbers = #tpu.dot_dimension_numbers<[1], [0], [0], [1], [0, 0, 1, 1], [], []>} : vector<1x64xbf16>, vector<64x128xbf16>, vector<1x128xf32> -> vector<1x128xf32>
    %40 = arith.mulf %32, %32 : vector<16x128xf32>
    %cst_17 = arith.constant dense<0.000000e+00> : vector<128xf32>
    %41 = vector.multi_reduction <add>, %40, %cst_17 [0] : vector<16x128xf32> to vector<128xf32>
    %42 = vector.shape_cast %41 : vector<128xf32> to vector<1x128xf32>
    %c0_i32 = arith.constant 0 : i32
    %43 = arith.cmpi eq, %arg1, %c0_i32 : i32
    %44 = arith.extui %43 : i1 to i32
    %c0_i32_18 = arith.constant 0 : i32
    %45 = arith.cmpi ne, %44, %c0_i32_18 : i32
    scf.if %45 {
      %c0_21 = arith.constant 0 : index
      %c0_22 = arith.constant 0 : index
      %c0_23 = arith.constant 0 : index
      %49 = vector.load %arg8[%c0_21, %c0_22, %c0_23] : memref<1x2x128xf32, #tpu.memory_space<vmem>>, vector<1x1x128xf32>
      %50 = vector.shape_cast %49 : vector<1x1x128xf32> to vector<1x128xf32>
      %51 = vector.shape_cast %39 : vector<1x128xf32> to vector<1x1x128xf32>
      tpu.vector_store %arg8[%c0_21, %c0_22, %c0_23], %51 {strides = array<i32>} : memref<1x2x128xf32, #tpu.memory_space<vmem>>, vector<1x1x128xf32>,
      %c0_24 = arith.constant 0 : index
      %c1 = arith.constant 1 : index
      %c0_25 = arith.constant 0 : index
      %52 = vector.load %arg8[%c0_24, %c1, %c0_25] : memref<1x2x128xf32, #tpu.memory_space<vmem>>, vector<1x1x128xf32>
      %53 = vector.shape_cast %52 : vector<1x1x128xf32> to vector<1x128xf32>
      %54 = vector.shape_cast %42 : vector<1x128xf32> to vector<1x1x128xf32>
      tpu.vector_store %arg8[%c0_24, %c1, %c0_25], %54 {strides = array<i32>} : memref<1x2x128xf32, #tpu.memory_space<vmem>>, vector<1x1x128xf32>,
    } else {
    }
    %c0_i32_19 = arith.constant 0 : i32
    %46 = arith.cmpi sgt, %arg1, %c0_i32_19 : i32
    %47 = arith.extui %46 : i1 to i32
    %c0_i32_20 = arith.constant 0 : i32
    %48 = arith.cmpi ne, %47, %c0_i32_20 : i32
    scf.if %48 {
      %c0_21 = arith.constant 0 : index
      %c0_22 = arith.constant 0 : index
      %c0_23 = arith.constant 0 : index
      %49 = vector.load %arg8[%c0_21, %c0_22, %c0_23] : memref<1x2x128xf32, #tpu.memory_space<vmem>>, vector<1x1x128xf32>
      %50 = vector.shape_cast %49 : vector<1x1x128xf32> to vector<1x128xf32>
      %51 = arith.addf %50, %39 : vector<1x128xf32>
      %c0_24 = arith.constant 0 : index
      %c0_25 = arith.constant 0 : index
      %c0_26 = arith.constant 0 : index
      %52 = vector.load %arg8[%c0_24, %c0_25, %c0_26] : memref<1x2x128xf32, #tpu.memory_space<vmem>>, vector<1x1x128xf32>
      %53 = vector.shape_cast %52 : vector<1x1x128xf32> to vector<1x128xf32>
      %54 = vector.shape_cast %51 : vector<1x128xf32> to vector<1x1x128xf32>
      tpu.vector_store %arg8[%c0_24, %c0_25, %c0_26], %54 {strides = array<i32>} : memref<1x2x128xf32, #tpu.memory_space<vmem>>, vector<1x1x128xf32>,
      %c0_27 = arith.constant 0 : index
      %c1 = arith.constant 1 : index
      %c0_28 = arith.constant 0 : index
      %55 = vector.load %arg8[%c0_27, %c1, %c0_28] : memref<1x2x128xf32, #tpu.memory_space<vmem>>, vector<1x1x128xf32>
      %56 = vector.shape_cast %55 : vector<1x1x128xf32> to vector<1x128xf32>
      %57 = arith.addf %56, %42 : vector<1x128xf32>
      %c0_29 = arith.constant 0 : index
      %c1_30 = arith.constant 1 : index
      %c0_31 = arith.constant 0 : index
      %58 = vector.load %arg8[%c0_29, %c1_30, %c0_31] : memref<1x2x128xf32, #tpu.memory_space<vmem>>, vector<1x1x128xf32>
      %59 = vector.shape_cast %58 : vector<1x1x128xf32> to vector<1x128xf32>
      %60 = vector.shape_cast %57 : vector<1x128xf32> to vector<1x1x128xf32>
      tpu.vector_store %arg8[%c0_29, %c1_30, %c0_31], %60 {strides = array<i32>} : memref<1x2x128xf32, #tpu.memory_space<vmem>>, vector<1x1x128xf32>,
    } else {
    }
    return
  }
  func.func @transform_0(%arg0: i32, %arg1: i32) -> (i32, i32) {
    %c1_i32 = arith.constant 1 : i32
    %0 = arith.muli %arg0, %c1_i32 : i32
    %1 = arith.addi %0, %arg1 : i32
    %c0_i32 = arith.constant 0 : i32
    %c0_i32_0 = arith.constant 0 : i32
    return %1, %c0_i32 : i32, i32
  }
  func.func @transform_1(%arg0: i32, %arg1: i32) -> (i32, i32) {
    %c0_i32 = arith.constant 0 : i32
    %c0_i32_0 = arith.constant 0 : i32
    %c0_i32_1 = arith.constant 0 : i32
    return %c0_i32, %c0_i32_0 : i32, i32
  }
  func.func @transform_2(%arg0: i32, %arg1: i32) -> (i32, i32) {
    %c0_i32 = arith.constant 0 : i32
    %c0_i32_0 = arith.constant 0 : i32
    %c0_i32_1 = arith.constant 0 : i32
    return %c0_i32, %c0_i32_0 : i32, i32
  }
  func.func @transform_3(%arg0: i32, %arg1: i32) -> (i32, i32) {
    %c0_i32 = arith.constant 0 : i32
    %c0_i32_0 = arith.constant 0 : i32
    %c0_i32_1 = arith.constant 0 : i32
    return %c0_i32, %c0_i32_0 : i32, i32
  }
  func.func @transform_4(%arg0: i32, %arg1: i32) -> (i32, i32) {
    %c0_i32 = arith.constant 0 : i32
    %c0_i32_0 = arith.constant 0 : i32
    %c0_i32_1 = arith.constant 0 : i32
    return %c0_i32, %c0_i32_0 : i32, i32
  }
  func.func @transform_5(%arg0: i32, %arg1: i32) -> (i32, i32) {
    %c1_i32 = arith.constant 1 : i32
    %0 = arith.muli %arg0, %c1_i32 : i32
    %1 = arith.addi %0, %arg1 : i32
    %c0_i32 = arith.constant 0 : i32
    %c0_i32_0 = arith.constant 0 : i32
    return %1, %c0_i32 : i32, i32
  }
  func.func @transform_6(%arg0: i32, %arg1: i32) -> (i32, i32, i32) {
    %c0_i32 = arith.constant 0 : i32
    %c0_i32_0 = arith.constant 0 : i32
    %c0_i32_1 = arith.constant 0 : i32
    return %arg0, %c0_i32, %c0_i32_0 : i32, i32, i32
  }
}

module attributes {stable_mosaic.version = 11 : i64} {
  func.func @_l3_maxpool_kernel(%arg0: i32, %arg1: i32, %arg2: memref<16x128xbf16, #tpu.memory_space<vmem>>, %arg3: memref<1x128xf32, #tpu.memory_space<vmem>>, %arg4: memref<1x128xf32, #tpu.memory_space<vmem>>, %arg5: memref<128x1024xbf16, #tpu.memory_space<vmem>>, %arg6: memref<1x2x1024xf32, #tpu.memory_space<vmem>>, %arg7: memref<1x2x1024xf32, #tpu.memory_space<vmem>>) attributes {dimension_semantics = [#tpu.dimension_semantics<parallel>, #tpu.dimension_semantics<arbitrary>], iteration_bounds = array<i64: 2, 1>, scalar_prefetch = 0 : i64, scratch_operands = 0 : i64, tpu.core_type = #tpu.core_type<tc>, window_params = [{transform_indices = @transform_0, window_bounds = array<i64: 16, 128>}, {pipeline_mode = #tpu.pipeline_mode<synchronous>, transform_indices = @transform_1, window_bounds = array<i64: 1, 128>}, {pipeline_mode = #tpu.pipeline_mode<synchronous>, transform_indices = @transform_2, window_bounds = array<i64: 1, 128>}, {pipeline_mode = #tpu.pipeline_mode<synchronous>, transform_indices = @transform_3, window_bounds = array<i64: 128, 1024>}, {transform_indices = @transform_4, window_bounds = array<i64: 1, 2, 1024>}, {transform_indices = @transform_5, window_bounds = array<i64: 1, 2, 1024>}]} {
    %c0 = arith.constant 0 : index
    %c0_0 = arith.constant 0 : index
    %0 = vector.load %arg2[%c0, %c0_0] : memref<16x128xbf16, #tpu.memory_space<vmem>>, vector<16x128xbf16>
    %1 = arith.extf %0 : vector<16x128xbf16> to vector<16x128xf32>
    %c0_1 = arith.constant 0 : index
    %c0_2 = arith.constant 0 : index
    %2 = vector.load %arg3[%c0_1, %c0_2] : memref<1x128xf32, #tpu.memory_space<vmem>>, vector<1x128xf32>
    %3 = vector.broadcast %2 : vector<1x128xf32> to vector<16x128xf32>
    %4 = arith.mulf %1, %3 : vector<16x128xf32>
    %c0_3 = arith.constant 0 : index
    %c0_4 = arith.constant 0 : index
    %5 = vector.load %arg4[%c0_3, %c0_4] : memref<1x128xf32, #tpu.memory_space<vmem>>, vector<1x128xf32>
    %6 = vector.broadcast %5 : vector<1x128xf32> to vector<16x128xf32>
    %7 = arith.addf %4, %6 : vector<16x128xf32>
    %cst = arith.constant 0.000000e+00 : f32
    %8 = vector.broadcast %cst : f32 to vector<16x128xf32>
    %9 = arith.cmpf ogt, %7, %8 : vector<16x128xf32>
    %cst_5 = arith.constant 2.000000e-01 : f32
    %10 = vector.broadcast %cst_5 : f32 to vector<16x128xf32>
    %11 = arith.mulf %10, %7 : vector<16x128xf32>
    %12 = arith.select %9, %7, %11 : vector<16x128xi1>, vector<16x128xf32>
    %13 = arith.truncf %12 : vector<16x128xf32> to vector<16x128xbf16>
    %c0_6 = arith.constant 0 : index
    %c0_7 = arith.constant 0 : index
    %14 = vector.load %arg5[%c0_6, %c0_7] : memref<128x1024xbf16, #tpu.memory_space<vmem>>, vector<128x1024xbf16>
    %cst_8 = arith.constant dense<0.000000e+00> : vector<16x1024xf32>
    %15 = tpu.matmul %13, %14, %cst_8 {dimension_numbers = #tpu.dot_dimension_numbers<[1], [0], [0], [1], [0, 0, 1, 1], [], []>} : vector<16x128xbf16>, vector<128x1024xbf16>, vector<16x1024xf32> -> vector<16x1024xf32>
    %cst_9 = arith.constant dense<0.000000e+00> : vector<128xf32>
    %16 = vector.multi_reduction <add>, %12, %cst_9 [0] : vector<16x128xf32> to vector<128xf32>
    %17 = vector.shape_cast %16 : vector<128xf32> to vector<1x128xf32>
    %18 = arith.truncf %17 : vector<1x128xf32> to vector<1x128xbf16>
    %c0_10 = arith.constant 0 : index
    %c0_11 = arith.constant 0 : index
    %19 = vector.load %arg5[%c0_10, %c0_11] : memref<128x1024xbf16, #tpu.memory_space<vmem>>, vector<128x1024xbf16>
    %cst_12 = arith.constant dense<0.000000e+00> : vector<1x1024xf32>
    %20 = tpu.matmul %18, %19, %cst_12 {dimension_numbers = #tpu.dot_dimension_numbers<[1], [0], [0], [1], [0, 0, 1, 1], [], []>} : vector<1x128xbf16>, vector<128x1024xbf16>, vector<1x1024xf32> -> vector<1x1024xf32>
    %21 = arith.mulf %15, %15 : vector<16x1024xf32>
    %cst_13 = arith.constant dense<0.000000e+00> : vector<1024xf32>
    %22 = vector.multi_reduction <add>, %21, %cst_13 [0] : vector<16x1024xf32> to vector<1024xf32>
    %23 = vector.shape_cast %22 : vector<1024xf32> to vector<1x1024xf32>
    %cst_14 = arith.constant dense<0xFF800000> : vector<1024xf32>
    %24 = vector.multi_reduction <maximumf>, %15, %cst_14 [0] : vector<16x1024xf32> to vector<1024xf32>
    %25 = vector.shape_cast %24 : vector<1024xf32> to vector<1x1024xf32>
    %cst_15 = arith.constant dense<0x7F800000> : vector<1024xf32>
    %26 = vector.multi_reduction <minimumf>, %15, %cst_15 [0] : vector<16x1024xf32> to vector<1024xf32>
    %27 = vector.shape_cast %26 : vector<1024xf32> to vector<1x1024xf32>
    %c0_i32 = arith.constant 0 : i32
    %28 = arith.cmpi eq, %arg1, %c0_i32 : i32
    %29 = arith.extui %28 : i1 to i32
    %c0_i32_16 = arith.constant 0 : i32
    %30 = arith.cmpi ne, %29, %c0_i32_16 : i32
    scf.if %30 {
      %c0_19 = arith.constant 0 : index
      %c0_20 = arith.constant 0 : index
      %c0_21 = arith.constant 0 : index
      %34 = vector.load %arg7[%c0_19, %c0_20, %c0_21] : memref<1x2x1024xf32, #tpu.memory_space<vmem>>, vector<1x1x1024xf32>
      %35 = vector.shape_cast %34 : vector<1x1x1024xf32> to vector<1x1024xf32>
      %36 = vector.shape_cast %20 : vector<1x1024xf32> to vector<1x1x1024xf32>
      tpu.vector_store %arg7[%c0_19, %c0_20, %c0_21], %36 {strides = array<i32>} : memref<1x2x1024xf32, #tpu.memory_space<vmem>>, vector<1x1x1024xf32>,
      %c0_22 = arith.constant 0 : index
      %c1 = arith.constant 1 : index
      %c0_23 = arith.constant 0 : index
      %37 = vector.load %arg7[%c0_22, %c1, %c0_23] : memref<1x2x1024xf32, #tpu.memory_space<vmem>>, vector<1x1x1024xf32>
      %38 = vector.shape_cast %37 : vector<1x1x1024xf32> to vector<1x1024xf32>
      %39 = vector.shape_cast %23 : vector<1x1024xf32> to vector<1x1x1024xf32>
      tpu.vector_store %arg7[%c0_22, %c1, %c0_23], %39 {strides = array<i32>} : memref<1x2x1024xf32, #tpu.memory_space<vmem>>, vector<1x1x1024xf32>,
      %c0_24 = arith.constant 0 : index
      %c0_25 = arith.constant 0 : index
      %c0_26 = arith.constant 0 : index
      %40 = vector.load %arg6[%c0_24, %c0_25, %c0_26] : memref<1x2x1024xf32, #tpu.memory_space<vmem>>, vector<1x1x1024xf32>
      %41 = vector.shape_cast %40 : vector<1x1x1024xf32> to vector<1x1024xf32>
      %42 = vector.shape_cast %25 : vector<1x1024xf32> to vector<1x1x1024xf32>
      tpu.vector_store %arg6[%c0_24, %c0_25, %c0_26], %42 {strides = array<i32>} : memref<1x2x1024xf32, #tpu.memory_space<vmem>>, vector<1x1x1024xf32>,
      %c0_27 = arith.constant 0 : index
      %c1_28 = arith.constant 1 : index
      %c0_29 = arith.constant 0 : index
      %43 = vector.load %arg6[%c0_27, %c1_28, %c0_29] : memref<1x2x1024xf32, #tpu.memory_space<vmem>>, vector<1x1x1024xf32>
      %44 = vector.shape_cast %43 : vector<1x1x1024xf32> to vector<1x1024xf32>
      %45 = vector.shape_cast %27 : vector<1x1024xf32> to vector<1x1x1024xf32>
      tpu.vector_store %arg6[%c0_27, %c1_28, %c0_29], %45 {strides = array<i32>} : memref<1x2x1024xf32, #tpu.memory_space<vmem>>, vector<1x1x1024xf32>,
    } else {
    }
    %c0_i32_17 = arith.constant 0 : i32
    %31 = arith.cmpi sgt, %arg1, %c0_i32_17 : i32
    %32 = arith.extui %31 : i1 to i32
    %c0_i32_18 = arith.constant 0 : i32
    %33 = arith.cmpi ne, %32, %c0_i32_18 : i32
    scf.if %33 {
      %c0_19 = arith.constant 0 : index
      %c0_20 = arith.constant 0 : index
      %c0_21 = arith.constant 0 : index
      %34 = vector.load %arg7[%c0_19, %c0_20, %c0_21] : memref<1x2x1024xf32, #tpu.memory_space<vmem>>, vector<1x1x1024xf32>
      %35 = vector.shape_cast %34 : vector<1x1x1024xf32> to vector<1x1024xf32>
      %36 = arith.addf %35, %20 : vector<1x1024xf32>
      %c0_22 = arith.constant 0 : index
      %c0_23 = arith.constant 0 : index
      %c0_24 = arith.constant 0 : index
      %37 = vector.load %arg7[%c0_22, %c0_23, %c0_24] : memref<1x2x1024xf32, #tpu.memory_space<vmem>>, vector<1x1x1024xf32>
      %38 = vector.shape_cast %37 : vector<1x1x1024xf32> to vector<1x1024xf32>
      %39 = vector.shape_cast %36 : vector<1x1024xf32> to vector<1x1x1024xf32>
      tpu.vector_store %arg7[%c0_22, %c0_23, %c0_24], %39 {strides = array<i32>} : memref<1x2x1024xf32, #tpu.memory_space<vmem>>, vector<1x1x1024xf32>,
      %c0_25 = arith.constant 0 : index
      %c1 = arith.constant 1 : index
      %c0_26 = arith.constant 0 : index
      %40 = vector.load %arg7[%c0_25, %c1, %c0_26] : memref<1x2x1024xf32, #tpu.memory_space<vmem>>, vector<1x1x1024xf32>
      %41 = vector.shape_cast %40 : vector<1x1x1024xf32> to vector<1x1024xf32>
      %42 = arith.addf %41, %23 : vector<1x1024xf32>
      %c0_27 = arith.constant 0 : index
      %c1_28 = arith.constant 1 : index
      %c0_29 = arith.constant 0 : index
      %43 = vector.load %arg7[%c0_27, %c1_28, %c0_29] : memref<1x2x1024xf32, #tpu.memory_space<vmem>>, vector<1x1x1024xf32>
      %44 = vector.shape_cast %43 : vector<1x1x1024xf32> to vector<1x1024xf32>
      %45 = vector.shape_cast %42 : vector<1x1024xf32> to vector<1x1x1024xf32>
      tpu.vector_store %arg7[%c0_27, %c1_28, %c0_29], %45 {strides = array<i32>} : memref<1x2x1024xf32, #tpu.memory_space<vmem>>, vector<1x1x1024xf32>,
      %c0_30 = arith.constant 0 : index
      %c0_31 = arith.constant 0 : index
      %c0_32 = arith.constant 0 : index
      %46 = vector.load %arg6[%c0_30, %c0_31, %c0_32] : memref<1x2x1024xf32, #tpu.memory_space<vmem>>, vector<1x1x1024xf32>
      %47 = vector.shape_cast %46 : vector<1x1x1024xf32> to vector<1x1024xf32>
      %48 = arith.maximumf %47, %25 : vector<1x1024xf32>
      %c0_33 = arith.constant 0 : index
      %c0_34 = arith.constant 0 : index
      %c0_35 = arith.constant 0 : index
      %49 = vector.load %arg6[%c0_33, %c0_34, %c0_35] : memref<1x2x1024xf32, #tpu.memory_space<vmem>>, vector<1x1x1024xf32>
      %50 = vector.shape_cast %49 : vector<1x1x1024xf32> to vector<1x1024xf32>
      %51 = vector.shape_cast %48 : vector<1x1024xf32> to vector<1x1x1024xf32>
      tpu.vector_store %arg6[%c0_33, %c0_34, %c0_35], %51 {strides = array<i32>} : memref<1x2x1024xf32, #tpu.memory_space<vmem>>, vector<1x1x1024xf32>,
      %c0_36 = arith.constant 0 : index
      %c1_37 = arith.constant 1 : index
      %c0_38 = arith.constant 0 : index
      %52 = vector.load %arg6[%c0_36, %c1_37, %c0_38] : memref<1x2x1024xf32, #tpu.memory_space<vmem>>, vector<1x1x1024xf32>
      %53 = vector.shape_cast %52 : vector<1x1x1024xf32> to vector<1x1024xf32>
      %54 = arith.minimumf %53, %27 : vector<1x1024xf32>
      %c0_39 = arith.constant 0 : index
      %c1_40 = arith.constant 1 : index
      %c0_41 = arith.constant 0 : index
      %55 = vector.load %arg6[%c0_39, %c1_40, %c0_41] : memref<1x2x1024xf32, #tpu.memory_space<vmem>>, vector<1x1x1024xf32>
      %56 = vector.shape_cast %55 : vector<1x1x1024xf32> to vector<1x1024xf32>
      %57 = vector.shape_cast %54 : vector<1x1024xf32> to vector<1x1x1024xf32>
      tpu.vector_store %arg6[%c0_39, %c1_40, %c0_41], %57 {strides = array<i32>} : memref<1x2x1024xf32, #tpu.memory_space<vmem>>, vector<1x1x1024xf32>,
    } else {
    }
    return
  }
  func.func @transform_0(%arg0: i32, %arg1: i32) -> (i32, i32) {
    %c1_i32 = arith.constant 1 : i32
    %0 = arith.muli %arg0, %c1_i32 : i32
    %1 = arith.addi %0, %arg1 : i32
    %c0_i32 = arith.constant 0 : i32
    %c0_i32_0 = arith.constant 0 : i32
    return %1, %c0_i32 : i32, i32
  }
  func.func @transform_1(%arg0: i32, %arg1: i32) -> (i32, i32) {
    %c0_i32 = arith.constant 0 : i32
    %c0_i32_0 = arith.constant 0 : i32
    %c0_i32_1 = arith.constant 0 : i32
    return %c0_i32, %c0_i32_0 : i32, i32
  }
  func.func @transform_2(%arg0: i32, %arg1: i32) -> (i32, i32) {
    %c0_i32 = arith.constant 0 : i32
    %c0_i32_0 = arith.constant 0 : i32
    %c0_i32_1 = arith.constant 0 : i32
    return %c0_i32, %c0_i32_0 : i32, i32
  }
  func.func @transform_3(%arg0: i32, %arg1: i32) -> (i32, i32) {
    %c0_i32 = arith.constant 0 : i32
    %c0_i32_0 = arith.constant 0 : i32
    %c0_i32_1 = arith.constant 0 : i32
    return %c0_i32, %c0_i32_0 : i32, i32
  }
  func.func @transform_4(%arg0: i32, %arg1: i32) -> (i32, i32, i32) {
    %c0_i32 = arith.constant 0 : i32
    %c0_i32_0 = arith.constant 0 : i32
    %c0_i32_1 = arith.constant 0 : i32
    return %arg0, %c0_i32, %c0_i32_0 : i32, i32, i32
  }
  func.func @transform_5(%arg0: i32, %arg1: i32) -> (i32, i32, i32) {
    %c0_i32 = arith.constant 0 : i32
    %c0_i32_0 = arith.constant 0 : i32
    %c0_i32_1 = arith.constant 0 : i32
    return %arg0, %c0_i32, %c0_i32_0 : i32, i32, i32
  }
}

module attributes {stable_mosaic.version = 11 : i64} {
  func.func @_fc_head_kernel(%arg0: i32, %arg1: memref<2x2x1024xf32, #tpu.memory_space<vmem>>, %arg2: memref<1x1024xf32, #tpu.memory_space<vmem>>, %arg3: memref<1x1024xf32, #tpu.memory_space<vmem>>, %arg4: memref<1024x512xbf16, #tpu.memory_space<vmem>>, %arg5: memref<1x512xf32, #tpu.memory_space<vmem>>, %arg6: memref<1x512xf32, #tpu.memory_space<vmem>>, %arg7: memref<512x256xbf16, #tpu.memory_space<vmem>>, %arg8: memref<1x256xf32, #tpu.memory_space<vmem>>, %arg9: memref<1x256xf32, #tpu.memory_space<vmem>>, %arg10: memref<256x9xbf16, #tpu.memory_space<vmem>>, %arg11: memref<1x9xf32, #tpu.memory_space<vmem>>, %arg12: memref<1x9xf32, #tpu.memory_space<vmem>>, %arg13: memref<2x9xf32, #tpu.memory_space<vmem>>) attributes {dimension_semantics = [#tpu.dimension_semantics<arbitrary>], iteration_bounds = array<i64: 1>, scalar_prefetch = 0 : i64, scratch_operands = 0 : i64, tpu.core_type = #tpu.core_type<tc>, window_params = [{pipeline_mode = #tpu.pipeline_mode<synchronous>, transform_indices = @transform_0, window_bounds = array<i64: 2, 2, 1024>}, {pipeline_mode = #tpu.pipeline_mode<synchronous>, transform_indices = @transform_1, window_bounds = array<i64: 1, 1024>}, {pipeline_mode = #tpu.pipeline_mode<synchronous>, transform_indices = @transform_2, window_bounds = array<i64: 1, 1024>}, {pipeline_mode = #tpu.pipeline_mode<synchronous>, transform_indices = @transform_3, window_bounds = array<i64: 1024, 512>}, {pipeline_mode = #tpu.pipeline_mode<synchronous>, transform_indices = @transform_4, window_bounds = array<i64: 1, 512>}, {pipeline_mode = #tpu.pipeline_mode<synchronous>, transform_indices = @transform_5, window_bounds = array<i64: 1, 512>}, {pipeline_mode = #tpu.pipeline_mode<synchronous>, transform_indices = @transform_6, window_bounds = array<i64: 512, 256>}, {pipeline_mode = #tpu.pipeline_mode<synchronous>, transform_indices = @transform_7, window_bounds = array<i64: 1, 256>}, {pipeline_mode = #tpu.pipeline_mode<synchronous>, transform_indices = @transform_8, window_bounds = array<i64: 1, 256>}, {pipeline_mode = #tpu.pipeline_mode<synchronous>, transform_indices = @transform_9, window_bounds = array<i64: 256, 9>}, {pipeline_mode = #tpu.pipeline_mode<synchronous>, transform_indices = @transform_10, window_bounds = array<i64: 1, 9>}, {pipeline_mode = #tpu.pipeline_mode<synchronous>, transform_indices = @transform_11, window_bounds = array<i64: 1, 9>}, {pipeline_mode = #tpu.pipeline_mode<synchronous>, transform_indices = @transform_12, window_bounds = array<i64: 2, 9>}]} {
    %c0 = arith.constant 0 : index
    %c0_0 = arith.constant 0 : index
    %c0_1 = arith.constant 0 : index
    %0 = vector.load %arg1[%c0, %c0_0, %c0_1] : memref<2x2x1024xf32, #tpu.memory_space<vmem>>, vector<2x2x1024xf32>
    %c0_2 = arith.constant 0 : index
    %c0_3 = arith.constant 0 : index
    %1 = vector.load %arg2[%c0_2, %c0_3] : memref<1x1024xf32, #tpu.memory_space<vmem>>, vector<1x1024xf32>
    %cst = arith.constant 0.000000e+00 : f32
    %2 = vector.broadcast %cst : f32 to vector<1x1024xf32>
    %3 = arith.cmpf oge, %1, %2 : vector<1x1024xf32>
    %4 = vector.extract_strided_slice %0 {offsets = [0, 0, 0], sizes = [2, 1, 1024], strides = [1, 1, 1]} : vector<2x2x1024xf32> to vector<2x1x1024xf32>
    %5 = vector.shape_cast %4 : vector<2x1x1024xf32> to vector<2x1024xf32>
    %6 = vector.extract_strided_slice %0 {offsets = [0, 1, 0], sizes = [2, 1, 1024], strides = [1, 1, 1]} : vector<2x2x1024xf32> to vector<2x1x1024xf32>
    %7 = vector.shape_cast %6 : vector<2x1x1024xf32> to vector<2x1024xf32>
    %8 = vector.shape_cast %3 : vector<1x1024xi1> to vector<1x1024xi1>
    %9 = vector.broadcast %8 : vector<1x1024xi1> to vector<2x1024xi1>
    %10 = arith.select %9, %5, %7 : vector<2x1024xi1>, vector<2x1024xf32>
    %11 = vector.broadcast %1 : vector<1x1024xf32> to vector<2x1024xf32>
    %12 = arith.mulf %10, %11 : vector<2x1024xf32>
    %c0_4 = arith.constant 0 : index
    %c0_5 = arith.constant 0 : index
    %13 = vector.load %arg3[%c0_4, %c0_5] : memref<1x1024xf32, #tpu.memory_space<vmem>>, vector<1x1024xf32>
    %14 = vector.broadcast %13 : vector<1x1024xf32> to vector<2x1024xf32>
    %15 = arith.addf %12, %14 : vector<2x1024xf32>
    %cst_6 = arith.constant 0.000000e+00 : f32
    %16 = vector.broadcast %cst_6 : f32 to vector<2x1024xf32>
    %17 = arith.cmpf ogt, %15, %16 : vector<2x1024xf32>
    %cst_7 = arith.constant 2.000000e-01 : f32
    %18 = vector.broadcast %cst_7 : f32 to vector<2x1024xf32>
    %19 = arith.mulf %18, %15 : vector<2x1024xf32>
    %20 = arith.select %17, %15, %19 : vector<2x1024xi1>, vector<2x1024xf32>
    %21 = arith.truncf %20 : vector<2x1024xf32> to vector<2x1024xbf16>
    %c0_8 = arith.constant 0 : index
    %c0_9 = arith.constant 0 : index
    %22 = vector.load %arg4[%c0_8, %c0_9] : memref<1024x512xbf16, #tpu.memory_space<vmem>>, vector<1024x512xbf16>
    %cst_10 = arith.constant dense<0.000000e+00> : vector<2x512xf32>
    %23 = tpu.matmul %21, %22, %cst_10 {dimension_numbers = #tpu.dot_dimension_numbers<[1], [0], [0], [1], [0, 0, 1, 1], [], []>} : vector<2x1024xbf16>, vector<1024x512xbf16>, vector<2x512xf32> -> vector<2x512xf32>
    %cst_11 = arith.constant dense<0.000000e+00> : vector<512xf32>
    %24 = vector.multi_reduction <add>, %23, %cst_11 [0] : vector<2x512xf32> to vector<512xf32>
    %25 = vector.shape_cast %24 : vector<512xf32> to vector<1x512xf32>
    %cst_12 = arith.constant 2.000000e+00 : f32
    %26 = vector.broadcast %cst_12 : f32 to vector<1x512xf32>
    %27 = arith.divf %25, %26 : vector<1x512xf32>
    %28 = arith.mulf %23, %23 : vector<2x512xf32>
    %cst_13 = arith.constant dense<0.000000e+00> : vector<512xf32>
    %29 = vector.multi_reduction <add>, %28, %cst_13 [0] : vector<2x512xf32> to vector<512xf32>
    %30 = vector.shape_cast %29 : vector<512xf32> to vector<1x512xf32>
    %cst_14 = arith.constant 2.000000e+00 : f32
    %31 = vector.broadcast %cst_14 : f32 to vector<1x512xf32>
    %32 = arith.divf %30, %31 : vector<1x512xf32>
    %33 = arith.mulf %27, %27 : vector<1x512xf32>
    %34 = arith.subf %32, %33 : vector<1x512xf32>
    %cst_15 = arith.constant 0.000000e+00 : f32
    %35 = vector.broadcast %cst_15 : f32 to vector<1x512xf32>
    %36 = arith.maximumf %34, %35 : vector<1x512xf32>
    %37 = vector.broadcast %27 : vector<1x512xf32> to vector<2x512xf32>
    %38 = arith.subf %23, %37 : vector<2x512xf32>
    %cst_16 = arith.constant 9.99999974E-6 : f32
    %39 = vector.broadcast %cst_16 : f32 to vector<1x512xf32>
    %40 = arith.addf %36, %39 : vector<1x512xf32>
    %41 = math.rsqrt %40 : vector<1x512xf32>
    %42 = vector.broadcast %41 : vector<1x512xf32> to vector<2x512xf32>
    %43 = arith.mulf %38, %42 : vector<2x512xf32>
    %c0_17 = arith.constant 0 : index
    %c0_18 = arith.constant 0 : index
    %44 = vector.load %arg5[%c0_17, %c0_18] : memref<1x512xf32, #tpu.memory_space<vmem>>, vector<1x512xf32>
    %45 = vector.broadcast %44 : vector<1x512xf32> to vector<2x512xf32>
    %46 = arith.mulf %43, %45 : vector<2x512xf32>
    %c0_19 = arith.constant 0 : index
    %c0_20 = arith.constant 0 : index
    %47 = vector.load %arg6[%c0_19, %c0_20] : memref<1x512xf32, #tpu.memory_space<vmem>>, vector<1x512xf32>
    %48 = vector.broadcast %47 : vector<1x512xf32> to vector<2x512xf32>
    %49 = arith.addf %46, %48 : vector<2x512xf32>
    %cst_21 = arith.constant 0.000000e+00 : f32
    %50 = vector.broadcast %cst_21 : f32 to vector<2x512xf32>
    %51 = arith.cmpf ogt, %49, %50 : vector<2x512xf32>
    %cst_22 = arith.constant 2.000000e-01 : f32
    %52 = vector.broadcast %cst_22 : f32 to vector<2x512xf32>
    %53 = arith.mulf %52, %49 : vector<2x512xf32>
    %54 = arith.select %51, %49, %53 : vector<2x512xi1>, vector<2x512xf32>
    %55 = arith.truncf %54 : vector<2x512xf32> to vector<2x512xbf16>
    %c0_23 = arith.constant 0 : index
    %c0_24 = arith.constant 0 : index
    %56 = vector.load %arg7[%c0_23, %c0_24] : memref<512x256xbf16, #tpu.memory_space<vmem>>, vector<512x256xbf16>
    %cst_25 = arith.constant dense<0.000000e+00> : vector<2x256xf32>
    %57 = tpu.matmul %55, %56, %cst_25 {dimension_numbers = #tpu.dot_dimension_numbers<[1], [0], [0], [1], [0, 0, 1, 1], [], []>} : vector<2x512xbf16>, vector<512x256xbf16>, vector<2x256xf32> -> vector<2x256xf32>
    %cst_26 = arith.constant dense<0.000000e+00> : vector<256xf32>
    %58 = vector.multi_reduction <add>, %57, %cst_26 [0] : vector<2x256xf32> to vector<256xf32>
    %59 = vector.shape_cast %58 : vector<256xf32> to vector<1x256xf32>
    %cst_27 = arith.constant 2.000000e+00 : f32
    %60 = vector.broadcast %cst_27 : f32 to vector<1x256xf32>
    %61 = arith.divf %59, %60 : vector<1x256xf32>
    %62 = arith.mulf %57, %57 : vector<2x256xf32>
    %cst_28 = arith.constant dense<0.000000e+00> : vector<256xf32>
    %63 = vector.multi_reduction <add>, %62, %cst_28 [0] : vector<2x256xf32> to vector<256xf32>
    %64 = vector.shape_cast %63 : vector<256xf32> to vector<1x256xf32>
    %cst_29 = arith.constant 2.000000e+00 : f32
    %65 = vector.broadcast %cst_29 : f32 to vector<1x256xf32>
    %66 = arith.divf %64, %65 : vector<1x256xf32>
    %67 = arith.mulf %61, %61 : vector<1x256xf32>
    %68 = arith.subf %66, %67 : vector<1x256xf32>
    %cst_30 = arith.constant 0.000000e+00 : f32
    %69 = vector.broadcast %cst_30 : f32 to vector<1x256xf32>
    %70 = arith.maximumf %68, %69 : vector<1x256xf32>
    %71 = vector.broadcast %61 : vector<1x256xf32> to vector<2x256xf32>
    %72 = arith.subf %57, %71 : vector<2x256xf32>
    %cst_31 = arith.constant 9.99999974E-6 : f32
    %73 = vector.broadcast %cst_31 : f32 to vector<1x256xf32>
    %74 = arith.addf %70, %73 : vector<1x256xf32>
    %75 = math.rsqrt %74 : vector<1x256xf32>
    %76 = vector.broadcast %75 : vector<1x256xf32> to vector<2x256xf32>
    %77 = arith.mulf %72, %76 : vector<2x256xf32>
    %c0_32 = arith.constant 0 : index
    %c0_33 = arith.constant 0 : index
    %78 = vector.load %arg8[%c0_32, %c0_33] : memref<1x256xf32, #tpu.memory_space<vmem>>, vector<1x256xf32>
    %79 = vector.broadcast %78 : vector<1x256xf32> to vector<2x256xf32>
    %80 = arith.mulf %77, %79 : vector<2x256xf32>
    %c0_34 = arith.constant 0 : index
    %c0_35 = arith.constant 0 : index
    %81 = vector.load %arg9[%c0_34, %c0_35] : memref<1x256xf32, #tpu.memory_space<vmem>>, vector<1x256xf32>
    %82 = vector.broadcast %81 : vector<1x256xf32> to vector<2x256xf32>
    %83 = arith.addf %80, %82 : vector<2x256xf32>
    %cst_36 = arith.constant 0.000000e+00 : f32
    %84 = vector.broadcast %cst_36 : f32 to vector<2x256xf32>
    %85 = arith.cmpf ogt, %83, %84 : vector<2x256xf32>
    %cst_37 = arith.constant 2.000000e-01 : f32
    %86 = vector.broadcast %cst_37 : f32 to vector<2x256xf32>
    %87 = arith.mulf %86, %83 : vector<2x256xf32>
    %88 = arith.select %85, %83, %87 : vector<2x256xi1>, vector<2x256xf32>
    %89 = arith.truncf %88 : vector<2x256xf32> to vector<2x256xbf16>
    %c0_38 = arith.constant 0 : index
    %c0_39 = arith.constant 0 : index
    %90 = vector.load %arg10[%c0_38, %c0_39] : memref<256x9xbf16, #tpu.memory_space<vmem>>, vector<256x9xbf16>
    %cst_40 = arith.constant dense<0.000000e+00> : vector<2x9xf32>
    %91 = tpu.matmul %89, %90, %cst_40 {dimension_numbers = #tpu.dot_dimension_numbers<[1], [0], [0], [1], [0, 0, 1, 1], [], []>} : vector<2x256xbf16>, vector<256x9xbf16>, vector<2x9xf32> -> vector<2x9xf32>
    %c0_41 = arith.constant 0 : index
    %c0_42 = arith.constant 0 : index
    %92 = vector.load %arg11[%c0_41, %c0_42] : memref<1x9xf32, #tpu.memory_space<vmem>>, vector<1x9xf32>
    %93 = vector.broadcast %92 : vector<1x9xf32> to vector<2x9xf32>
    %94 = arith.addf %91, %93 : vector<2x9xf32>
    %c0_43 = arith.constant 0 : index
    %c0_44 = arith.constant 0 : index
    %95 = vector.load %arg12[%c0_43, %c0_44] : memref<1x9xf32, #tpu.memory_space<vmem>>, vector<1x9xf32>
    %96 = vector.broadcast %95 : vector<1x9xf32> to vector<2x9xf32>
    %97 = arith.addf %94, %96 : vector<2x9xf32>
    %c0_45 = arith.constant 0 : index
    %c0_46 = arith.constant 0 : index
    %98 = vector.load %arg13[%c0_45, %c0_46] : memref<2x9xf32, #tpu.memory_space<vmem>>, vector<2x9xf32>
    tpu.vector_store %arg13[%c0_45, %c0_46], %97 {strides = array<i32>} : memref<2x9xf32, #tpu.memory_space<vmem>>, vector<2x9xf32>,
    return
  }
  func.func @transform_0(%arg0: i32) -> (i32, i32, i32) {
    %c0_i32 = arith.constant 0 : i32
    %c0_i32_0 = arith.constant 0 : i32
    %c0_i32_1 = arith.constant 0 : i32
    %c0_i32_2 = arith.constant 0 : i32
    return %c0_i32, %c0_i32_0, %c0_i32_1 : i32, i32, i32
  }
  func.func @transform_1(%arg0: i32) -> (i32, i32) {
    %c0_i32 = arith.constant 0 : i32
    %c0_i32_0 = arith.constant 0 : i32
    %c0_i32_1 = arith.constant 0 : i32
    return %c0_i32, %c0_i32_0 : i32, i32
  }
  func.func @transform_2(%arg0: i32) -> (i32, i32) {
    %c0_i32 = arith.constant 0 : i32
    %c0_i32_0 = arith.constant 0 : i32
    %c0_i32_1 = arith.constant 0 : i32
    return %c0_i32, %c0_i32_0 : i32, i32
  }
  func.func @transform_3(%arg0: i32) -> (i32, i32) {
    %c0_i32 = arith.constant 0 : i32
    %c0_i32_0 = arith.constant 0 : i32
    %c0_i32_1 = arith.constant 0 : i32
    return %c0_i32, %c0_i32_0 : i32, i32
  }
  func.func @transform_4(%arg0: i32) -> (i32, i32) {
    %c0_i32 = arith.constant 0 : i32
    %c0_i32_0 = arith.constant 0 : i32
    %c0_i32_1 = arith.constant 0 : i32
    return %c0_i32, %c0_i32_0 : i32, i32
  }
  func.func @transform_5(%arg0: i32) -> (i32, i32) {
    %c0_i32 = arith.constant 0 : i32
    %c0_i32_0 = arith.constant 0 : i32
    %c0_i32_1 = arith.constant 0 : i32
    return %c0_i32, %c0_i32_0 : i32, i32
  }
  func.func @transform_6(%arg0: i32) -> (i32, i32) {
    %c0_i32 = arith.constant 0 : i32
    %c0_i32_0 = arith.constant 0 : i32
    %c0_i32_1 = arith.constant 0 : i32
    return %c0_i32, %c0_i32_0 : i32, i32
  }
  func.func @transform_7(%arg0: i32) -> (i32, i32) {
    %c0_i32 = arith.constant 0 : i32
    %c0_i32_0 = arith.constant 0 : i32
    %c0_i32_1 = arith.constant 0 : i32
    return %c0_i32, %c0_i32_0 : i32, i32
  }
  func.func @transform_8(%arg0: i32) -> (i32, i32) {
    %c0_i32 = arith.constant 0 : i32
    %c0_i32_0 = arith.constant 0 : i32
    %c0_i32_1 = arith.constant 0 : i32
    return %c0_i32, %c0_i32_0 : i32, i32
  }
  func.func @transform_9(%arg0: i32) -> (i32, i32) {
    %c0_i32 = arith.constant 0 : i32
    %c0_i32_0 = arith.constant 0 : i32
    %c0_i32_1 = arith.constant 0 : i32
    return %c0_i32, %c0_i32_0 : i32, i32
  }
  func.func @transform_10(%arg0: i32) -> (i32, i32) {
    %c0_i32 = arith.constant 0 : i32
    %c0_i32_0 = arith.constant 0 : i32
    %c0_i32_1 = arith.constant 0 : i32
    return %c0_i32, %c0_i32_0 : i32, i32
  }
  func.func @transform_11(%arg0: i32) -> (i32, i32) {
    %c0_i32 = arith.constant 0 : i32
    %c0_i32_0 = arith.constant 0 : i32
    %c0_i32_1 = arith.constant 0 : i32
    return %c0_i32, %c0_i32_0 : i32, i32
  }
  func.func @transform_12(%arg0: i32) -> (i32, i32) {
    %c0_i32 = arith.constant 0 : i32
    %c0_i32_0 = arith.constant 0 : i32
    %c0_i32_1 = arith.constant 0 : i32
    return %c0_i32, %c0_i32_0 : i32, i32
  }
}

</mosaic_0001>

<bundles_post_ra>
// kernel: _lambda_.3
= control target key start
LH: loop header
LB: loop body
LE: loop exit
PB: predicated region body
PF: predicated region fallthrough
CT: control target
= control target key end

     0   :  { %s835_s21 = smov 0   ;;  %s837_s22 = smov 0   ;;  %s917_s0 = inlined_call_operand.vmem [shape: f32[32,3], index: 0, kind: input, shape index: {}]   ;;  %s918_s1 = inlined_call_operand.vmem [shape: f32[3,64], index: 1, kind: input, shape index: {}]   ;;  %s919_s2 = inlined_call_operand.vmem [shape: f32[1,64], index: 2, kind: input, shape index: {}]   ;;  %s920_s3 = inlined_call_operand.vmem [shape: f32[1,64], index: 3, kind: input, shape index: {}]   ;;  %s921_s4 = inlined_call_operand.vmem [shape: bf16[64,128], index: 4, kind: input, shape index: {}]   ;;  %s922_s5 = inlined_call_operand.vmem [shape: bf16[32,128], index: 5, kind: output, shape index: {0}]   ;;  %s923_s6 = inlined_call_operand.vmem [shape: f32[2,2,128], index: 6, kind: output, shape index: {1}]  }
   0x1   :  { %s839_s23 = smov 0  }
   0x2 LB: > { %s29_s24 = sadd.s32 1, %s789_s22  ;;  %p667_p0 = scmp.ge.s32.totalorder %s793_s23, 1  ;;  %s793_s23 = sphi %s839_s23, %s17_s23   ;;  %s789_s22 = sphi %s837_s22, %s925_s22   ;;  %s785_s21 = sphi %s835_s21, %s924_s21  }
   0x3   : > { %p31_p1 = scmp.ge.s32.totalorder %s29_s24, 2  ;;  %p234_p2 = scmp.lt.s32.totalorder %s793_s23, 3 }
   0x5   : > { %s927_s24 = smov (%p31_p1, %s29_s24), 0  ;;  %p235_p3 = pnand %p667_p0, %p234_p2 }
   0x6   : > { %s668_s25 = sshll.u32 (!%p235_p3), %s785_s21, 1  ;;  %v795_v0 = vmov (!%p235_p3), 1   ;;  %v796_v1 = vmov (!%p235_p3), 0   ;;  %v763_v4 = vld [vmem:[%s921_s4] sm:$0xff] (!%p235_p3)   ;;  %v797_v5 = vmov (!%p235_p3), 0.0   ;;  %v798_v6 = vmov (!%p235_p3), 2  }
   0x7   : > { %238 = sbr.rel (%p235_p3) target bundleno = 399 (0x18f), region = 40  ;;  %760 = vset.pattern.permute.xlu1 (!%p235_p3), %v795_v0  ;;  %759 = vset.pattern.permute.xlu0 (!%p235_p3), %v796_v1  ;;  %p272_p4 = scmp.lt.s32.totalorder (!%p235_p3), %s668_s25, 3  ;;  %v764_v7 = vld [vmem:[%s921_s4 + $0x8] sm:$0xff] (!%p235_p3)   ;;  %v765_v8 = vld [vmem:[%s921_s4 + $0x10] sm:$0xff] (!%p235_p3)   ;;  %v766_v9 = vld [vmem:[%s921_s4 + $0x18] sm:$0xff] (!%p235_p3)   ;;  %vm799_vm0 = vmmov (!%p235_p3), 0   ;;  %v304_v14 = vlaneseq (!%p235_p3) }
   0x8   : > { %706 = vmatprep.subr.bf16.mxu0 (!%p235_p3), %v797_v5  ;;  %718 = vmatprep.subr.bf16.mxu1 (!%p235_p3), %v797_v5  ;;  %v767_v10 = vld [vmem:[%s921_s4] sm:$0xff] (!%p235_p3)   ;;  %v768_v11 = vld [vmem:[%s921_s4 + $0x8] sm:$0xff] (!%p235_p3)   ;;  %v769_v12 = vld [vmem:[%s921_s4 + $0x10] sm:$0xff] (!%p235_p3)   ;;  %vm399_vm1 = vcmask (!%p235_p3), 523264   ;;  %p286_p5 = scmp.lt.s32.totalorder (!%p235_p3), %s785_s21, 1 }
   0x9   : > { %707 = vmatpush3.bf16.msra.mxu0 (!%p235_p3), %v763_v4  ;;  %714 = vmatprep.mubr.msk.bf16.mxu0 (!%p235_p3), %vm799_vm0, %v797_v5  ;;  %v770_v13 = vld [vmem:[%s921_s4 + $0x18] sm:$0xff] (!%p235_p3)   ;;  %v305_v15 = vshrl.u32 (!%p235_p3), %v304_v14, 7  ;;  %v293_v18 = vld [vmem:[%s918_s1] sm:$0x7] (!%p235_p3) }
   0xa   : > { %708 = vmatprep.subr.bf16.mxu0 (!%p235_p3), %v797_v5  ;;  %726 = vmatprep.mubr.msk.bf16.mxu1 (!%p235_p3), %vm799_vm0, %v797_v5  ;;  %v673_v37 = vld [vmem:[%s919_s2] ss:$0 sm:$0xff] (!%p235_p3) }
   0xb   : > { %719 = vmatpush3.bf16.msra.mxu1 (!%p235_p3), %v767_v10  ;;  %v320_v16 = vsub.s32 (!%p235_p3), 1, %v305_v15  ;;  %v306_v17 = vsub.s32 (!%p235_p3), 0, %v305_v15  ;;  %v336_v21 = vsub.s32 (!%p235_p3), 2, %v305_v15  ;;  %v674_v40 = vld [vmem:[%s920_s3] ss:$0 sm:$0xff] (!%p235_p3) }
   0xc   : > { %720 = vmatprep.subr.bf16.mxu1 (!%p235_p3), %v797_v5 }
   0xd   : > { %709 = vmatpush3.bf16.msra.mxu0 (!%p235_p3), %v764_v7  ;;  %v321_v22 = vrot.slane (!%p235_p3), %v293_v18, %v320_v16  ;;  %v307_v23 = vrot.slane (!%p235_p3), %v293_v18, %v306_v17  ;;  %v337_v26 = vrot.slane (!%p235_p3), %v293_v18, %v336_v21 }
   0xe   : > { %s929_s25 = smov (!%p272_p4, %s668_s25), 3  ;;  %710 = vmatprep.subr.bf16.mxu0 %v797_v5  ;;  %s931_s21 = smov (!%p286_p5, %s785_s21), 1 }
   0xf   : > { %s669_s26 = sshll.u32 %s929_s25, 3  ;;  %721 = vmatpush3.bf16.msra.mxu1 %v768_v11  ;;  %s671_s9 = sshll.u32 %s929_s25, 2 }
  0x10   : > { %s275_s29 = scalar_lea.vmem %s917_s0, %s669_s26  ;;  %722 = vmatprep.subr.bf16.mxu1 %v797_v5  ;;  %s283_s12 = scalar_lea.vmem %s922_s5, %s671_s9 }
  0x11   : > { %v291_v2 = vld [vmem:[%s275_s29] sm:$0xff]  ;;  %v292_v3 = vld [vmem:[%s275_s29 + $0x8] sm:$0xff]  ;;  %711 = vmatpush3.bf16.msra.mxu0 %v765_v8  ;;  %s672_s13 = sshll.u32 %s931_s21, 1 }
  0x12   : > { %311 = vperm.xlu1 %760, %v291_v2   ;;  %296 = vperm.xlu0 %759, %v291_v2   ;;  %s289_s15 = scalar_lea.vmem %s923_s6, %s672_s13 }
  0x13   : > { %712 = vmatprep.subr.bf16.mxu0 %v797_v5  ;;  %723 = vmatpush3.bf16.msra.mxu1 %v769_v12 }
  0x14   : > { %724 = vmatprep.subr.bf16.mxu1 %v797_v5 }
  0x15   : > { %713 = vmatpush3.bf16.msra.mxu0 %v766_v9 }
  0x16   : > { %315 = vperm.xlu1 %760, %v292_v3   ;;  %301 = vperm.xlu0 %759, %v292_v3  }
  0x17   : > { %725 = vmatpush3.bf16.msra.mxu1 %v770_v13 }
  0x1a   : > { %762 = vset.pattern.permute.xlu1 %v798_v6  ;;  %761 = vset.pattern.permute.xlu0 %v798_v6 }
  0x1b   : > { %331 = vperm.xlu1 %762, %v292_v3   ;;  %327 = vperm.xlu0 %761, %v291_v2  }
  0x91   : > { %v312_v19 = vpop.permute.xlu1 %311  ;;  %v297_v20 = vpop.permute.xlu0 %296 }
  0x92   : > { %v322_v27 = vmul.f32 %v321_v22, %v312_v19  ;;  %v308_v28 = vmul.f32 %v307_v23, %v297_v20 }
  0x94   : > { %v324_v33 = vadd.f32 %v322_v27, %v308_v28 }
  0x95   : > { %v316_v24 = vpop.permute.xlu1 %315  ;;  %v302_v25 = vpop.permute.xlu0 %301 }
  0x96   : > { %v323_v29 = vmul.f32 %v321_v22, %v316_v24  ;;  %v309_v30 = vmul.f32 %v307_v23, %v302_v25 }
  0x98   : > { %v325_v34 = vadd.f32 %v323_v29, %v309_v30 }
  0x9a   : > { %v332_v31 = vpop.permute.xlu1 %331  ;;  %v328_v32 = vpop.permute.xlu0 %327 }
  0x9b   : > { %v339_v35 = vmul.f32 %v337_v26, %v332_v31  ;;  %v338_v36 = vmul.f32 %v337_v26, %v328_v32 }
  0x9d   : > { %v341_v38 = vadd.f32 %v339_v35, %v325_v34  ;;  %v340_v39 = vadd.f32 %v338_v36, %v324_v33 }
  0x9f   : > { %v350_v41 = vmul.f32 %v673_v37, %v341_v38  ;;  %v349_v42 = vmul.f32 %v673_v37, %v340_v39 }
  0xa1   : > { %v359_v43 = vadd.f32 %v674_v40, %v350_v41  ;;  %v358_v44 = vadd.f32 %v674_v40, %v349_v42 }
  0xa3   : > { %v363_v45 = vmul.f32 0.2, %v359_v43  ;;  %v362_v46 = vmul.f32 0.2, %v358_v44  ;;  %vm360_vm2 = vcmp.gt.f32.partialorder %v358_v44, 0.0  ;;  %vm361_vm3 = vcmp.gt.f32.partialorder %v359_v43, 0.0 }
  0xa5   : > { %v364_v47 = vsel %vm360_vm2, %v358_v44, %v362_v46  ;;  %v365_v48 = vsel %vm361_vm3, %v359_v43, %v363_v45 }
  0xa6   : > { %v366_v49 = vpack.c.bf16 %v365_v48, %v364_v47  ;;  %v454_v50 = vsel %vm399_vm1, %v364_v47, 0.0  ;;  %v455_v51 = vsel %vm399_vm1, %v365_v48, 0.0 }
  0xa7   : > { %v456_v52 = vadd.f32 %v455_v51, %v454_v50 }
  0xa8   : > { %715 = vmatmul.mubr.msk.bf16.vlgmr.msra.gmra.mrb[0].mxu0 %vm399_vm1, %v366_v49 }
  0xa9   : > { %v457_v53 = vrot.slane %v456_v52, 4 }
  0xab   : > { %v458_v54 = vadd.f32 %v457_v53, %v456_v52 }
  0xad   : > { %v459_v55 = vrot.slane %v458_v54, 2 }
  0xaf   : > { %v460_v56 = vadd.f32 %v459_v55, %v458_v54 }
  0xb1   : > { %v461_v57 = vrot.slane %v460_v56, 1 }
  0xb3   : > { %v462_v58 = vadd.f32 %v461_v57, %v460_v56 }
  0xb5   : > { %v463_v59 = vpack.c.bf16 %v462_v58, %v462_v58 }
  0xb7   : > { %727 = vmatmul.mubr.msk.bf16.vlgmr.msra.gmra.mrb[0].mxu1 %vm399_vm1, %v463_v59 }
 0x17b   : > { %v437_v60 = vpop.f32.mrb[0].mxu0 }
 0x17c   : > { %v716_v61 = vpop.f32.mrb[1].mxu0  ;;  %v539_v63 = vmul.f32 %v437_v60, %v437_v60 }
 0x17d   : > { %v440_v62 = vpop.f32.mrb[2].mxu0 }
 0x17e   : > { %v694_v0 = vpack.c.bf16 %v440_v62, %v437_v60  ;;  %v540_v1 = vmul.f32 %v440_v62, %v440_v62  ;;  %v717_v2 = vpop.f32.mrb[3].mxu0 }
 0x180   : > { %695 = vst [vmem:[%s283_s12] sm:$0xff] %v694_v0   ;;  %v541_v3 = vadd.f32 %v540_v1, %v539_v63 }
 0x182   : > { %v542_v4 = vrot.slane %v541_v3, 4 }
 0x184   : > { %v543_v5 = vadd.f32 %v542_v4, %v541_v3 }
 0x186   : > { %v544_v6 = vrot.slane %v543_v5, 2 }
 0x188   : > { %v545_v7 = vadd.f32 %v544_v6, %v543_v5 }
 0x18a   : > { %v533_v8 = vpop.f32.mrb[0].mxu1  ;;  %v546_v9 = vrot.slane %v545_v7, 1 }
 0x18b   : > { %552 = vst [vmem:[%s289_s15] sm:$0x1] %v533_v8  ;;  %v728_v10 = vpop.f32.mrb[1].mxu1 }
 0x18c   : > { %v547_v11 = vadd.f32 %v546_v9, %v545_v7  ;;  %v536_v12 = vpop.f32.mrb[2].mxu1 }
 0x18d   : > { %v729_v13 = vpop.f32.mrb[3].mxu1 }
 0x18e   : > { %553 = vst [vmem:[%s289_s15 + $0x1] sm:$0x1] %v547_v11 }
 0x18f PF: > { %s17_s23 = sadd.s32 1, %s793_s23   ;;  %s924_s21 = smov %s789_s22 }
 0x190   : > { %p14_p6 = scmp.ge.s32.totalorder %s17_s23, 4   ;;  %s925_s22 = smov %s927_s24 }
 0x192   :  { %16 = sbr.rel (!%p14_p6) target bundleno = 2 (0x2), region = 90 }

// kernel: _lambda_.4
= control target key start
LH: loop header
LB: loop body
LE: loop exit
PB: predicated region body
PF: predicated region fallthrough
CT: control target
= control target key end

     0   :  { %s1962_s18 = smov 0   ;;  %s1964_s19 = smov 0   ;;  %s2534_s0 = inlined_call_operand.vmem [shape: bf16[32,128], index: 0, kind: input, shape index: {}]   ;;  %s2535_s1 = inlined_call_operand.vmem [shape: f32[1,128], index: 1, kind: input, shape index: {}]   ;;  %s2536_s2 = inlined_call_operand.vmem [shape: f32[1,128], index: 2, kind: input, shape index: {}]   ;;  %s2537_s3 = inlined_call_operand.vmem [shape: bf16[128,1024], index: 3, kind: input, shape index: {}]   ;;  %s2538_s4 = inlined_call_operand.vmem [shape: f32[2,2,1024], index: 4, kind: output, shape index: {0}]   ;;  %s2539_s5 = inlined_call_operand.vmem [shape: f32[2,2,1024], index: 5, kind: output, shape index: {1}]  }
   0x1   :  { %s1966_s20 = smov 0  }
   0x2 LB: > { %s28_s21 = sadd.s32 1, %s1924_s19  ;;  %p1793_p0 = scmp.ge.s32.totalorder %s1928_s20, 1  ;;  %s1928_s20 = sphi %s1966_s20, %s16_s20   ;;  %s1924_s19 = sphi %s1964_s19, %s2574_s19   ;;  %s1920_s18 = sphi %s1962_s18, %s2573_s18  }
   0x3   : > { %p30_p1 = scmp.ge.s32.totalorder %s28_s21, 2  ;;  %p207_p2 = scmp.lt.s32.totalorder %s1928_s20, 3 }
   0x5   : > { %s2576_s21 = smov (%p30_p1, %s28_s21), 0  ;;  %p208_p3 = pnand %p1793_p0, %p207_p2 }
   0x7   : > { %211 = sbr.rel (%p208_p3) target bundleno = 370 (0x172), region = 36 }
   0xe   : > { %v289_v0 = vld [vmem:[%s2537_s3] sm:$0xff]  ;;  %v290_v2 = vld [vmem:[%s2537_s3 + $0x8] sm:$0xff]  ;;  %s1794_s28 = sshll.u32 %s1920_s18, 1  ;;  %v2540_v8 = vmov 0   ;;  %p249_p5 = scmp.lt.s32.totalorder %s1920_s18, 1 }
   0xf   : > { %v293_v1 = vld [vmem:[%s2537_s3 + $0x20] sm:$0xff]  ;;  %v294_v4 = vld [vmem:[%s2537_s3 + $0x28] sm:$0xff]  ;;  %705 = vmatprep.mubr.bf16.mxu0 %v2540_v8  ;;  %748 = vmatprep.mubr.bf16.mxu1 %v2540_v8  ;;  %p243_p4 = scmp.lt.s32.totalorder %s1794_s28, 3 }
  0x10   : > { %v1992_v3 = vcombine.high %v289_v0, %v293_v1  ;;  %v1997_v5 = vcombine.low %v289_v0, %v293_v1  ;;  %v297_v6 = vld [vmem:[%s2537_s3 + $0x40] sm:$0xff]  ;;  %v2007_v9 = vcombine.high %v290_v2, %v294_v4  ;;  %v2009_v10 = vcombine.low %v290_v2, %v294_v4  ;;  %v298_v12 = vld [vmem:[%s2537_s3 + $0x48] sm:$0xff]  ;;  %s2580_s18 = smov (!%p249_p5, %s1920_s18), 1 }
  0x11   : > { %v301_v7 = vld [vmem:[%s2537_s3 + $0x60] sm:$0xff]  ;;  %v302_v13 = vld [vmem:[%s2537_s3 + $0x68] sm:$0xff]  ;;  %s2578_s28 = smov (!%p243_p4, %s1794_s28), 3  ;;  %s1874_s9 = sshll.u32 %s2580_s18, 4 }
  0x12   : > { %v2011_v11 = vcombine.high %v297_v6, %v301_v7  ;;  %v305_v14 = vld [vmem:[%s2537_s3 + $0x80] sm:$0xff]  ;;  %673 = vmatprep.subr.bf16.mxu0 %v1992_v3  ;;  %v2023_v15 = vcombine.high %v298_v12, %v302_v13  ;;  %v306_v17 = vld [vmem:[%s2537_s3 + $0x88] sm:$0xff]  ;;  %716 = vmatprep.subr.bf16.mxu1 %v2007_v9  ;;  %v2036_v19 = vcombine.low %v297_v6, %v301_v7  ;;  %s1795_s26 = sshll.u32 %s2578_s28, 2  ;;  %s253_s18 = scalar_lea.vmem %s2538_s4, %s1874_s9 }
  0x13   : > { %v309_v16 = vld [vmem:[%s2537_s3 + $0xa0] sm:$0xff]  ;;  %v310_v18 = vld [vmem:[%s2537_s3 + $0xa8] sm:$0xff]  ;;  %674 = vmatpush1.bf16.msra.mxu0 %v1997_v5  ;;  %717 = vmatpush1.bf16.msra.mxu1 %v2009_v10  ;;  %v2040_v20 = vcombine.low %v298_v12, %v302_v13  ;;  %s246_s12 = scalar_lea.vmem %s2534_s0, %s1795_s26  ;;  %s258_s13 = scalar_lea.vmem %s2539_s5, %s1874_s9 }
  0x14   : > { %675 = vmatprep.subr.bf16.mxu0 %v2011_v11  ;;  %v2042_v21 = vcombine.high %v305_v14, %v309_v16  ;;  %718 = vmatprep.subr.bf16.mxu1 %v2023_v15  ;;  %v2045_v22 = vcombine.high %v306_v17, %v310_v18  ;;  %v313_v23 = vld [vmem:[%s2537_s3 + $0xc0] sm:$0xff]  ;;  %v314_v25 = vld [vmem:[%s2537_s3 + $0xc8] sm:$0xff]  ;;  %v2063_v27 = vcombine.low %v305_v14, %v309_v16 }
  0x15   : > { %v317_v24 = vld [vmem:[%s2537_s3 + $0xe0] sm:$0xff]  ;;  %v318_v26 = vld [vmem:[%s2537_s3 + $0xe8] sm:$0xff]  ;;  %v2067_v28 = vcombine.low %v306_v17, %v310_v18  ;;  %v291_v17 = vld [vmem:[%s2537_s3 + $0x10] sm:$0xff] }
  0x16   : > { %v2069_v29 = vcombine.high %v313_v23, %v317_v24  ;;  %v2072_v30 = vcombine.high %v314_v25, %v318_v26  ;;  %v321_v31 = vld [vmem:[%s2537_s3 + $0x100] sm:$0xff]  ;;  %v322_v34 = vld [vmem:[%s2537_s3 + $0x108] sm:$0xff]  ;;  %v2087_v36 = vcombine.low %v313_v23, %v317_v24  ;;  %v2091_v39 = vcombine.low %v314_v25, %v318_v26  ;;  %v295_v18 = vld [vmem:[%s2537_s3 + $0x30] sm:$0xff] }
  0x17   : > { %676 = vmatpush1.bf16.msra.mxu0 %v2036_v19  ;;  %719 = vmatpush1.bf16.msra.mxu1 %v2040_v20  ;;  %v325_v32 = vld [vmem:[%s2537_s3 + $0x120] sm:$0xff]  ;;  %v326_v35 = vld [vmem:[%s2537_s3 + $0x128] sm:$0xff]  ;;  %v292_v23 = vld [vmem:[%s2537_s3 + $0x18] sm:$0xff] }
  0x18   : > { %677 = vmatprep.subr.bf16.mxu0 %v2042_v21  ;;  %720 = vmatprep.subr.bf16.mxu1 %v2045_v22  ;;  %v1877_v33 = vld [vmem:[%s246_s12] sm:$0xff]   ;;  %v2093_v40 = vcombine.high %v321_v31, %v325_v32  ;;  %v2099_v42 = vcombine.high %v322_v34, %v326_v35  ;;  %v330_v45 = vld [vmem:[%s2537_s3 + $0x148] sm:$0xff]  ;;  %v2114_v47 = vcombine.low %v321_v31, %v325_v32  ;;  %v296_v24 = vld [vmem:[%s2537_s3 + $0x38] sm:$0xff] }
  0x19   : > { %v1878_v37 = vunpack.c.l.bf16 %v1877_v33  ;;  %v1879_v38 = vunpack.c.h.bf16 %v1877_v33  ;;  %v1800_v41 = vld [vmem:[%s2535_s1] ss:$0 sm:$0xff]  ;;  %v334_v46 = vld [vmem:[%s2537_s3 + $0x168] sm:$0xff]  ;;  %v2118_v50 = vcombine.low %v322_v34, %v326_v35  ;;  %v2199_v33 = vcombine.high %v291_v17, %v295_v18  ;;  %v299_v35 = vld [vmem:[%s2537_s3 + $0x50] sm:$0xff] }
  0x1a   : > { %v329_v43 = vld [vmem:[%s2537_s3 + $0x140] sm:$0xff]  ;;  %v2126_v53 = vcombine.high %v330_v45, %v334_v46  ;;  %v338_v56 = vld [vmem:[%s2537_s3 + $0x188] sm:$0xff]  ;;  %v2145_v61 = vcombine.low %v330_v45, %v334_v46  ;;  %v2202_v34 = vcombine.high %v292_v23, %v296_v24  ;;  %v2225_v45 = vcombine.low %v292_v23, %v296_v24  ;;  %v323_v23 = vld [vmem:[%s2537_s3 + $0x110] sm:$0xff] }
  0x1b   : > { %678 = vmatpush1.bf16.msra.mxu0 %v2063_v27  ;;  %721 = vmatpush1.bf16.msra.mxu1 %v2067_v28  ;;  %v333_v44 = vld [vmem:[%s2537_s3 + $0x160] sm:$0xff]  ;;  %v271_v48 = vmul.f32 %v1878_v37, %v1800_v41  ;;  %v272_v49 = vmul.f32 %v1879_v38, %v1800_v41  ;;  %v342_v57 = vld [vmem:[%s2537_s3 + $0x1a8] sm:$0xff]  ;;  %v303_v37 = vld [vmem:[%s2537_s3 + $0x70] sm:$0xff] }
  0x1c   : > { %679 = vmatprep.subr.bf16.mxu0 %v2069_v29  ;;  %722 = vmatprep.subr.bf16.mxu1 %v2072_v30  ;;  %v2120_v51 = vcombine.high %v329_v43, %v333_v44  ;;  %v1801_v52 = vld [vmem:[%s2536_s2] ss:$0 sm:$0xff]  ;;  %v2141_v58 = vcombine.low %v329_v43, %v333_v44  ;;  %v2150_v63 = vcombine.high %v338_v56, %v342_v57  ;;  %v346_v2 = vld [vmem:[%s2537_s3 + $0x1c8] sm:$0xff]  ;;  %v300_v41 = vld [vmem:[%s2537_s3 + $0x58] sm:$0xff] }
  0x1d   : > { %v337_v54 = vld [vmem:[%s2537_s3 + $0x180] sm:$0xff]  ;;  %v280_v59 = vadd.f32 %v1801_v52, %v271_v48  ;;  %v281_v60 = vadd.f32 %v1801_v52, %v272_v49  ;;  %v350_v4 = vld [vmem:[%s2537_s3 + $0x1e8] sm:$0xff]  ;;  %v2169_v13 = vcombine.low %v338_v56, %v342_v57  ;;  %v304_v43 = vld [vmem:[%s2537_s3 + $0x78] sm:$0xff]  ;;  %v2221_v44 = vcombine.low %v291_v17, %v295_v18 }
  0x1e   : > { %v341_v55 = vld [vmem:[%s2537_s3 + $0x1a0] sm:$0xff]  ;;  %v2174_v16 = vcombine.high %v346_v2, %v350_v4  ;;  %v2197_v32 = vcombine.low %v346_v2, %v350_v4  ;;  %v2227_v46 = vcombine.high %v299_v35, %v303_v37  ;;  %v2230_v48 = vcombine.high %v300_v41, %v304_v43  ;;  %v307_v49 = vld [vmem:[%s2537_s3 + $0x90] sm:$0xff]  ;;  %v316_v2 = vld [vmem:[%s2537_s3 + $0xd8] sm:$0xff] }
  0x1f   : > { %680 = vmatpush1.bf16.msra.mxu0 %v2087_v36  ;;  %723 = vmatpush1.bf16.msra.mxu1 %v2091_v39  ;;  %v2147_v62 = vcombine.high %v337_v54, %v341_v55  ;;  %v345_v0 = vld [vmem:[%s2537_s3 + $0x1c0] sm:$0xff]  ;;  %v2165_v6 = vcombine.low %v337_v54, %v341_v55  ;;  %v284_v7 = vmul.f32 0.2, %v280_v59  ;;  %v285_v12 = vmul.f32 0.2, %v281_v60  ;;  %v311_v52 = vld [vmem:[%s2537_s3 + $0xb0] sm:$0xff] }
  0x20   : > { %681 = vmatprep.subr.bf16.mxu0 %v2093_v40  ;;  %724 = vmatprep.subr.bf16.mxu1 %v2099_v42  ;;  %v349_v1 = vld [vmem:[%s2537_s3 + $0x1e0] sm:$0xff]  ;;  %vm282_vm0 = vcmp.gt.f32.partialorder %v280_v59, 0.0  ;;  %vm283_vm1 = vcmp.gt.f32.partialorder %v281_v60, 0.0  ;;  %v308_v54 = vld [vmem:[%s2537_s3 + $0x98] sm:$0xff]  ;;  %v2247_v56 = vcombine.low %v299_v35, %v303_v37  ;;  %v2251_v57 = vcombine.low %v300_v41, %v304_v43  ;;  %v327_v24 = vld [vmem:[%s2537_s3 + $0x130] sm:$0xff] }
  0x21   : > { %v2171_v14 = vcombine.high %v345_v0, %v349_v1  ;;  %v2189_v25 = vcombine.low %v345_v0, %v349_v1  ;;  %v2191_v26 = vsel %vm282_vm0, %v280_v59, %v284_v7  ;;  %v2193_v31 = vsel %vm283_vm1, %v281_v60, %v285_v12  ;;  %v312_v55 = vld [vmem:[%s2537_s3 + $0xb8] sm:$0xff]  ;;  %v315_v0 = vld [vmem:[%s2537_s3 + $0xd0] sm:$0xff] }
  0x22   : > { %v2212_v38 = vpack.c.bf16 %v2193_v31, %v2191_v26  ;;  %v2253_v59 = vcombine.high %v307_v49, %v311_v52  ;;  %v2256_v60 = vcombine.high %v308_v54, %v312_v55  ;;  %v319_v1 = vld [vmem:[%s2537_s3 + $0xf0] sm:$0xff]  ;;  %v320_v4 = vld [vmem:[%s2537_s3 + $0xf8] sm:$0xff]  ;;  %v2273_v7 = vcombine.low %v307_v49, %v311_v52 }
  0x23   : > { %682 = vmatpush1.bf16.msra.mxu0 %v2114_v47  ;;  %725 = vmatpush1.bf16.msra.mxu1 %v2118_v50  ;;  %v2277_v12 = vcombine.low %v308_v54, %v312_v55  ;;  %v2279_v17 = vcombine.high %v315_v0, %v319_v1  ;;  %v2282_v18 = vcombine.high %v316_v2, %v320_v4  ;;  %v324_v35 = vld [vmem:[%s2537_s3 + $0x118] sm:$0xff]  ;;  %v331_v54 = vld [vmem:[%s2537_s3 + $0x150] sm:$0xff] }
  0x24   : > { %683 = vmatprep.subr.bf16.mxu0 %v2120_v51  ;;  %726 = vmatprep.subr.bf16.mxu1 %v2126_v53  ;;  %v328_v37 = vld [vmem:[%s2537_s3 + $0x138] sm:$0xff]  ;;  %v2297_v41 = vcombine.low %v315_v0, %v319_v1  ;;  %v2301_v43 = vcombine.low %v316_v2, %v320_v4  ;;  %v2303_v49 = vcombine.high %v323_v23, %v327_v24  ;;  %v335_v55 = vld [vmem:[%s2537_s3 + $0x170] sm:$0xff] }
  0x25   : > { %2552 = vst [vmem:[#allocation2_spill] sm:$0xff] %v2279_v17  ;;  %2553 = vst [vmem:[#allocation3_spill] sm:$0xff] %v2282_v18  ;;  %v2306_v52 = vcombine.high %v324_v35, %v328_v37  ;;  %v332_v0 = vld [vmem:[%s2537_s3 + $0x158] sm:$0xff]  ;;  %v2321_v2 = vcombine.low %v323_v23, %v327_v24  ;;  %v2325_v4 = vcombine.low %v324_v35, %v328_v37  ;;  %v343_v23 = vld [vmem:[%s2537_s3 + $0x1b0] sm:$0xff] }
  0x26   : > { %2554 = vst [vmem:[#allocation4_spill] sm:$0xff] %v2297_v41  ;;  %2555 = vst [vmem:[#allocation5_spill] sm:$0xff] %v2301_v43  ;;  %v336_v1 = vld [vmem:[%s2537_s3 + $0x178] sm:$0xff]  ;;  %v2345_v37 = vcombine.low %v331_v54, %v335_v55 }
  0x27   : > { %684 = vmatpush1.bf16.msra.mxu0 %v2141_v58  ;;  %727 = vmatpush1.bf16.msra.mxu1 %v2145_v61  ;;  %2556 = vst [vmem:[#allocation6_spill] sm:$0xff] %v2303_v49  ;;  %2557 = vst [vmem:[#allocation7_spill] sm:$0xff] %v2306_v52  ;;  %v340_v24 = vld [vmem:[%s2537_s3 + $0x198] sm:$0xff] }
  0x28   : > { %685 = vmatprep.subr.bf16.mxu0 %v2147_v62  ;;  %728 = vmatprep.subr.bf16.mxu1 %v2150_v63  ;;  %2558 = vst [vmem:[#allocation8_spill] sm:$0xff] %v2321_v2  ;;  %2559 = vst [vmem:[#allocation9_spill] sm:$0xff] %v2325_v4  ;;  %v344_v35 = vld [vmem:[%s2537_s3 + $0x1b8] sm:$0xff] }
  0x2b   : > { %686 = vmatpush1.bf16.msra.mxu0 %v2165_v6  ;;  %729 = vmatpush1.bf16.msra.mxu1 %v2169_v13 }
  0x2c   : > { %687 = vmatprep.subr.bf16.mxu0 %v2171_v14  ;;  %730 = vmatprep.subr.bf16.mxu1 %v2174_v16 }
  0x2f   : > { %688 = vmatpush1.bf16.msra.mxu0 %v2189_v25  ;;  %731 = vmatpush1.bf16.msra.mxu1 %v2197_v32 }
  0x30   : > { %759 = vmatprep.subr.bf16.mxu0 %v2199_v33  ;;  %802 = vmatprep.subr.bf16.mxu1 %v2202_v34 }
  0x32   : > { %706 = vmatmul.mubr.bf16.vlgmr.msra.gmra.mrb[0].mxu0 %v2212_v38  ;;  %749 = vmatmul.mubr.bf16.vlgmr.msra.gmra.mrb[0].mxu1 %v2212_v38 }
  0x33   : > { %760 = vmatpush1.bf16.msra.mxu0 %v2221_v44  ;;  %803 = vmatpush1.bf16.msra.mxu1 %v2225_v45 }
  0x34   : > { %761 = vmatprep.subr.bf16.mxu0 %v2227_v46  ;;  %804 = vmatprep.subr.bf16.mxu1 %v2230_v48 }
  0x35   : > { %791 = vmatprep.mubr.bf16.mxu0 %v2540_v8  ;;  %834 = vmatprep.mubr.bf16.mxu1 %v2540_v8  ;;  %v2327_v8 = vcombine.high %v331_v54, %v335_v55  ;;  %v351_v54 = vld [vmem:[%s2537_s3 + $0x1f0] sm:$0xff]  ;;  %v348_v55 = vld [vmem:[%s2537_s3 + $0x1d8] sm:$0xff] }
  0x37   : > { %762 = vmatpush1.bf16.msra.mxu0 %v2247_v56  ;;  %805 = vmatpush1.bf16.msra.mxu1 %v2251_v57  ;;  %2560 = vst [vmem:[#allocation10_spill] sm:$0xff] %v2327_v8 }
  0x38   : > { %763 = vmatprep.subr.bf16.mxu0 %v2253_v59  ;;  %806 = vmatprep.subr.bf16.mxu1 %v2256_v60 }
  0x3b   : > { %764 = vmatpush1.bf16.msra.mxu0 %v2273_v7  ;;  %807 = vmatpush1.bf16.msra.mxu1 %v2277_v12 }
  0x3c   : > { %765 = vmatprep.subr.bf16.mxu0 %v2279_v17  ;;  %808 = vmatprep.subr.bf16.mxu1 %v2282_v18  ;;  %v2330_v18 = vcombine.high %v332_v0, %v336_v1  ;;  %v339_v17 = vld [vmem:[%s2537_s3 + $0x190] sm:$0xff] }
  0x3e   : > { %2561 = vst [vmem:[#allocation11_spill] sm:$0xff] %v2330_v18 }
  0x3f   : > { %766 = vmatpush1.bf16.msra.mxu0 %v2297_v41  ;;  %809 = vmatpush1.bf16.msra.mxu1 %v2301_v43  ;;  %v2354_v43 = vcombine.high %v340_v24, %v344_v35  ;;  %v347_v41 = vld [vmem:[%s2537_s3 + $0x1d0] sm:$0xff] }
  0x40   : > { %767 = vmatprep.subr.bf16.mxu0 %v2303_v49  ;;  %810 = vmatprep.subr.bf16.mxu1 %v2306_v52  ;;  %v2349_v52 = vcombine.low %v332_v0, %v336_v1  ;;  %v2351_v49 = vcombine.high %v339_v17, %v343_v23  ;;  %v352_v0 = vld [vmem:[%s2537_s3 + $0x1f8] sm:$0xff]  ;;  %v2369_v1 = vcombine.low %v339_v17, %v343_v23  ;;  %v2562_v23 = vmov 0  }
  0x41   : > { %v2385_v17 = vcombine.low %v348_v55, %v352_v0 }
  0x43   : > { %768 = vmatpush1.bf16.msra.mxu0 %v2321_v2  ;;  %811 = vmatpush1.bf16.msra.mxu1 %v2325_v4  ;;  %v2378_v4 = vcombine.high %v348_v55, %v352_v0  ;;  %v2381_v2 = vcombine.low %v347_v41, %v351_v54 }
  0x44   : > { %769 = vmatprep.subr.bf16.mxu0 %v2327_v8  ;;  %812 = vmatprep.subr.bf16.mxu1 %v2330_v18  ;;  %v2373_v18 = vcombine.low %v340_v24, %v344_v35  ;;  %v2375_v8 = vcombine.high %v347_v41, %v351_v54  ;;  %v845_v41 = vadd.f32 %v2193_v31, %v2191_v26 }
  0x47   : > { %770 = vmatpush1.bf16.msra.mxu0 %v2345_v37  ;;  %813 = vmatpush1.bf16.msra.mxu1 %v2349_v52 }
  0x48   : > { %771 = vmatprep.subr.bf16.mxu0 %v2351_v49  ;;  %814 = vmatprep.subr.bf16.mxu1 %v2354_v43 }
  0x4b   : > { %772 = vmatpush1.bf16.msra.mxu0 %v2369_v1  ;;  %815 = vmatpush1.bf16.msra.mxu1 %v2373_v18 }
  0x4c   : > { %773 = vmatprep.subr.bf16.mxu0 %v2375_v8  ;;  %816 = vmatprep.subr.bf16.mxu1 %v2378_v4 }
  0x4f   : > { %774 = vmatpush1.bf16.msra.mxu0 %v2381_v2  ;;  %817 = vmatpush1.bf16.msra.mxu1 %v2385_v17 }
  0x50   : > { %853 = vmatprep.subr.bf16.mxu0 %v1992_v3  ;;  %894 = vmatprep.subr.bf16.mxu1 %v2007_v9  ;;  %v846_v3 = vrot.slane %v845_v41, 4 }
  0x52   : > { %792 = vmatmul.mubr.bf16.vlgmr.msra.gmra.mrb[4].mxu0 %v2212_v38  ;;  %835 = vmatmul.mubr.bf16.vlgmr.msra.gmra.mrb[4].mxu1 %v2212_v38 }
  0x53   : > { %854 = vmatpush1.bf16.msra.mxu0 %v1997_v5  ;;  %895 = vmatpush1.bf16.msra.mxu1 %v2009_v10  ;;  %v847_v5 = vadd.f32 %v846_v3, %v845_v41 }
  0x54   : > { %855 = vmatprep.subr.bf16.mxu0 %v2011_v11  ;;  %896 = vmatprep.subr.bf16.mxu1 %v2023_v15 }
  0x55   : > { %885 = vmatprep.mubr.bf16.mxu0 %v2562_v23  ;;  %926 = vmatprep.mubr.bf16.mxu1 %v2562_v23  ;;  %v848_v9 = vrot.slane %v847_v5, 2 }
  0x57   : > { %856 = vmatpush1.bf16.msra.mxu0 %v2036_v19  ;;  %897 = vmatpush1.bf16.msra.mxu1 %v2040_v20  ;;  %v849_v10 = vadd.f32 %v848_v9, %v847_v5  ;;  %v2563_v20 = vld [vmem:[#allocation2_spill] sm:$0xff]  ;;  %v1931_v5 = vmov 1966171168  }
  0x58   : > { %857 = vmatprep.subr.bf16.mxu0 %v2042_v21  ;;  %898 = vmatprep.subr.bf16.mxu1 %v2045_v22  ;;  %v2564_v21 = vld [vmem:[#allocation3_spill] sm:$0xff]  ;;  %v2565_v22 = vld [vmem:[#allocation4_spill] sm:$0xff]  ;;  %v1218_v9 = vunpack.c.l.s4 %v1931_v5 }
  0x59   : > { %v850_v11 = vrot.slane %v849_v10, 1 }
  0x5b   : > { %858 = vmatpush1.bf16.msra.mxu0 %v2063_v27  ;;  %899 = vmatpush1.bf16.msra.mxu1 %v2067_v28  ;;  %v851_v15 = vadd.f32 %v850_v11, %v849_v10  ;;  %v2566_v27 = vld [vmem:[#allocation5_spill] sm:$0xff]  ;;  %v2567_v28 = vld [vmem:[#allocation6_spill] sm:$0xff]  ;;  %v1220_v10 = vlaneseq }
  0x5c   : > { %859 = vmatprep.subr.bf16.mxu0 %v2069_v29  ;;  %900 = vmatprep.subr.bf16.mxu1 %v2072_v30  ;;  %v2568_v29 = vld [vmem:[#allocation7_spill] sm:$0xff]  ;;  %v2569_v30 = vld [vmem:[#allocation8_spill] sm:$0xff] }
  0x5d   : > { %v852_v19 = vpack.c.bf16 %v851_v15, %v851_v15 }
  0x5f   : > { %860 = vmatpush1.bf16.msra.mxu0 %v2087_v36  ;;  %901 = vmatpush1.bf16.msra.mxu1 %v2091_v39  ;;  %v2570_v36 = vld [vmem:[#allocation9_spill] sm:$0xff]  ;;  %v2571_v39 = vld [vmem:[#allocation10_spill] sm:$0xff] }
  0x60   : > { %861 = vmatprep.subr.bf16.mxu0 %v2093_v40  ;;  %902 = vmatprep.subr.bf16.mxu1 %v2099_v42  ;;  %v2572_v40 = vld [vmem:[#allocation11_spill] sm:$0xff] }
  0x63   : > { %862 = vmatpush1.bf16.msra.mxu0 %v2114_v47  ;;  %903 = vmatpush1.bf16.msra.mxu1 %v2118_v50 }
  0x64   : > { %863 = vmatprep.subr.bf16.mxu0 %v2120_v51  ;;  %904 = vmatprep.subr.bf16.mxu1 %v2126_v53 }
  0x67   : > { %864 = vmatpush1.bf16.msra.mxu0 %v2141_v58  ;;  %905 = vmatpush1.bf16.msra.mxu1 %v2145_v61 }
  0x68   : > { %865 = vmatprep.subr.bf16.mxu0 %v2147_v62  ;;  %906 = vmatprep.subr.bf16.mxu1 %v2150_v63 }
  0x6b   : > { %866 = vmatpush1.bf16.msra.mxu0 %v2165_v6  ;;  %907 = vmatpush1.bf16.msra.mxu1 %v2169_v13 }
  0x6c   : > { %867 = vmatprep.subr.bf16.mxu0 %v2171_v14  ;;  %908 = vmatprep.subr.bf16.mxu1 %v2174_v16 }
  0x6f   : > { %868 = vmatpush1.bf16.msra.mxu0 %v2189_v25  ;;  %909 = vmatpush1.bf16.msra.mxu1 %v2197_v32 }
  0x70   : > { %935 = vmatprep.subr.bf16.mxu0 %v2199_v33  ;;  %976 = vmatprep.subr.bf16.mxu1 %v2202_v34 }
  0x72   : > { %886 = vmatmul.mubr.bf16.vlgmr.msra.gmra.mrb[8].mxu0 %v852_v19  ;;  %927 = vmatmul.mubr.bf16.vlgmr.msra.gmra.mrb[8].mxu1 %v852_v19 }
  0x73   : > { %936 = vmatpush1.bf16.msra.mxu0 %v2221_v44  ;;  %977 = vmatpush1.bf16.msra.mxu1 %v2225_v45 }
  0x74   : > { %937 = vmatprep.subr.bf16.mxu0 %v2227_v46  ;;  %978 = vmatprep.subr.bf16.mxu1 %v2230_v48 }
  0x75   : > { %967 = vmatprep.mubr.bf16.mxu0 %v2562_v23  ;;  %1008 = vmatprep.mubr.bf16.mxu1 %v2562_v23 }
  0x77   : > { %938 = vmatpush1.bf16.msra.mxu0 %v2247_v56  ;;  %979 = vmatpush1.bf16.msra.mxu1 %v2251_v57 }
  0x78   : > { %939 = vmatprep.subr.bf16.mxu0 %v2253_v59  ;;  %980 = vmatprep.subr.bf16.mxu1 %v2256_v60 }
  0x7b   : > { %940 = vmatpush1.bf16.msra.mxu0 %v2273_v7  ;;  %981 = vmatpush1.bf16.msra.mxu1 %v2277_v12 }
  0x7c   : > { %941 = vmatprep.subr.bf16.mxu0 %v2563_v20  ;;  %982 = vmatprep.subr.bf16.mxu1 %v2564_v21 }
  0x7f   : > { %942 = vmatpush1.bf16.msra.mxu0 %v2565_v22  ;;  %983 = vmatpush1.bf16.msra.mxu1 %v2566_v27 }
  0x80   : > { %943 = vmatprep.subr.bf16.mxu0 %v2567_v28  ;;  %984 = vmatprep.subr.bf16.mxu1 %v2568_v29 }
  0x83   : > { %944 = vmatpush1.bf16.msra.mxu0 %v2569_v30  ;;  %985 = vmatpush1.bf16.msra.mxu1 %v2570_v36 }
  0x84   : > { %945 = vmatprep.subr.bf16.mxu0 %v2571_v39  ;;  %986 = vmatprep.subr.bf16.mxu1 %v2572_v40 }
  0x87   : > { %946 = vmatpush1.bf16.msra.mxu0 %v2345_v37  ;;  %987 = vmatpush1.bf16.msra.mxu1 %v2349_v52 }
  0x88   : > { %947 = vmatprep.subr.bf16.mxu0 %v2351_v49  ;;  %988 = vmatprep.subr.bf16.mxu1 %v2354_v43 }
  0x8b   : > { %948 = vmatpush1.bf16.msra.mxu0 %v2369_v1  ;;  %989 = vmatpush1.bf16.msra.mxu1 %v2373_v18 }
  0x8c   : > { %949 = vmatprep.subr.bf16.mxu0 %v2375_v8  ;;  %990 = vmatprep.subr.bf16.mxu1 %v2378_v4 }
  0x8f   : > { %950 = vmatpush1.bf16.msra.mxu0 %v2381_v2  ;;  %991 = vmatpush1.bf16.msra.mxu1 %v2385_v17 }
  0x92   : > { %968 = vmatmul.mubr.bf16.vlgmr.msra.gmra.mrb[12].mxu0 %v852_v19  ;;  %1009 = vmatmul.mubr.bf16.vlgmr.msra.gmra.mrb[12].mxu1 %v852_v19 }
 0x105   : > { %v707_v42 = vpop.f32.mrb[0].mxu0  ;;  %v750_v50 = vpop.f32.mrb[0].mxu1 }
 0x106   : > { %v1017_v47 = vmul.f32 %v707_v42, %v707_v42  ;;  %v709_v51 = vpop.f32.mrb[1].mxu0  ;;  %v1019_v53 = vmul.f32 %v750_v50, %v750_v50  ;;  %v752_v58 = vpop.f32.mrb[1].mxu1 }
 0x107   : > { %v711_v61 = vpop.f32.mrb[2].mxu0  ;;  %v1018_v62 = vmul.f32 %v709_v51, %v709_v51  ;;  %v754_v8 = vpop.f32.mrb[2].mxu1  ;;  %v1020_v21 = vmul.f32 %v752_v58, %v752_v58 }
 0x108   : > { %v1025_v63 = vmul.f32 %v711_v61, %v711_v61  ;;  %v1089_v6 = vmax.f32 %v707_v42, %v711_v61  ;;  %v1145_v13 = vmin.f32 %v707_v42, %v711_v61  ;;  %v713_v14 = vpop.f32.mrb[3].mxu0  ;;  %v1027_v16 = vmul.f32 %v754_v8, %v754_v8  ;;  %v756_v32 = vpop.f32.mrb[3].mxu1 }
 0x109   : > { %v1103_v25 = vmax.f32 %v750_v50, %v754_v8  ;;  %v1159_v26 = vmin.f32 %v750_v50, %v754_v8  ;;  %v1026_v31 = vmul.f32 %v713_v14, %v713_v14  ;;  %v1096_v38 = vmax.f32 %v709_v51, %v713_v14 }
 0x10a   : > { %v1033_v33 = vadd.f32 %v1025_v63, %v1017_v47  ;;  %v1090_v34 = vrot.slane %v1089_v6, 4  ;;  %v1146_v44 = vrot.slane %v1145_v13, 4  ;;  %v1047_v45 = vadd.f32 %v1027_v16, %v1019_v53 }
 0x10b   : > { %v1040_v46 = vadd.f32 %v1026_v31, %v1018_v62  ;;  %v1104_v57 = vrot.slane %v1103_v25, 4  ;;  %v1097_v59 = vrot.slane %v1096_v38, 4  ;;  %v1160_v7 = vrot.slane %v1159_v26, 4 }
 0x10c   : > { %v1034_v48 = vrot.slane %v1033_v33, 4  ;;  %v1091_v56 = vmax.f32 %v1089_v6, %v1090_v34  ;;  %v1048_v60 = vrot.slane %v1047_v45, 4  ;;  %v1147_v52 = vmin.f32 %v1145_v13, %v1146_v44 }
 0x10d   : > { %v1041_v12 = vrot.slane %v1040_v46, 4  ;;  %v1098_v49 = vmax.f32 %v1096_v38, %v1097_v59  ;;  %v1105_v35 = vmax.f32 %v1103_v25, %v1104_v57  ;;  %v1161_v55 = vmin.f32 %v1159_v26, %v1160_v7 }
 0x10e   : > { %v1035_v18 = vadd.f32 %v1034_v48, %v1033_v33  ;;  %v1092_v43 = vrot.slane %v1091_v56, 2  ;;  %v1049_v54 = vadd.f32 %v1048_v60, %v1047_v45  ;;  %v1148_v23 = vrot.slane %v1147_v52, 2 }
 0x10f   : > { %v1042_v2 = vadd.f32 %v1041_v12, %v1040_v46  ;;  %v1099_v37 = vrot.slane %v1098_v49, 2  ;;  %v1106_v19 = vrot.slane %v1105_v35, 2  ;;  %v1162_v27 = vrot.slane %v1161_v55, 2 }
 0x110   : > { %v1036_v4 = vrot.slane %v1035_v18, 2  ;;  %v1093_v24 = vmax.f32 %v1091_v56, %v1092_v43  ;;  %v1050_v22 = vrot.slane %v1049_v54, 2  ;;  %v1152_v36 = vmin.f32 %v709_v51, %v713_v14 }
 0x111   : > { %v1043_v0 = vrot.slane %v1042_v2, 2  ;;  %v1100_v41 = vmax.f32 %v1098_v49, %v1099_v37  ;;  %v1028_v39 = vmul.f32 %v756_v32, %v756_v32  ;;  %v1149_v40 = vmin.f32 %v1147_v52, %v1148_v23 }
 0x112   : > { %v1037_v1 = vadd.f32 %v1036_v4, %v1035_v18  ;;  %v1094_v17 = vrot.slane %v1093_v24, 1  ;;  %v1110_v47 = vmax.f32 %v752_v58, %v756_v32  ;;  %v1166_v50 = vmin.f32 %v752_v58, %v756_v32 }
 0x113   : > { %v1044_v3 = vadd.f32 %v1043_v0, %v1042_v2  ;;  %v1101_v20 = vrot.slane %v1100_v41, 1  ;;  %v1107_v53 = vmax.f32 %v1105_v35, %v1106_v19  ;;  %v1153_v61 = vrot.slane %v1152_v36, 4 }
 0x114   : > { %v1038_v11 = vrot.slane %v1037_v1, 1  ;;  %v1095_v15 = vmax.f32 %v1093_v24, %v1094_v17  ;;  %v1054_v63 = vadd.f32 %v1028_v39, %v1020_v21  ;;  %v1163_v6 = vmin.f32 %v1161_v55, %v1162_v27 }
 0x115   : > { %v1045_v28 = vrot.slane %v1044_v3, 1  ;;  %v1102_v30 = vmax.f32 %v1100_v41, %v1101_v20  ;;  %v1111_v8 = vrot.slane %v1110_v47, 4  ;;  %v1167_v16 = vrot.slane %v1166_v50, 4 }
 0x116   : > { %v1039_v29 = vadd.f32 %v1038_v11, %v1037_v1  ;;  %v1051_v25 = vadd.f32 %v1050_v22, %v1049_v54  ;;  %v1154_v26 = vmin.f32 %v1152_v36, %v1153_v61  ;;  %v1055_v31 = vrot.slane %v1054_v63, 4 }
 0x117   : > { %v1046_v42 = vadd.f32 %v1045_v28, %v1044_v3  ;;  %v1332_v62 = vcombine.low %v1095_v15, %v1102_v30  ;;  %v1219_v33 = vunpack.c.0.s8 %v1218_v9  ;;  %v1112_v34 = vmax.f32 %v1110_v47, %v1111_v8 }
 0x118   : > { %v1168_v38 = vmin.f32 %v1166_v50, %v1167_v16  ;;  %v1150_v51 = vrot.slane %v1149_v40, 1  ;;  %v1155_v14 = vrot.slane %v1154_v26, 2  ;;  %v1221_v44 = vshrl.u32 %v1220_v10, 7 }
 0x119   : > { %v1272_v13 = vcombine.low %v1039_v29, %v1046_v42  ;;  %v1056_v45 = vadd.f32 %v1055_v31, %v1054_v63  ;;  %v1108_v46 = vrot.slane %v1107_v53, 1  ;;  %v1164_v58 = vrot.slane %v1163_v6, 1 }
 0x11a   : > { %v1113_v32 = vrot.slane %v1112_v34, 2  ;;  %v1169_v48 = vrot.slane %v1168_v38, 2  ;;  %v1052_v56 = vrot.slane %v1051_v25, 1  ;;  %v1156_v57 = vmin.f32 %v1154_v26, %v1155_v14 }
 0x11b   : > { %v1057_v59 = vrot.slane %v1056_v45, 2  ;;  %v1151_v12 = vmin.f32 %v1149_v40, %v1150_v51  ;;  %v2462_v43 = vsub.s32 %v1219_v33, %v1221_v44  ;;  %v1109_v52 = vmax.f32 %v1107_v53, %v1108_v46 }
 0x11c   : > { %v1114_v60 = vmax.f32 %v1112_v34, %v1113_v32  ;;  %v1170_v7 = vmin.f32 %v1168_v38, %v1169_v48  ;;  %v1157_v18 = vrot.slane %v1156_v57, 1  ;;  %v1165_v2 = vmin.f32 %v1163_v6, %v1164_v58 }
 0x11d   : > { %v1058_v49 = vadd.f32 %v1057_v59, %v1056_v45  ;;  %v1053_v35 = vadd.f32 %v1052_v56, %v1051_v25  ;;  %v2465_v41 = vrot.slane %v1332_v62, %v2462_v43  ;;  %v2468_v9 = vrot.slane %v1272_v13, %v2462_v43 }
 0x11e   : > { %v1115_v4 = vrot.slane %v1114_v60, 1  ;;  %v1171_v24 = vrot.slane %v1170_v7, 1  ;;  %v1158_v37 = vmin.f32 %v1156_v57, %v1157_v18 }
 0x11f   : > { %v1059_v54 = vrot.slane %v1058_v49, 1 }
 0x120   : > { %v1116_v55 = vmax.f32 %v1114_v60, %v1115_v4  ;;  %v1172_v0 = vmin.f32 %v1170_v7, %v1171_v24  ;;  %v1391_v1 = vcombine.low %v1151_v12, %v1158_v37 }
 0x121   : > { %v1060_v17 = vadd.f32 %v1059_v54, %v1058_v49 }
 0x122   : > { %v1333_v23 = vcombine.low %v1109_v52, %v1116_v55  ;;  %v1392_v3 = vcombine.low %v1165_v2, %v1172_v0  ;;  %v2471_v10 = vrot.slane %v1391_v1, %v2462_v43 }
 0x123   : > { %v1273_v11 = vcombine.low %v1053_v35, %v1060_v17 }
 0x124   : > { %v2474_v21 = vrot.slane %v1333_v23, %v2462_v43  ;;  %v2477_v22 = vrot.slane %v1392_v3, %v2462_v43 }
 0x125   : > { %v793_v5 = vpop.f32.mrb[4].mxu0  ;;  %v836_v19 = vpop.f32.mrb[4].mxu1  ;;  %v2480_v30 = vrot.slane %v1273_v11, %v2462_v43 }
 0x126   : > { %v1021_v15 = vmul.f32 %v793_v5, %v793_v5  ;;  %v795_v20 = vpop.f32.mrb[5].mxu0  ;;  %v1023_v27 = vmul.f32 %v836_v19, %v836_v19  ;;  %v838_v28 = vpop.f32.mrb[5].mxu1  ;;  %v1364_v47 = vcombine.low %v2465_v41, %v2474_v21  ;;  %v1423_v50 = vcombine.low %v2471_v10, %v2477_v22 }
 0x127   : > { %v797_v29 = vpop.f32.mrb[6].mxu0  ;;  %v840_v40 = vpop.f32.mrb[6].mxu1  ;;  %v1304_v63 = vcombine.low %v2468_v9, %v2480_v30  ;;  %v1022_v38 = vmul.f32 %v795_v20, %v795_v20  ;;  %v1024_v54 = vmul.f32 %v838_v28, %v838_v28 }
 0x128   : > { %v1029_v36 = vmul.f32 %v797_v29, %v797_v29  ;;  %v1117_v39 = vmax.f32 %v793_v5, %v797_v29  ;;  %v799_v42 = vpop.f32.mrb[7].mxu0  ;;  %v1173_v53 = vmin.f32 %v793_v5, %v797_v29  ;;  %v1031_v61 = vmul.f32 %v840_v40, %v840_v40  ;;  %v842_v62 = vpop.f32.mrb[7].mxu1 }
 0x129   : > { %v1131_v8 = vmax.f32 %v836_v19, %v840_v40  ;;  %v1187_v34 = vmin.f32 %v836_v19, %v840_v40  ;;  %v1030_v14 = vmul.f32 %v799_v42, %v799_v42  ;;  %v1124_v44 = vmax.f32 %v795_v20, %v799_v42 }
 0x12a   : > { %v1061_v6 = vadd.f32 %v1029_v36, %v1021_v15  ;;  %v1118_v13 = vrot.slane %v1117_v39, 4  ;;  %v1174_v16 = vrot.slane %v1173_v53, 4  ;;  %v1075_v25 = vadd.f32 %v1031_v61, %v1023_v27 }
 0x12b   : > { %v1132_v33 = vrot.slane %v1131_v8, 4  ;;  %v1188_v32 = vrot.slane %v1187_v34, 4  ;;  %v1068_v48 = vadd.f32 %v1030_v14, %v1022_v38  ;;  %v1125_v56 = vrot.slane %v1124_v44, 4 }
 0x12c   : > { %v1062_v26 = vrot.slane %v1061_v6, 4  ;;  %v1119_v31 = vmax.f32 %v1117_v39, %v1118_v13  ;;  %v1175_v51 = vmin.f32 %v1173_v53, %v1174_v16  ;;  %v1076_v58 = vrot.slane %v1075_v25, 4 }
 0x12d   : > { %v1133_v60 = vmax.f32 %v1131_v8, %v1132_v33  ;;  %v1069_v7 = vrot.slane %v1068_v48, 4  ;;  %v1126_v12 = vmax.f32 %v1124_v44, %v1125_v56  ;;  %v1189_v2 = vmin.f32 %v1187_v34, %v1188_v32 }
 0x12e   : > { %v1063_v45 = vadd.f32 %v1062_v26, %v1061_v6  ;;  %v1120_v46 = vrot.slane %v1119_v31, 2  ;;  %v1176_v49 = vrot.slane %v1175_v51, 2  ;;  %v1077_v52 = vadd.f32 %v1076_v58, %v1075_v25 }
 0x12f   : > { %v1070_v24 = vadd.f32 %v1069_v7, %v1068_v48  ;;  %v1127_v35 = vrot.slane %v1126_v12, 2  ;;  %v1134_v37 = vrot.slane %v1133_v60, 2  ;;  %v1190_v3 = vrot.slane %v1189_v2, 2 }
 0x130   : > { %v1064_v57 = vrot.slane %v1063_v45, 2  ;;  %v1121_v59 = vmax.f32 %v1119_v31, %v1120_v46  ;;  %v1177_v17 = vmin.f32 %v1175_v51, %v1176_v49  ;;  %v1078_v23 = vrot.slane %v1077_v52, 2 }
 0x131   : > { %v1071_v0 = vrot.slane %v1070_v24, 2  ;;  %v1128_v1 = vmax.f32 %v1126_v12, %v1127_v35  ;;  %v1180_v5 = vmin.f32 %v795_v20, %v799_v42  ;;  %v1032_v27 = vmul.f32 %v842_v62, %v842_v62 }
 0x132   : > { %v1065_v18 = vadd.f32 %v1064_v57, %v1063_v45  ;;  %v1122_v4 = vrot.slane %v1121_v59, 1  ;;  %v1135_v29 = vmax.f32 %v1133_v60, %v1134_v37  ;;  %v1138_v39 = vmax.f32 %v838_v28, %v842_v62 }
 0x133   : > { %v1072_v15 = vadd.f32 %v1071_v0, %v1070_v24  ;;  %v1129_v19 = vrot.slane %v1128_v1, 1  ;;  %v1181_v36 = vrot.slane %v1180_v5, 4  ;;  %v1194_v40 = vmin.f32 %v838_v28, %v842_v62 }
 0x134   : > { %v1066_v55 = vrot.slane %v1065_v18, 1  ;;  %v1123_v11 = vmax.f32 %v1121_v59, %v1122_v4  ;;  %v1082_v13 = vadd.f32 %v1032_v27, %v1024_v54  ;;  %v1191_v8 = vmin.f32 %v1189_v2, %v1190_v3 }
 0x135   : > { %v1073_v61 = vrot.slane %v1072_v15, 1  ;;  %v1130_v6 = vmax.f32 %v1128_v1, %v1129_v19  ;;  %v1182_v16 = vmin.f32 %v1180_v5, %v1181_v36  ;;  %v1139_v25 = vrot.slane %v1138_v39, 4 }
 0x136   : > { %v1067_v53 = vadd.f32 %v1066_v55, %v1065_v18  ;;  %v1195_v26 = vrot.slane %v1194_v40, 4  ;;  %v1079_v31 = vadd.f32 %v1078_v23, %v1077_v52  ;;  %v1083_v20 = vrot.slane %v1082_v13, 4 }
 0x137   : > { %v1074_v33 = vadd.f32 %v1073_v61, %v1072_v15  ;;  %v1334_v34 = vcombine.low %v1123_v11, %v1130_v6  ;;  %v1178_v42 = vrot.slane %v1177_v17, 1  ;;  %v1183_v38 = vrot.slane %v1182_v16, 2 }
 0x138   : > { %v1140_v51 = vmax.f32 %v1138_v39, %v1139_v25  ;;  %v1196_v14 = vmin.f32 %v1194_v40, %v1195_v26  ;;  %v1136_v44 = vrot.slane %v1135_v29, 1  ;;  %v1084_v46 = vadd.f32 %v1083_v20, %v1082_v13 }
 0x139   : > { %v1274_v45 = vcombine.low %v1067_v53, %v1074_v33  ;;  %v1192_v28 = vrot.slane %v1191_v8, 1  ;;  %v1184_v62 = vmin.f32 %v1182_v16, %v1183_v38  ;;  %v1080_v48 = vrot.slane %v1079_v31, 1 }
 0x13a   : > { %v1141_v58 = vrot.slane %v1140_v51, 2  ;;  %v1197_v32 = vrot.slane %v1196_v14, 2  ;;  %v1085_v56 = vrot.slane %v1084_v46, 2  ;;  %v1179_v57 = vmin.f32 %v1177_v17, %v1178_v42 }
 0x13b   : > { %v1185_v59 = vrot.slane %v1184_v62, 1  ;;  %v1137_v12 = vmax.f32 %v1135_v29, %v1136_v44  ;;  %v1193_v49 = vmin.f32 %v1191_v8, %v1192_v28  ;;  %v1081_v24 = vadd.f32 %v1080_v48, %v1079_v31 }
 0x13c   : > { %v1142_v60 = vmax.f32 %v1140_v51, %v1141_v58  ;;  %v1198_v7 = vmin.f32 %v1196_v14, %v1197_v32  ;;  %v1086_v18 = vadd.f32 %v1085_v56, %v1084_v46  ;;  %v1356_v17 = vrot.slane %v1334_v34, %v2462_v43 }
 0x13d   : > { %v1186_v52 = vmin.f32 %v1184_v62, %v1185_v59  ;;  %v1296_v19 = vrot.slane %v1274_v45, %v2462_v43  ;;  %v1372_v34 = vrot.slane %v1364_v47, %v2462_v43  ;;  %v1431_v42 = vrot.slane %v1423_v50, %v2462_v43 }
 0x13e   : > { %v1143_v2 = vrot.slane %v1142_v60, 1  ;;  %v1199_v4 = vrot.slane %v1198_v7, 1  ;;  %v1087_v35 = vrot.slane %v1086_v18, 1  ;;  %v1312_v41 = vrot.slane %v1304_v63, %v2462_v43 }
 0x13f   : > { %v1393_v37 = vcombine.low %v1179_v57, %v1186_v52 }
 0x140   : > { %v1144_v54 = vmax.f32 %v1142_v60, %v1143_v2  ;;  %v1200_v55 = vmin.f32 %v1198_v7, %v1199_v4  ;;  %v1088_v0 = vadd.f32 %v1087_v35, %v1086_v18 }
 0x141   : > { %v1415_v23 = vrot.slane %v1393_v37, %v2462_v43 }
 0x142   : > { %v1335_v3 = vcombine.low %v1137_v12, %v1144_v54  ;;  %v1394_v5 = vcombine.low %v1193_v49, %v1200_v55  ;;  %v1275_v27 = vcombine.low %v1081_v24, %v1088_v0 }
 0x144   : > { %v1363_v40 = vrot.slane %v1335_v3, %v2462_v43  ;;  %v1422_v53 = vrot.slane %v1394_v5, %v2462_v43  ;;  %v1303_v8 = vrot.slane %v1275_v27, %v2462_v43 }
 0x145   : > { %v887_v1 = vpop.f32.mrb[8].mxu0  ;;  %v928_v11 = vpop.f32.mrb[8].mxu1 }
 0x146   : > { %v889_v15 = vpop.f32.mrb[9].mxu0  ;;  %v930_v36 = vpop.f32.mrb[9].mxu1  ;;  %v1365_v26 = vcombine.low %v1356_v17, %v1363_v40  ;;  %v1424_v31 = vcombine.low %v1415_v23, %v1422_v53  ;;  %v1305_v20 = vcombine.low %v1296_v19, %v1303_v8 }
 0x147   : > { %v1213_v29 = vcombine.low %v887_v1, %v889_v15  ;;  %v891_v39 = vpop.f32.mrb[10].mxu0  ;;  %v1214_v61 = vcombine.low %v928_v11, %v930_v36  ;;  %v932_v6 = vpop.f32.mrb[10].mxu1 }
 0x148   : > { %v892_v13 = vpop.f32.mrb[11].mxu0  ;;  %v933_v25 = vpop.f32.mrb[11].mxu1  ;;  %v1379_v38 = vrot.slane %v1365_v26, %v2462_v43  ;;  %v1438_v51 = vrot.slane %v1424_v31, %v2462_v43  ;;  %v1319_v21 = vrot.slane %v1305_v20, %v2462_v43 }
 0x149   : > { %v1223_v16 = vrot.slane %v1213_v29, %v2462_v43  ;;  %v1230_v33 = vrot.slane %v1214_v61, %v2462_v43 }
 0x14a   : > { %v1380_v10 = vcombine.low %v1372_v34, %v1379_v38  ;;  %v1439_v22 = vcombine.low %v1431_v42, %v1438_v51  ;;  %v1320_v47 = vcombine.low %v1312_v41, %v1319_v21 }
 0x14b   : > { %v1245_v14 = vcombine.low %v1223_v16, %v1230_v33 }
 0x14c   : > { %1382 = vst [vmem:[%s253_s18] ss:$2 sm:$0xff] %v1380_v10  ;;  %1867 = vst [vmem:[%s253_s18 + $0x1] ss:$2 sm:$0xff] %v1439_v22 }
 0x14d   : > { %1866 = vst [vmem:[%s258_s13 + $0x1] ss:$2 sm:$0xff] %v1320_v47  ;;  %v1253_v57 = vrot.slane %v1245_v14, %v2462_v43 }
 0x165   : > { %v969_v50 = vpop.f32.mrb[12].mxu0  ;;  %v1010_v44 = vpop.f32.mrb[12].mxu1 }
 0x166   : > { %v971_v45 = vpop.f32.mrb[13].mxu0  ;;  %v1012_v28 = vpop.f32.mrb[13].mxu1 }
 0x167   : > { %v1215_v46 = vcombine.low %v969_v50, %v971_v45  ;;  %v973_v62 = vpop.f32.mrb[14].mxu0  ;;  %v1216_v9 = vcombine.low %v1010_v44, %v1012_v28  ;;  %v1014_v30 = vpop.f32.mrb[14].mxu1 }
 0x168   : > { %v974_v63 = vpop.f32.mrb[15].mxu0  ;;  %v1015_v32 = vpop.f32.mrb[15].mxu1 }
 0x169   : > { %v1237_v58 = vrot.slane %v1215_v46, %v2462_v43  ;;  %v1244_v48 = vrot.slane %v1216_v9, %v2462_v43 }
 0x16b   : > { %v1246_v56 = vcombine.low %v1237_v58, %v1244_v48 }
 0x16d   : > { %v1260_v59 = vrot.slane %v1246_v56, %v2462_v43 }
 0x16f   : > { %v1261_v60 = vcombine.low %v1253_v57, %v1260_v59 }
 0x171   : > { %1263 = vst [vmem:[%s258_s13] ss:$2 sm:$0xff] %v1261_v60 }
 0x172 PF: > { %s16_s20 = sadd.s32 1, %s1928_s20   ;;  %s2573_s18 = smov %s1924_s19 }
 0x173   : > { %p13_p6 = scmp.ge.s32.totalorder %s16_s20, 4   ;;  %s2574_s19 = smov %s2576_s21 }
 0x175   :  { %15 = sbr.rel (!%p13_p6) target bundleno = 2 (0x2), region = 90 }

// kernel: _lambda_.5
= control target key start
LH: loop header
LB: loop body
LE: loop exit
PB: predicated region body
PF: predicated region fallthrough
CT: control target
= control target key end

     0   :  { %v49_v34 = vlaneseq  ;;  %vm157_vm0 = vcmask 1041409   ;;  %s5468_s3 = inlined_call_operand.vmem [shape: bf16[1024,512], index: 3, kind: input, shape index: {}]   ;;  %s5469_s0 = inlined_call_operand.vmem [shape: f32[2,2,1024], index: 0, kind: input, shape index: {}]   ;;  %s5470_s1 = inlined_call_operand.vmem [shape: f32[1,1024], index: 1, kind: input, shape index: {}]   ;;  %s5471_s2 = inlined_call_operand.vmem [shape: f32[1,1024], index: 2, kind: input, shape index: {}]   ;;  %s5472_s6 = inlined_call_operand.vmem [shape: bf16[512,256], index: 6, kind: input, shape index: {}]   ;;  %s5473_s4 = inlined_call_operand.vmem [shape: f32[1,512], index: 4, kind: input, shape index: {}]   ;;  %s5474_s5 = inlined_call_operand.vmem [shape: f32[1,512], index: 5, kind: input, shape index: {}]   ;;  %s5475_s9 = inlined_call_operand.vmem [shape: bf16[256,9], index: 9, kind: input, shape index: {}]   ;;  %s5476_s7 = inlined_call_operand.vmem [shape: f32[1,256], index: 7, kind: input, shape index: {}]   ;;  %s5477_s8 = inlined_call_operand.vmem [shape: f32[1,256], index: 8, kind: input, shape index: {}]   ;;  %s5478_s10 = inlined_call_operand.vmem [shape: f32[1,9], index: 10, kind: input, shape index: {}]   ;;  %s5479_s11 = inlined_call_operand.vmem [shape: f32[1,9], index: 11, kind: input, shape index: {}]   ;;  %s5480_s12 = inlined_call_operand.vmem [shape: f32[2,9], index: 12, kind: output, shape index: {}]  }
   0x1   :  { %v3549_v0 = vld [vmem:[%s5468_s3 + $0x4] ss:$16 sps:$4 sm:$0xff]   ;;  %v3553_v2 = vld [vmem:[%s5468_s3] ss:$16 sps:$4 sm:$0xff]  }
   0x2   :  { %v3551_v1 = vld [vmem:[%s5468_s3 + $0x204] ss:$16 sps:$4 sm:$0xff]   ;;  %1929 = vmatprep.subr.bf16.mxu1 %v3549_v0  ;;  %v3554_v3 = vld [vmem:[%s5468_s3 + $0x200] ss:$16 sps:$4 sm:$0xff]   ;;  %v4237_v39 = vshrl.u32 %v49_v34, 7 }
   0x3   :  { %1970 = vmatprep.subr.bf16.mxu0 %v3551_v1  ;;  %v3555_v4 = vld [vmem:[%s5468_s3 + $0x24] ss:$16 sps:$4 sm:$0xff]   ;;  %1930 = vmatpush1.bf16.msra.mxu1 %v3553_v2  ;;  %v3559_v6 = vld [vmem:[%s5468_s3 + $0x20] ss:$16 sps:$4 sm:$0xff]  }
   0x4   :  { %1971 = vmatpush1.bf16.msra.mxu0 %v3554_v3  ;;  %v3557_v5 = vld [vmem:[%s5468_s3 + $0x224] ss:$16 sps:$4 sm:$0xff]   ;;  %1931 = vmatprep.subr.bf16.mxu1 %v3555_v4  ;;  %v3560_v7 = vld [vmem:[%s5468_s3 + $0x220] ss:$16 sps:$4 sm:$0xff]   ;;  %v4252_v44 = vsub.s32 1, %v4237_v39  ;;  %v4255_v45 = vsub.s32 2, %v4237_v39 }
   0x5   :  { %1972 = vmatprep.subr.bf16.mxu0 %v3557_v5  ;;  %v3561_v8 = vld [vmem:[%s5468_s3 + $0x44] ss:$16 sps:$4 sm:$0xff]   ;;  %v3565_v10 = vld [vmem:[%s5468_s3 + $0x40] ss:$16 sps:$4 sm:$0xff]   ;;  %v4264_v48 = vsub.s32 3, %v4237_v39  ;;  %v4267_v49 = vsub.s32 0, %v4237_v39 }
   0x6   :  { %v3563_v9 = vld [vmem:[%s5468_s3 + $0x244] ss:$16 sps:$4 sm:$0xff]   ;;  %v3566_v11 = vld [vmem:[%s5468_s3 + $0x240] ss:$16 sps:$4 sm:$0xff]   ;;  %v4276_v52 = vsub.s32 6, %v4237_v39  ;;  %v4290_v56 = vsub.s32 7, %v4237_v39 }
   0x7   :  { %1932 = vmatpush1.bf16.msra.mxu1 %v3559_v6  ;;  %v3567_v12 = vld [vmem:[%s5468_s3 + $0x64] ss:$16 sps:$4 sm:$0xff]   ;;  %v3571_v14 = vld [vmem:[%s5468_s3 + $0x60] ss:$16 sps:$4 sm:$0xff]   ;;  %v4057_v5 = vmov 0  }
   0x8   :  { %1973 = vmatpush1.bf16.msra.mxu0 %v3560_v7  ;;  %1933 = vmatprep.subr.bf16.mxu1 %v3561_v8  ;;  %v3569_v13 = vld [vmem:[%s5468_s3 + $0x264] ss:$16 sps:$4 sm:$0xff]   ;;  %v3572_v15 = vld [vmem:[%s5468_s3 + $0x260] ss:$16 sps:$4 sm:$0xff]  }
   0x9   :  { %1974 = vmatprep.subr.bf16.mxu0 %v3563_v9  ;;  %v3573_v16 = vld [vmem:[%s5468_s3 + $0x84] ss:$16 sps:$4 sm:$0xff]   ;;  %v3577_v18 = vld [vmem:[%s5468_s3 + $0x80] ss:$16 sps:$4 sm:$0xff]  }
   0xa   :  { %v3575_v17 = vld [vmem:[%s5468_s3 + $0x284] ss:$16 sps:$4 sm:$0xff]   ;;  %v3578_v19 = vld [vmem:[%s5468_s3 + $0x280] ss:$16 sps:$4 sm:$0xff]  }
   0xb   :  { %1934 = vmatpush1.bf16.msra.mxu1 %v3565_v10  ;;  %v3579_v20 = vld [vmem:[%s5468_s3 + $0xa4] ss:$16 sps:$4 sm:$0xff]   ;;  %v3583_v22 = vld [vmem:[%s5468_s3 + $0xa0] ss:$16 sps:$4 sm:$0xff]  }
   0xc   :  { %1975 = vmatpush1.bf16.msra.mxu0 %v3566_v11  ;;  %1935 = vmatprep.subr.bf16.mxu1 %v3567_v12  ;;  %v3581_v21 = vld [vmem:[%s5468_s3 + $0x2a4] ss:$16 sps:$4 sm:$0xff]   ;;  %v3584_v23 = vld [vmem:[%s5468_s3 + $0x2a0] ss:$16 sps:$4 sm:$0xff]  }
   0xd   :  { %1976 = vmatprep.subr.bf16.mxu0 %v3569_v13  ;;  %v3585_v24 = vld [vmem:[%s5468_s3 + $0xc4] ss:$16 sps:$4 sm:$0xff]   ;;  %v3589_v26 = vld [vmem:[%s5468_s3 + $0xc0] ss:$16 sps:$4 sm:$0xff]  }
   0xe   :  { %v3587_v25 = vld [vmem:[%s5468_s3 + $0x2c4] ss:$16 sps:$4 sm:$0xff]   ;;  %v3590_v27 = vld [vmem:[%s5468_s3 + $0x2c0] ss:$16 sps:$4 sm:$0xff]  }
   0xf   :  { %1936 = vmatpush1.bf16.msra.mxu1 %v3571_v14  ;;  %v3591_v28 = vld [vmem:[%s5468_s3 + $0xe4] ss:$16 sps:$4 sm:$0xff]   ;;  %v3595_v30 = vld [vmem:[%s5468_s3 + $0xe0] ss:$16 sps:$4 sm:$0xff]  }
  0x10   :  { %1977 = vmatpush1.bf16.msra.mxu0 %v3572_v15  ;;  %1937 = vmatprep.subr.bf16.mxu1 %v3573_v16  ;;  %v3593_v29 = vld [vmem:[%s5468_s3 + $0x2e4] ss:$16 sps:$4 sm:$0xff]   ;;  %v3596_v31 = vld [vmem:[%s5468_s3 + $0x2e0] ss:$16 sps:$4 sm:$0xff]  }
  0x11   :  { %1978 = vmatprep.subr.bf16.mxu0 %v3575_v17  ;;  %v3597_v32 = vld [vmem:[%s5468_s3 + $0x104] ss:$16 sps:$4 sm:$0xff]   ;;  %v3601_v35 = vld [vmem:[%s5468_s3 + $0x100] ss:$16 sps:$4 sm:$0xff]  }
  0x12   :  { %v3599_v33 = vld [vmem:[%s5468_s3 + $0x304] ss:$16 sps:$4 sm:$0xff]   ;;  %v3602_v36 = vld [vmem:[%s5468_s3 + $0x300] ss:$16 sps:$4 sm:$0xff]  }
  0x13   :  { %1938 = vmatpush1.bf16.msra.mxu1 %v3577_v18  ;;  %v3603_v37 = vld [vmem:[%s5468_s3 + $0x124] ss:$16 sps:$4 sm:$0xff]   ;;  %v3607_v40 = vld [vmem:[%s5468_s3 + $0x120] ss:$16 sps:$4 sm:$0xff]  }
  0x14   :  { %1979 = vmatpush1.bf16.msra.mxu0 %v3578_v19  ;;  %1939 = vmatprep.subr.bf16.mxu1 %v3579_v20  ;;  %v3605_v38 = vld [vmem:[%s5468_s3 + $0x324] ss:$16 sps:$4 sm:$0xff]   ;;  %v3608_v41 = vld [vmem:[%s5468_s3 + $0x320] ss:$16 sps:$4 sm:$0xff]  }
  0x15   :  { %1980 = vmatprep.subr.bf16.mxu0 %v3581_v21  ;;  %v3609_v42 = vld [vmem:[%s5468_s3 + $0x144] ss:$16 sps:$4 sm:$0xff]   ;;  %v3613_v46 = vld [vmem:[%s5468_s3 + $0x140] ss:$16 sps:$4 sm:$0xff]  }
  0x16   :  { %v3611_v43 = vld [vmem:[%s5468_s3 + $0x344] ss:$16 sps:$4 sm:$0xff]   ;;  %v3614_v47 = vld [vmem:[%s5468_s3 + $0x340] ss:$16 sps:$4 sm:$0xff]  }
  0x17   :  { %1940 = vmatpush1.bf16.msra.mxu1 %v3583_v22  ;;  %v3615_v50 = vld [vmem:[%s5468_s3 + $0x164] ss:$16 sps:$4 sm:$0xff]   ;;  %v3619_v53 = vld [vmem:[%s5468_s3 + $0x160] ss:$16 sps:$4 sm:$0xff]  }
  0x18   :  { %1981 = vmatpush1.bf16.msra.mxu0 %v3584_v23  ;;  %1941 = vmatprep.subr.bf16.mxu1 %v3585_v24  ;;  %v3617_v51 = vld [vmem:[%s5468_s3 + $0x364] ss:$16 sps:$4 sm:$0xff]   ;;  %v3620_v54 = vld [vmem:[%s5468_s3 + $0x360] ss:$16 sps:$4 sm:$0xff]  }
  0x19   :  { %1982 = vmatprep.subr.bf16.mxu0 %v3587_v25  ;;  %v4287_v55 = vld [vmem:[%s5469_s0] sm:$0xff]  ;;  %v4295_v57 = vld [vmem:[%s5469_s0 + $0x10] sm:$0xff] }
  0x1a   :  { %v4300_v58 = vld [vmem:[%s5470_s1] sm:$0xff]  ;;  %v100_v59 = vrot.slane %v4287_v55, %v4255_v45  ;;  %v181_v60 = vrot.slane %v4287_v55, %v4264_v48  ;;  %v96_v62 = vrot.slane %v4287_v55, %v4267_v49  ;;  %v177_v63 = vrot.slane %v4287_v55, %v4252_v44 }
  0x1b   :  { %1942 = vmatpush1.bf16.msra.mxu1 %v3589_v26  ;;  %v4309_v61 = vld [vmem:[%s5471_s2] sm:$0xff]  ;;  %vm47_vm1 = vcmp.ge.f32.partialorder %v4300_v58, 0.0  ;;  %v132_v1 = vrot.slane %v4295_v57, %v4255_v45  ;;  %v213_v2 = vrot.slane %v4295_v57, %v4264_v48  ;;  %v270_v3 = vrot.slane %v4300_v58, %v4252_v44 }
  0x1c   :  { %1983 = vmatpush1.bf16.msra.mxu0 %v3590_v27  ;;  %1943 = vmatprep.subr.bf16.mxu1 %v3591_v28  ;;  %v3621_v0 = vld [vmem:[%s5468_s3 + $0x184] ss:$16 sps:$4 sm:$0xff]   ;;  %v4328_v6 = vsel %vm47_vm1, 1, %v4057_v5  ;;  %v320_v7 = vrot.slane %v4309_v61, %v4252_v44  ;;  %v128_v8 = vrot.slane %v4295_v57, %v4267_v49  ;;  %v209_v9 = vrot.slane %v4295_v57, %v4252_v44  ;;  %v3625_v14 = vld [vmem:[%s5468_s3 + $0x180] ss:$16 sps:$4 sm:$0xff]  }
  0x1d   :  { %1984 = vmatprep.subr.bf16.mxu0 %v3593_v29  ;;  %v3623_v4 = vld [vmem:[%s5468_s3 + $0x384] ss:$16 sps:$4 sm:$0xff]   ;;  %v56_v10 = vrot.slane %v4328_v6, %v4252_v44  ;;  %v159_v11 = vsel %vm157_vm0, %v132_v1, %v100_v59  ;;  %v239_v12 = vsel %vm157_vm0, %v213_v2, %v181_v60  ;;  %v52_v13 = vrot.slane %v4328_v6, %v4267_v49  ;;  %v3626_v15 = vld [vmem:[%s5468_s3 + $0x380] ss:$16 sps:$4 sm:$0xff]  }
  0x1e   :  { %v158_v16 = vsel %vm157_vm0, %v128_v8, %v96_v62  ;;  %v238_v17 = vsel %vm157_vm0, %v209_v9, %v177_v63  ;;  %v266_v18 = vrot.slane %v4300_v58, %v4267_v49  ;;  %v316_v19 = vrot.slane %v4309_v61, %v4267_v49  ;;  %v3627_v20 = vld [vmem:[%s5468_s3 + $0x1a4] ss:$16 sps:$4 sm:$0xff]   ;;  %v3638_v62 = vld [vmem:[%s5468_s3 + $0x3c0] ss:$16 sps:$4 sm:$0xff]  }
  0x1f   :  { %1944 = vmatpush1.bf16.msra.mxu1 %v3595_v30  ;;  %vm82_vm2 = vcmp.eq.s32.totalorder %v56_v10, 1  ;;  %vm81_vm3 = vcmp.eq.s32.totalorder %v52_v13, 1  ;;  %v64_v21 = vrot.slane %v4328_v6, %v4264_v48  ;;  %v108_v22 = vrot.slane %v4287_v55, %v4276_v52  ;;  %v3629_v23 = vld [vmem:[%s5468_s3 + $0x3a4] ss:$16 sps:$4 sm:$0xff]   ;;  %v3643_v10 = vld [vmem:[%s5468_s3 + $0x1e0] ss:$16 sps:$4 sm:$0xff]  }
  0x20   :  { %1985 = vmatpush1.bf16.msra.mxu0 %v3596_v31  ;;  %1945 = vmatprep.subr.bf16.mxu1 %v3597_v32  ;;  %v255_v24 = vsel %vm82_vm2, %v159_v11, %v239_v12  ;;  %v254_v25 = vsel %vm81_vm3, %v158_v16, %v238_v17  ;;  %v140_v26 = vrot.slane %v4295_v57, %v4276_v52  ;;  %v4367_v27 = vsub.s32 4, %v4237_v39  ;;  %v3631_v31 = vld [vmem:[%s5468_s3 + $0x1a0] ss:$16 sps:$4 sm:$0xff]   ;;  %v3639_v63 = vld [vmem:[%s5468_s3 + $0x1e4] ss:$16 sps:$4 sm:$0xff]  }
  0x21   :  { %1986 = vmatprep.subr.bf16.mxu0 %v3599_v33  ;;  %v304_v28 = vmul.f32 %v270_v3, %v255_v24  ;;  %v303_v29 = vmul.f32 %v266_v18, %v254_v25  ;;  %v189_v30 = vrot.slane %v4287_v55, %v4290_v56  ;;  %v3632_v32 = vld [vmem:[%s5468_s3 + $0x3a0] ss:$16 sps:$4 sm:$0xff]   ;;  %v221_v34 = vrot.slane %v4295_v57, %v4290_v56  ;;  %v3641_v2 = vld [vmem:[%s5468_s3 + $0x3e4] ss:$16 sps:$4 sm:$0xff]  }
  0x22   :  { %v161_v33 = vsel %vm157_vm0, %v140_v26, %v108_v22  ;;  %vm4388_vm4 = vcmp.eq.s32.totalorder %v64_v21, 1  ;;  %v274_v9 = vrot.slane %v4300_v58, %v4255_v45  ;;  %v324_v12 = vrot.slane %v4309_v61, %v4255_v45  ;;  %v3647_v18 = vld [vmem:[%s5468_s3 + $0x404] ss:$16 sps:$4 sm:$0xff]   ;;  %v3650_v22 = vld [vmem:[%s5468_s3 + $0xc] ss:$16 sps:$4 sm:$0xff]  }
  0x23   :  { %1946 = vmatpush1.bf16.msra.mxu1 %v3601_v35  ;;  %v278_v35 = vrot.slane %v4300_v58, %v4264_v48  ;;  %v68_v13 = vrot.slane %v4328_v6, %v4367_v27  ;;  %v282_v16 = vrot.slane %v4300_v58, %v4367_v27  ;;  %v294_v24 = vrot.slane %v4300_v58, %v4290_v56 }
  0x24   :  { %1987 = vmatpush1.bf16.msra.mxu0 %v3602_v36  ;;  %1947 = vmatprep.subr.bf16.mxu1 %v3603_v37  ;;  %v4383_v36 = vsub.s32 5, %v4237_v39  ;;  %v3633_v37 = vld [vmem:[%s5468_s3 + $0x1c4] ss:$16 sps:$4 sm:$0xff]   ;;  %v344_v25 = vrot.slane %v4309_v61, %v4290_v56  ;;  %vm2257_vm2 = vcmask 1041408  }
  0x25   :  { %1988 = vmatprep.subr.bf16.mxu0 %v3605_v38  ;;  %v354_v38 = vadd.f32 %v320_v7, %v304_v28  ;;  %v3635_v39 = vld [vmem:[%s5468_s3 + $0x3c4] ss:$16 sps:$4 sm:$0xff]   ;;  %vm4568_vm11 = vcmp.eq.s32.totalorder %v68_v13, 1 }
  0x26   :  { %v185_v60 = vrot.slane %v4287_v55, %v4383_v36  ;;  %v217_v5 = vrot.slane %v4295_v57, %v4383_v36 }
  0x27   :  { %1948 = vmatpush1.bf16.msra.mxu1 %v3607_v40  ;;  %v353_v40 = vadd.f32 %v316_v19, %v303_v29  ;;  %vm362_vm5 = vcmp.gt.f32.partialorder %v354_v38, 0.0  ;;  %v76_v29 = vrot.slane %v4328_v6, %v4276_v52 }
  0x28   :  { %1989 = vmatpush1.bf16.msra.mxu0 %v3608_v41  ;;  %1949 = vmatprep.subr.bf16.mxu1 %v3609_v42  ;;  %v60_v42 = vrot.slane %v4328_v6, %v4255_v45  ;;  %v240_v11 = vsel %vm157_vm0, %v217_v5, %v185_v60  ;;  %v3654_v41 = vld [vmem:[%s5468_s3 + $0x28] ss:$16 sps:$4 sm:$0xff]   ;;  %v3671_v60 = vld [vmem:[%s5468_s3 + $0x484] ss:$16 sps:$4 sm:$0xff]  }
  0x29   :  { %1990 = vmatprep.subr.bf16.mxu0 %v3611_v43  ;;  %v241_v43 = vsel %vm157_vm0, %v221_v34, %v189_v30  ;;  %vm361_vm6 = vcmp.gt.f32.partialorder %v353_v40, 0.0  ;;  %v290_v30 = vrot.slane %v4300_v58, %v4276_v52  ;;  %v3656_v34 = vld [vmem:[%s5468_s3 + $0x2c] ss:$16 sps:$4 sm:$0xff]   ;;  %v3683_v5 = vld [vmem:[%s5468_s3 + $0x4c4] ss:$16 sps:$4 sm:$0xff]   ;;  %vm4629_vm13 = vcmp.eq.s32.totalorder %v76_v29, 1 }
  0x2a   :  { %v257_v59 = vsel %vm4388_vm4, %v161_v33, %v241_v43  ;;  %vm4420_vm7 = vcmp.eq.s32.totalorder %v60_v42, 1  ;;  %v3662_v42 = vld [vmem:[%s5468_s3 + $0x4c] ss:$16 sps:$4 sm:$0xff]   ;;  %v3659_v43 = vld [vmem:[%s5468_s3 + $0x444] ss:$16 sps:$4 sm:$0xff]  }
  0x2b   :  { %1950 = vmatpush1.bf16.msra.mxu1 %v3613_v46  ;;  %v104_v46 = vrot.slane %v4287_v55, %v4367_v27  ;;  %v306_v1 = vmul.f32 %v278_v35, %v257_v59  ;;  %v3645_v35 = vld [vmem:[%s5468_s3 + $0x400] ss:$16 sps:$4 sm:$0xff]   ;;  %v3686_v55 = vld [vmem:[%s5468_s3 + $0xcc] ss:$16 sps:$4 sm:$0xff]  }
  0x2c   :  { %1991 = vmatpush1.bf16.msra.mxu0 %v3614_v47  ;;  %1951 = vmatprep.subr.bf16.mxu1 %v3615_v50  ;;  %v136_v47 = vrot.slane %v4295_v57, %v4367_v27  ;;  %v370_v50 = vmul.f32 0.2, %v354_v38  ;;  %v3644_v57 = vld [vmem:[%s5468_s3 + $0x3e0] ss:$16 sps:$4 sm:$0xff]  }
  0x2d   :  { %1992 = vmatprep.subr.bf16.mxu0 %v3617_v51  ;;  %v369_v51 = vmul.f32 0.2, %v353_v40  ;;  %v3663_v59 = vld [vmem:[%s5468_s3 + $0x460] ss:$16 sps:$4 sm:$0xff]  }
  0x2f   :  { %1952 = vmatpush1.bf16.msra.mxu1 %v3619_v53  ;;  %v328_v53 = vrot.slane %v4309_v61, %v4264_v48  ;;  %v377_v7 = vsel %vm361_vm6, %v353_v40, %v369_v51  ;;  %v3665_v51 = vld [vmem:[%s5468_s3 + $0x464] ss:$16 sps:$4 sm:$0xff]  }
  0x30   :  { %1993 = vmatpush1.bf16.msra.mxu0 %v3620_v54  ;;  %1953 = vmatprep.subr.bf16.mxu1 %v3621_v0  ;;  %v3637_v54 = vld [vmem:[%s5468_s3 + $0x1c0] ss:$16 sps:$4 sm:$0xff]   ;;  %v378_v0 = vsel %vm362_vm5, %v354_v38, %v370_v50  ;;  %v4445_v17 = vpack.c.bf16 %v377_v7, %v377_v7  ;;  %v3653_v38 = vld [vmem:[%s5468_s3 + $0x424] ss:$16 sps:$4 sm:$0xff]   ;;  %v3684_v7 = vld [vmem:[%s5468_s3 + $0xc8] ss:$16 sps:$4 sm:$0xff]  }
  0x31   :  { %1994 = vmatprep.subr.bf16.mxu0 %v3623_v4  ;;  %v386_v3 = vpack.c.bf16 %v378_v0, %v378_v0  ;;  %v160_v4 = vsel %vm157_vm0, %v136_v47, %v104_v46  ;;  %v356_v8 = vadd.f32 %v328_v53, %v306_v1  ;;  %v3660_v46 = vld [vmem:[%s5468_s3 + $0x48] ss:$16 sps:$4 sm:$0xff]   ;;  %v3668_v47 = vld [vmem:[%s5468_s3 + $0x6c] ss:$16 sps:$4 sm:$0xff]   ;;  %v3657_v50 = vld [vmem:[%s5468_s3 + $0x440] ss:$16 sps:$4 sm:$0xff]  }
  0x32   :  { %v3666_v53 = vld [vmem:[%s5468_s3 + $0x68] ss:$16 sps:$4 sm:$0xff]   ;;  %v3669_v0 = vld [vmem:[%s5468_s3 + $0x480] ss:$16 sps:$4 sm:$0xff]   ;;  %v3677_v1 = vld [vmem:[%s5468_s3 + $0x4a4] ss:$16 sps:$4 sm:$0xff]  }
  0x33   :  { %1954 = vmatpush1.bf16.msra.mxu1 %v3625_v14  ;;  %1961 = vmatprep.mubr.bf16.mxu1 %v386_v3  ;;  %vm364_vm8 = vcmp.gt.f32.partialorder %v356_v8, 0.0  ;;  %v372_v14 = vmul.f32 0.2, %v356_v8 }
  0x34   :  { %1995 = vmatpush1.bf16.msra.mxu0 %v3626_v15  ;;  %1955 = vmatprep.subr.bf16.mxu1 %v3627_v20  ;;  %v256_v15 = vsel %vm4420_vm7, %v160_v4, %v240_v11  ;;  %v332_v20 = vrot.slane %v4309_v61, %v4367_v27  ;;  %v3675_v4 = vld [vmem:[%s5468_s3 + $0x4a0] ss:$16 sps:$4 sm:$0xff]   ;;  %v286_v11 = vrot.slane %v4300_v58, %v4383_v36 }
  0x35   :  { %1996 = vmatprep.subr.bf16.mxu0 %v3629_v23  ;;  %v305_v19 = vmul.f32 %v274_v9, %v256_v15  ;;  %v380_v21 = vsel %vm364_vm8, %v356_v8, %v372_v14  ;;  %v80_v23 = vrot.slane %v4328_v6, %v4290_v56  ;;  %v43_v8 = vld [vmem:[%s5469_s0 + $0x8] sm:$0xff]  ;;  %v45_v9 = vld [vmem:[%s5469_s0 + $0x18] sm:$0xff] }
  0x36   :  { %v4461_v26 = vpack.c.bf16 %v380_v21, %v380_v21  ;;  %v3692_v14 = vld [vmem:[%s5468_s3 + $0xec] ss:$16 sps:$4 sm:$0xff]   ;;  %v116_v15 = vrot.slane %v43_v8, %v4255_v45  ;;  %v229_v21 = vrot.slane %v45_v9, %v4264_v48  ;;  %v144_v13 = vrot.slane %v45_v9, %v4267_v49 }
  0x37   :  { %1956 = vmatpush1.bf16.msra.mxu1 %v3631_v31  ;;  %v355_v28 = vadd.f32 %v324_v12, %v305_v19  ;;  %v3648_v31 = vld [vmem:[%s5468_s3 + $0x8] ss:$16 sps:$4 sm:$0xff]   ;;  %v336_v12 = vrot.slane %v4309_v61, %v4383_v36  ;;  %v197_v19 = vrot.slane %v43_v8, %v4264_v48  ;;  %vm4603_vm12 = vcmp.eq.s32.totalorder %v80_v23, 1 }
  0x38   :  { %1997 = vmatpush1.bf16.msra.mxu0 %v3632_v32  ;;  %1957 = vmatprep.subr.bf16.mxu1 %v3633_v37  ;;  %v340_v32 = vrot.slane %v4309_v61, %v4276_v52  ;;  %v3705_v61 = vld [vmem:[%s5468_s3 + $0x540] ss:$16 sps:$4 sm:$0xff]  }
  0x39   :  { %1998 = vmatprep.subr.bf16.mxu0 %v3635_v39  ;;  %2002 = vmatprep.mubr.bf16.mxu0 %v4461_v26  ;;  %vm363_vm9 = vcmp.gt.f32.partialorder %v355_v28, 0.0  ;;  %v371_v33 = vmul.f32 0.2, %v355_v28  ;;  %v3651_v39 = vld [vmem:[%s5468_s3 + $0x420] ss:$16 sps:$4 sm:$0xff]  }
  0x3b   :  { %1958 = vmatpush1.bf16.msra.mxu1 %v3637_v54  ;;  %v379_v37 = vsel %vm363_vm9, %v355_v28, %v371_v33  ;;  %v3674_v54 = vld [vmem:[%s5468_s3 + $0x8c] ss:$16 sps:$4 sm:$0xff]   ;;  %v193_v28 = vrot.slane %v43_v8, %v4252_v44  ;;  %v3681_v33 = vld [vmem:[%s5468_s3 + $0x4c0] ss:$16 sps:$4 sm:$0xff]   ;;  %vm3156_vm9 = vcmask 66560  }
  0x3c   :  { %1999 = vmatpush1.bf16.msra.mxu0 %v3638_v62  ;;  %1959 = vmatprep.subr.bf16.mxu1 %v3639_v63  ;;  %v4483_v40 = vpack.c.bf16 %v379_v37, %v379_v37  ;;  %v3672_v62 = vld [vmem:[%s5468_s3 + $0x88] ss:$16 sps:$4 sm:$0xff]   ;;  %v3680_v63 = vld [vmem:[%s5468_s3 + $0xac] ss:$16 sps:$4 sm:$0xff]   ;;  %v124_v37 = vrot.slane %v43_v8, %v4276_v52 }
  0x3d   :  { %2000 = vmatprep.subr.bf16.mxu0 %v3641_v2  ;;  %v3678_v2 = vld [vmem:[%s5468_s3 + $0xa8] ss:$16 sps:$4 sm:$0xff]  }
  0x3f   :  { %1960 = vmatpush1.bf16.msra.mxu1 %v3643_v10 }
  0x40   :  { %2001 = vmatpush1.bf16.msra.mxu0 %v3644_v57  ;;  %2093 = vmatprep.subr.bf16.mxu1 %v3650_v22  ;;  %v112_v22 = vrot.slane %v43_v8, %v4267_v49 }
  0x41   :  { %2011 = vmatprep.subr.bf16.mxu0 %v3647_v18  ;;  %v148_v18 = vrot.slane %v45_v9, %v4255_v45 }
  0x42   :  { %1962 = vmatmul.mubr.bf16.vlgmr.msra.gmra.mrb[0].mxu1 %v4445_v17 }
  0x43   :  { %2094 = vmatpush1.bf16.msra.mxu1 %v3648_v31  ;;  %2125 = vmatprep.mubr.bf16.mxu1 %v386_v3  ;;  %v72_v3 = vrot.slane %v4328_v6, %v4383_v36  ;;  %v225_v31 = vrot.slane %v45_v9, %v4252_v44 }
  0x44   :  { %2095 = vmatprep.subr.bf16.mxu1 %v3656_v34  ;;  %2003 = vmatmul.mubr.bf16.vlgmr.msra.gmra.mrb[0].mxu0 %v4483_v40  ;;  %v163_v34 = vsel %vm157_vm0, %v148_v18, %v116_v15  ;;  %v3710_v18 = vld [vmem:[%s5468_s3 + $0x14c] ss:$16 sps:$4 sm:$0xff]  }
  0x45   :  { %2012 = vmatpush1.bf16.msra.mxu0 %v3645_v35  ;;  %vm4557_vm10 = vcmp.eq.s32.totalorder %v72_v3, 1  ;;  %v243_v35 = vsel %vm157_vm0, %v229_v21, %v197_v19  ;;  %v201_v3 = vrot.slane %v43_v8, %v4383_v36  ;;  %v3714_v19 = vld [vmem:[%s5468_s3 + $0x168] ss:$16 sps:$4 sm:$0xff]   ;;  %v3722_v21 = vld [vmem:[%s5468_s3 + $0x18c] ss:$16 sps:$4 sm:$0xff]  }
  0x46   :  { %2013 = vmatprep.subr.bf16.mxu0 %v3653_v38  ;;  %v156_v38 = vrot.slane %v45_v9, %v4276_v52  ;;  %v3716_v52 = vld [vmem:[%s5468_s3 + $0x16c] ss:$16 sps:$4 sm:$0xff]  }
  0x47   :  { %2096 = vmatpush1.bf16.msra.mxu1 %v3654_v41  ;;  %v3689_v41 = vld [vmem:[%s5468_s3 + $0x4e4] ss:$16 sps:$4 sm:$0xff]  }
  0x48   :  { %2097 = vmatprep.subr.bf16.mxu1 %v3662_v42  ;;  %v3690_v42 = vld [vmem:[%s5468_s3 + $0xe8] ss:$16 sps:$4 sm:$0xff]  }
  0x49   :  { %2014 = vmatpush1.bf16.msra.mxu0 %v3651_v39  ;;  %v259_v39 = vsel %vm4557_vm10, %v163_v34, %v243_v35  ;;  %v3725_v34 = vld [vmem:[%s5468_s3 + $0x5a4] ss:$16 sps:$4 sm:$0xff]   ;;  %v3726_v35 = vld [vmem:[%s5468_s3 + $0x1a8] ss:$16 sps:$4 sm:$0xff]  }
  0x4a   :  { %2015 = vmatprep.subr.bf16.mxu0 %v3659_v43  ;;  %v162_v43 = vsel %vm157_vm0, %v144_v13, %v112_v22  ;;  %v3711_v22 = vld [vmem:[%s5468_s3 + $0x560] ss:$16 sps:$4 sm:$0xff]   ;;  %v3719_v13 = vld [vmem:[%s5468_s3 + $0x584] ss:$16 sps:$4 sm:$0xff]  }
  0x4b   :  { %2098 = vmatpush1.bf16.msra.mxu1 %v3660_v46  ;;  %v242_v46 = vsel %vm157_vm0, %v225_v31, %v193_v28  ;;  %v3720_v28 = vld [vmem:[%s5468_s3 + $0x188] ss:$16 sps:$4 sm:$0xff]   ;;  %v3728_v31 = vld [vmem:[%s5468_s3 + $0x1ac] ss:$16 sps:$4 sm:$0xff]  }
  0x4c   :  { %2099 = vmatprep.subr.bf16.mxu1 %v3668_v47  ;;  %v3738_v47 = vld [vmem:[%s5468_s3 + $0x1e8] ss:$16 sps:$4 sm:$0xff]  }
  0x4d   :  { %2016 = vmatpush1.bf16.msra.mxu0 %v3657_v50  ;;  %v3698_v50 = vld [vmem:[%s5468_s3 + $0x10c] ss:$16 sps:$4 sm:$0xff]  }
  0x4e   :  { %2017 = vmatprep.subr.bf16.mxu0 %v3665_v51  ;;  %v308_v51 = vmul.f32 %v286_v11, %v259_v39  ;;  %v3701_v11 = vld [vmem:[%s5468_s3 + $0x524] ss:$16 sps:$4 sm:$0xff]   ;;  %v3740_v39 = vld [vmem:[%s5468_s3 + $0x1ec] ss:$16 sps:$4 sm:$0xff]  }
  0x4f   :  { %2100 = vmatpush1.bf16.msra.mxu1 %v3666_v53  ;;  %v258_v53 = vsel %vm4568_vm11, %v162_v43, %v242_v46  ;;  %v3729_v43 = vld [vmem:[%s5468_s3 + $0x5c0] ss:$16 sps:$4 sm:$0xff]   ;;  %v3737_v46 = vld [vmem:[%s5468_s3 + $0x5e4] ss:$16 sps:$4 sm:$0xff]  }
  0x50   :  { %2101 = vmatprep.subr.bf16.mxu1 %v3674_v54  ;;  %v165_v54 = vsel %vm157_vm0, %v156_v38, %v124_v37  ;;  %v307_v23 = vmul.f32 %v282_v16, %v258_v53  ;;  %v3734_v37 = vld [vmem:[%s5468_s3 + $0x1cc] ss:$16 sps:$4 sm:$0xff]   ;;  %v3723_v38 = vld [vmem:[%s5468_s3 + $0x5a0] ss:$16 sps:$4 sm:$0xff]  }
  0x51   :  { %2018 = vmatpush1.bf16.msra.mxu0 %v3663_v59  ;;  %v205_v59 = vrot.slane %v43_v8, %v4290_v56  ;;  %v3746_v53 = vld [vmem:[%s5468_s3 + $0x20c] ss:$16 sps:$4 sm:$0xff]  }
  0x52   :  { %2019 = vmatprep.subr.bf16.mxu0 %v3671_v60  ;;  %v237_v60 = vrot.slane %v45_v9, %v4290_v56  ;;  %v4644_v6 = vadd.f32 %v332_v20, %v307_v23  ;;  %v3693_v20 = vld [vmem:[%s5468_s3 + $0x500] ss:$16 sps:$4 sm:$0xff]   ;;  %v3707_v56 = vld [vmem:[%s5468_s3 + $0x544] ss:$16 sps:$4 sm:$0xff]  }
  0x53   :  { %2102 = vmatpush1.bf16.msra.mxu1 %v3672_v62  ;;  %v120_v62 = vrot.slane %v43_v8, %v4367_v27 }
  0x54   :  { %2103 = vmatprep.subr.bf16.mxu1 %v3680_v63  ;;  %v152_v63 = vrot.slane %v45_v9, %v4367_v27  ;;  %v245_v29 = vsel %vm157_vm0, %v237_v60, %v205_v59  ;;  %vm365_vm15 = vcmp.gt.f32.partialorder %v4644_v6, 0.0  ;;  %v3743_v59 = vld [vmem:[%s5468_s3 + $0x604] ss:$16 sps:$4 sm:$0xff]   ;;  %v3744_v60 = vld [vmem:[%s5468_s3 + $0x208] ss:$16 sps:$4 sm:$0xff]  }
  0x55   :  { %2020 = vmatpush1.bf16.msra.mxu0 %v3669_v0  ;;  %v3687_v0 = vld [vmem:[%s5468_s3 + $0x4e0] ss:$16 sps:$4 sm:$0xff]   ;;  %v261_v8 = vsel %vm4603_vm12, %v165_v54, %v245_v29  ;;  %v3761_v29 = vld [vmem:[%s5468_s3 + $0x664] ss:$16 sps:$4 sm:$0xff]  }
  0x56   :  { %2021 = vmatprep.subr.bf16.mxu0 %v3677_v1  ;;  %v3695_v1 = vld [vmem:[%s5468_s3 + $0x504] ss:$16 sps:$4 sm:$0xff]   ;;  %v310_v10 = vmul.f32 %v294_v24, %v261_v8  ;;  %v3702_v24 = vld [vmem:[%s5468_s3 + $0x128] ss:$16 sps:$4 sm:$0xff]   ;;  %v3735_v54 = vld [vmem:[%s5468_s3 + $0x5e0] ss:$16 sps:$4 sm:$0xff]  }
  0x57   :  { %2104 = vmatpush1.bf16.msra.mxu1 %v3678_v2  ;;  %v358_v2 = vadd.f32 %v336_v12, %v308_v51  ;;  %v3759_v8 = vld [vmem:[%s5468_s3 + $0x660] ss:$16 sps:$4 sm:$0xff]  }
  0x58   :  { %2105 = vmatprep.subr.bf16.mxu1 %v3686_v55  ;;  %v233_v55 = vrot.slane %v45_v9, %v4383_v36  ;;  %v4673_v15 = vadd.f32 %v344_v25, %v310_v10  ;;  %v3708_v25 = vld [vmem:[%s5468_s3 + $0x148] ss:$16 sps:$4 sm:$0xff]  }
  0x59   :  { %2022 = vmatpush1.bf16.msra.mxu0 %v3675_v4  ;;  %v3696_v4 = vld [vmem:[%s5468_s3 + $0x108] ss:$16 sps:$4 sm:$0xff]   ;;  %vm366_vm14 = vcmp.gt.f32.partialorder %v358_v2, 0.0  ;;  %v374_v36 = vmul.f32 0.2, %v358_v2 }
  0x5a   :  { %2023 = vmatprep.subr.bf16.mxu0 %v3683_v5  ;;  %v3704_v5 = vld [vmem:[%s5468_s3 + $0x12c] ss:$16 sps:$4 sm:$0xff]   ;;  %v244_v9 = vsel %vm157_vm0, %v233_v55, %v201_v3  ;;  %v376_v51 = vmul.f32 0.2, %v4673_v15  ;;  %v3750_v3 = vld [vmem:[%s5468_s3 + $0x228] ss:$16 sps:$4 sm:$0xff]  }
  0x5b   :  { %2106 = vmatpush1.bf16.msra.mxu1 %v3684_v7  ;;  %v164_v7 = vsel %vm157_vm0, %v152_v63, %v120_v62  ;;  %v382_v12 = vsel %vm366_vm14, %v358_v2, %v374_v36  ;;  %vm368_vm0 = vcmp.gt.f32.partialorder %v4673_v15, 0.0  ;;  %v3752_v63 = vld [vmem:[%s5468_s3 + $0x22c] ss:$16 sps:$4 sm:$0xff]   ;;  %v3749_v2 = vld [vmem:[%s5468_s3 + $0x624] ss:$16 sps:$4 sm:$0xff]  }
  0x5c   :  { %2107 = vmatprep.subr.bf16.mxu1 %v3692_v14  ;;  %v260_v27 = vsel %vm4629_vm13, %v164_v7, %v244_v9  ;;  %v4668_v14 = vpack.c.bf16 %v382_v12, %v382_v12  ;;  %v384_v62 = vsel %vm368_vm0, %v4673_v15, %v376_v51  ;;  %v3758_v55 = vld [vmem:[%s5468_s3 + $0x24c] ss:$16 sps:$4 sm:$0xff]   ;;  %v3762_v7 = vld [vmem:[%s5468_s3 + $0x268] ss:$16 sps:$4 sm:$0xff]   ;;  %v3767_v9 = vld [vmem:[%s5468_s3 + $0x684] ss:$16 sps:$4 sm:$0xff]  }
  0x5d   :  { %2024 = vmatpush1.bf16.msra.mxu0 %v3681_v33  ;;  %v309_v57 = vmul.f32 %v290_v30, %v260_v27  ;;  %v3699_v30 = vld [vmem:[%s5468_s3 + $0x520] ss:$16 sps:$4 sm:$0xff]   ;;  %v4783_v16 = vpack.c.bf16 %v384_v62, %v384_v62  ;;  %v3770_v36 = vld [vmem:[%s5468_s3 + $0x28c] ss:$16 sps:$4 sm:$0xff]   ;;  %v3768_v10 = vld [vmem:[%s5468_s3 + $0x288] ss:$16 sps:$4 sm:$0xff]  }
  0x5e   :  { %2025 = vmatprep.subr.bf16.mxu0 %v3689_v41  ;;  %2043 = vmatprep.mubr.bf16.mxu0 %v4668_v14  ;;  %v3717_v33 = vld [vmem:[%s5468_s3 + $0x580] ss:$16 sps:$4 sm:$0xff]   ;;  %v3731_v41 = vld [vmem:[%s5468_s3 + $0x5c4] ss:$16 sps:$4 sm:$0xff]   ;;  %v3776_v27 = vld [vmem:[%s5468_s3 + $0x2ac] ss:$16 sps:$4 sm:$0xff]  }
  0x5f   :  { %2108 = vmatpush1.bf16.msra.mxu1 %v3690_v42  ;;  %v4681_v58 = vadd.f32 %v340_v32, %v309_v57  ;;  %v3713_v32 = vld [vmem:[%s5468_s3 + $0x564] ss:$16 sps:$4 sm:$0xff]   ;;  %v3732_v42 = vld [vmem:[%s5468_s3 + $0x1c8] ss:$16 sps:$4 sm:$0xff]   ;;  %v3782_v57 = vld [vmem:[%s5468_s3 + $0x2cc] ss:$16 sps:$4 sm:$0xff]  }
  0x60   :  { %2109 = vmatprep.subr.bf16.mxu1 %v3698_v50  ;;  %v373_v50 = vmul.f32 0.2, %v4644_v6  ;;  %v3774_v12 = vld [vmem:[%s5468_s3 + $0x2a8] ss:$16 sps:$4 sm:$0xff]   ;;  %v3779_v15 = vld [vmem:[%s5468_s3 + $0x6c4] ss:$16 sps:$4 sm:$0xff]  }
  0x61   :  { %2026 = vmatpush1.bf16.msra.mxu0 %v3687_v0  ;;  %v3824_v51 = vld [vmem:[%s5468_s3 + $0x3ac] ss:$16 sps:$4 sm:$0xff]   ;;  %v3827_v62 = vld [vmem:[%s5468_s3 + $0x7c4] ss:$16 sps:$4 sm:$0xff]   ;;  %vm367_vm1 = vcmp.gt.f32.partialorder %v4681_v58, 0.0 }
  0x62   :  { %2027 = vmatprep.subr.bf16.mxu0 %v3695_v1  ;;  %v381_v23 = vsel %vm365_vm15, %v4644_v6, %v373_v50  ;;  %v3741_v1 = vld [vmem:[%s5468_s3 + $0x600] ss:$16 sps:$4 sm:$0xff]   ;;  %v3816_v50 = vld [vmem:[%s5468_s3 + $0x388] ss:$16 sps:$4 sm:$0xff]  }
  0x63   :  { %2110 = vmatpush1.bf16.msra.mxu1 %v3696_v4  ;;  %v4774_v0 = vpack.c.bf16 %v381_v23, %v381_v23  ;;  %v3755_v4 = vld [vmem:[%s5468_s3 + $0x644] ss:$16 sps:$4 sm:$0xff]   ;;  %v3753_v6 = vld [vmem:[%s5468_s3 + $0x640] ss:$16 sps:$4 sm:$0xff]   ;;  %v3830_v23 = vld [vmem:[%s5468_s3 + $0x3cc] ss:$16 sps:$4 sm:$0xff]  }
  0x64   :  { %2111 = vmatprep.subr.bf16.mxu1 %v3704_v5  ;;  %v3756_v5 = vld [vmem:[%s5468_s3 + $0x248] ss:$16 sps:$4 sm:$0xff]  }
  0x65   :  { %2028 = vmatpush1.bf16.msra.mxu0 %v3693_v20  ;;  %v3765_v20 = vld [vmem:[%s5468_s3 + $0x680] ss:$16 sps:$4 sm:$0xff]  }
  0x66   :  { %2029 = vmatprep.subr.bf16.mxu0 %v3701_v11  ;;  %v3773_v11 = vld [vmem:[%s5468_s3 + $0x6a4] ss:$16 sps:$4 sm:$0xff]  }
  0x67   :  { %2112 = vmatpush1.bf16.msra.mxu1 %v3702_v24  ;;  %v3771_v24 = vld [vmem:[%s5468_s3 + $0x6a0] ss:$16 sps:$4 sm:$0xff]  }
  0x68   :  { %2113 = vmatprep.subr.bf16.mxu1 %v3710_v18  ;;  %v3780_v18 = vld [vmem:[%s5468_s3 + $0x2c8] ss:$16 sps:$4 sm:$0xff]  }
  0x69   :  { %2030 = vmatpush1.bf16.msra.mxu0 %v3699_v30  ;;  %v3788_v30 = vld [vmem:[%s5468_s3 + $0x2ec] ss:$16 sps:$4 sm:$0xff]  }
  0x6a   :  { %2031 = vmatprep.subr.bf16.mxu0 %v3707_v56  ;;  %v3777_v56 = vld [vmem:[%s5468_s3 + $0x6c0] ss:$16 sps:$4 sm:$0xff]  }
  0x6b   :  { %2114 = vmatpush1.bf16.msra.mxu1 %v3708_v25  ;;  %v3785_v25 = vld [vmem:[%s5468_s3 + $0x6e4] ss:$16 sps:$4 sm:$0xff]  }
  0x6c   :  { %2115 = vmatprep.subr.bf16.mxu1 %v3716_v52  ;;  %v3786_v52 = vld [vmem:[%s5468_s3 + $0x2e8] ss:$16 sps:$4 sm:$0xff]  }
  0x6d   :  { %2032 = vmatpush1.bf16.msra.mxu0 %v3705_v61  ;;  %v3794_v61 = vld [vmem:[%s5468_s3 + $0x30c] ss:$16 sps:$4 sm:$0xff]  }
  0x6e   :  { %2033 = vmatprep.subr.bf16.mxu0 %v3713_v32  ;;  %v3783_v32 = vld [vmem:[%s5468_s3 + $0x6e0] ss:$16 sps:$4 sm:$0xff]  }
  0x6f   :  { %2116 = vmatpush1.bf16.msra.mxu1 %v3714_v19  ;;  %v3791_v19 = vld [vmem:[%s5468_s3 + $0x704] ss:$16 sps:$4 sm:$0xff]  }
  0x70   :  { %2117 = vmatprep.subr.bf16.mxu1 %v3722_v21  ;;  %v3792_v21 = vld [vmem:[%s5468_s3 + $0x308] ss:$16 sps:$4 sm:$0xff]  }
  0x71   :  { %2034 = vmatpush1.bf16.msra.mxu0 %v3711_v22  ;;  %v3800_v22 = vld [vmem:[%s5468_s3 + $0x32c] ss:$16 sps:$4 sm:$0xff]  }
  0x72   :  { %2035 = vmatprep.subr.bf16.mxu0 %v3719_v13  ;;  %v3789_v13 = vld [vmem:[%s5468_s3 + $0x700] ss:$16 sps:$4 sm:$0xff]  }
  0x73   :  { %2118 = vmatpush1.bf16.msra.mxu1 %v3720_v28  ;;  %v3797_v28 = vld [vmem:[%s5468_s3 + $0x724] ss:$16 sps:$4 sm:$0xff]  }
  0x74   :  { %2119 = vmatprep.subr.bf16.mxu1 %v3728_v31  ;;  %v3798_v31 = vld [vmem:[%s5468_s3 + $0x328] ss:$16 sps:$4 sm:$0xff]  }
  0x75   :  { %2036 = vmatpush1.bf16.msra.mxu0 %v3717_v33  ;;  %v3806_v33 = vld [vmem:[%s5468_s3 + $0x34c] ss:$16 sps:$4 sm:$0xff]  }
  0x76   :  { %2037 = vmatprep.subr.bf16.mxu0 %v3725_v34  ;;  %v3795_v34 = vld [vmem:[%s5468_s3 + $0x720] ss:$16 sps:$4 sm:$0xff]  }
  0x77   :  { %2120 = vmatpush1.bf16.msra.mxu1 %v3726_v35  ;;  %v3803_v35 = vld [vmem:[%s5468_s3 + $0x744] ss:$16 sps:$4 sm:$0xff]  }
  0x78   :  { %2121 = vmatprep.subr.bf16.mxu1 %v3734_v37  ;;  %v3804_v37 = vld [vmem:[%s5468_s3 + $0x348] ss:$16 sps:$4 sm:$0xff]  }
  0x79   :  { %2038 = vmatpush1.bf16.msra.mxu0 %v3723_v38  ;;  %v3812_v38 = vld [vmem:[%s5468_s3 + $0x36c] ss:$16 sps:$4 sm:$0xff]  }
  0x7a   :  { %2039 = vmatprep.subr.bf16.mxu0 %v3731_v41  ;;  %v3801_v41 = vld [vmem:[%s5468_s3 + $0x740] ss:$16 sps:$4 sm:$0xff]  }
  0x7b   :  { %2122 = vmatpush1.bf16.msra.mxu1 %v3732_v42  ;;  %v3809_v42 = vld [vmem:[%s5468_s3 + $0x764] ss:$16 sps:$4 sm:$0xff]  }
  0x7c   :  { %2123 = vmatprep.subr.bf16.mxu1 %v3740_v39  ;;  %v3810_v39 = vld [vmem:[%s5468_s3 + $0x368] ss:$16 sps:$4 sm:$0xff]  }
  0x7d   :  { %2040 = vmatpush1.bf16.msra.mxu0 %v3729_v43  ;;  %v3818_v43 = vld [vmem:[%s5468_s3 + $0x38c] ss:$16 sps:$4 sm:$0xff]  }
  0x7e   :  { %2041 = vmatprep.subr.bf16.mxu0 %v3737_v46  ;;  %v3807_v46 = vld [vmem:[%s5468_s3 + $0x760] ss:$16 sps:$4 sm:$0xff]  }
  0x7f   :  { %2124 = vmatpush1.bf16.msra.mxu1 %v3738_v47  ;;  %v3815_v47 = vld [vmem:[%s5468_s3 + $0x784] ss:$16 sps:$4 sm:$0xff]  }
  0x80   :  { %2134 = vmatprep.subr.bf16.mxu1 %v3746_v53  ;;  %v3813_v53 = vld [vmem:[%s5468_s3 + $0x780] ss:$16 sps:$4 sm:$0xff]  }
  0x81   :  { %2042 = vmatpush1.bf16.msra.mxu0 %v3735_v54  ;;  %v3821_v54 = vld [vmem:[%s5468_s3 + $0x7a4] ss:$16 sps:$4 sm:$0xff]  }
  0x82   :  { %2126 = vmatmul.mubr.bf16.vlgmr.msra.gmra.mrb[4].mxu1 %v4445_v17  ;;  %2052 = vmatprep.subr.bf16.mxu0 %v3743_v59  ;;  %v3747_v17 = vld [vmem:[%s5468_s3 + $0x620] ss:$16 sps:$4 sm:$0xff]   ;;  %v3822_v59 = vld [vmem:[%s5468_s3 + $0x3a8] ss:$16 sps:$4 sm:$0xff]  }
  0x83   :  { %2135 = vmatpush1.bf16.msra.mxu1 %v3744_v60  ;;  %2166 = vmatprep.mubr.bf16.mxu1 %v4461_v26  ;;  %v3764_v26 = vld [vmem:[%s5468_s3 + $0x26c] ss:$16 sps:$4 sm:$0xff]   ;;  %v3819_v60 = vld [vmem:[%s5468_s3 + $0x7a0] ss:$16 sps:$4 sm:$0xff]  }
  0x84   :  { %2136 = vmatprep.subr.bf16.mxu1 %v3752_v63  ;;  %2044 = vmatmul.mubr.bf16.vlgmr.msra.gmra.mrb[0].mxu0 %v4774_v0  ;;  %v3828_v63 = vld [vmem:[%s5468_s3 + $0x3c8] ss:$16 sps:$4 sm:$0xff]  }
  0x85   :  { %2053 = vmatpush1.bf16.msra.mxu0 %v3741_v1  ;;  %2084 = vmatprep.mubr.bf16.mxu0 %v4783_v16  ;;  %v3836_v1 = vld [vmem:[%s5468_s3 + $0x3ec] ss:$16 sps:$4 sm:$0xff]  }
  0x86   :  { %2054 = vmatprep.subr.bf16.mxu0 %v3749_v2  ;;  %v3825_v2 = vld [vmem:[%s5468_s3 + $0x7c0] ss:$16 sps:$4 sm:$0xff]  }
  0x87   :  { %2137 = vmatpush1.bf16.msra.mxu1 %v3750_v3  ;;  %v375_v3 = vmul.f32 0.2, %v4681_v58 }
  0x88   :  { %2138 = vmatprep.subr.bf16.mxu1 %v3758_v55  ;;  %v3833_v55 = vld [vmem:[%s5468_s3 + $0x7e4] ss:$16 sps:$4 sm:$0xff]  }
  0x89   :  { %2055 = vmatpush1.bf16.msra.mxu0 %v3747_v17  ;;  %v3834_v17 = vld [vmem:[%s5468_s3 + $0x3e8] ss:$16 sps:$4 sm:$0xff]  }
  0x8a   :  { %2056 = vmatprep.subr.bf16.mxu0 %v3755_v4  ;;  %v3839_v4 = vld [vmem:[%s5468_s3 + $0x40c] ss:$16 sps:$4 sm:$0xff]  }
  0x8b   :  { %2139 = vmatpush1.bf16.msra.mxu1 %v3756_v5  ;;  %v3831_v5 = vld [vmem:[%s5468_s3 + $0x7e0] ss:$16 sps:$4 sm:$0xff]  }
  0x8c   :  { %2140 = vmatprep.subr.bf16.mxu1 %v3764_v26  ;;  %v383_v26 = vsel %vm367_vm1, %v4681_v58, %v375_v3  ;;  %v3840_v58 = vld [vmem:[%s5468_s3 + $0x428] ss:$16 sps:$4 sm:$0xff]  }
  0x8d   :  { %2057 = vmatpush1.bf16.msra.mxu0 %v3753_v6  ;;  %v3837_v6 = vld [vmem:[%s5468_s3 + $0x408] ss:$16 sps:$4 sm:$0xff]  }
  0x8e   :  { %2058 = vmatprep.subr.bf16.mxu0 %v3761_v29  ;;  %v3842_v29 = vld [vmem:[%s5468_s3 + $0x42c] ss:$16 sps:$4 sm:$0xff]  }
  0x8f   :  { %2141 = vmatpush1.bf16.msra.mxu1 %v3762_v7  ;;  %v4974_v7 = vpack.c.bf16 %v383_v26, %v383_v26  ;;  %v3947_v26 = vld [vmem:[%s5472_s6 + $0x44] ss:$8 sps:$4 sm:$0xff]  }
  0x90   :  { %2142 = vmatprep.subr.bf16.mxu1 %v3770_v36  ;;  %v3845_v36 = vld [vmem:[%s5468_s3 + $0x44c] ss:$16 sps:$4 sm:$0xff]  }
  0x91   :  { %2059 = vmatpush1.bf16.msra.mxu0 %v3759_v8  ;;  %v3933_v8 = vld [vmem:[%s5472_s6] ss:$8 sps:$4 sm:$0xff]  }
  0x92   :  { %2060 = vmatprep.subr.bf16.mxu0 %v3767_v9  ;;  %v3938_v9 = vld [vmem:[%s5472_s6 + $0x14] ss:$8 sps:$4 sm:$0xff]  }
  0x93   :  { %2143 = vmatpush1.bf16.msra.mxu1 %v3768_v10  ;;  %v3843_v10 = vld [vmem:[%s5468_s3 + $0x448] ss:$16 sps:$4 sm:$0xff]  }
  0x94   :  { %2144 = vmatprep.subr.bf16.mxu1 %v3776_v27  ;;  %v3936_v27 = vld [vmem:[%s5472_s6 + $0x10] ss:$8 sps:$4 sm:$0xff]  }
  0x95   :  { %2061 = vmatpush1.bf16.msra.mxu0 %v3765_v20  ;;  %v3941_v20 = vld [vmem:[%s5472_s6 + $0x24] ss:$8 sps:$4 sm:$0xff]  }
  0x96   :  { %2062 = vmatprep.subr.bf16.mxu0 %v3773_v11  ;;  %v3846_v11 = vld [vmem:[%s5468_s3 + $0x468] ss:$16 sps:$4 sm:$0xff]  }
  0x97   :  { %2145 = vmatpush1.bf16.msra.mxu1 %v3774_v12  ;;  %v3939_v12 = vld [vmem:[%s5472_s6 + $0x20] ss:$8 sps:$4 sm:$0xff]  }
  0x98   :  { %2146 = vmatprep.subr.bf16.mxu1 %v3782_v57  ;;  %v3851_v57 = vld [vmem:[%s5468_s3 + $0x48c] ss:$16 sps:$4 sm:$0xff]  }
  0x99   :  { %2063 = vmatpush1.bf16.msra.mxu0 %v3771_v24  ;;  %v3944_v24 = vld [vmem:[%s5472_s6 + $0x34] ss:$8 sps:$4 sm:$0xff]  }
  0x9a   :  { %2064 = vmatprep.subr.bf16.mxu0 %v3779_v15  ;;  %v3849_v15 = vld [vmem:[%s5468_s3 + $0x488] ss:$16 sps:$4 sm:$0xff]  }
  0x9b   :  { %2147 = vmatpush1.bf16.msra.mxu1 %v3780_v18  ;;  %v3942_v18 = vld [vmem:[%s5472_s6 + $0x30] ss:$8 sps:$4 sm:$0xff]  }
  0x9c   :  { %2148 = vmatprep.subr.bf16.mxu1 %v3788_v30  ;;  %v3854_v30 = vld [vmem:[%s5468_s3 + $0x4ac] ss:$16 sps:$4 sm:$0xff]  }
  0x9d   :  { %2065 = vmatpush1.bf16.msra.mxu0 %v3777_v56  ;;  %v3852_v56 = vld [vmem:[%s5468_s3 + $0x4a8] ss:$16 sps:$4 sm:$0xff]  }
  0x9e   :  { %2066 = vmatprep.subr.bf16.mxu0 %v3785_v25  ;;  %v3857_v25 = vld [vmem:[%s5468_s3 + $0x4cc] ss:$16 sps:$4 sm:$0xff]  }
  0x9f   :  { %2149 = vmatpush1.bf16.msra.mxu1 %v3786_v52  ;;  %v3855_v52 = vld [vmem:[%s5468_s3 + $0x4c8] ss:$16 sps:$4 sm:$0xff]  }
  0xa0   :  { %2150 = vmatprep.subr.bf16.mxu1 %v3794_v61  ;;  %v3860_v61 = vld [vmem:[%s5468_s3 + $0x4ec] ss:$16 sps:$4 sm:$0xff]  }
  0xa1   :  { %2067 = vmatpush1.bf16.msra.mxu0 %v3783_v32  ;;  %v3858_v32 = vld [vmem:[%s5468_s3 + $0x4e8] ss:$16 sps:$4 sm:$0xff]  }
  0xa2   :  { %2068 = vmatprep.subr.bf16.mxu0 %v3791_v19  ;;  %v3863_v19 = vld [vmem:[%s5468_s3 + $0x50c] ss:$16 sps:$4 sm:$0xff]  }
  0xa3   :  { %2151 = vmatpush1.bf16.msra.mxu1 %v3792_v21  ;;  %v3861_v21 = vld [vmem:[%s5468_s3 + $0x508] ss:$16 sps:$4 sm:$0xff]  }
  0xa4   :  { %2152 = vmatprep.subr.bf16.mxu1 %v3800_v22  ;;  %v3866_v22 = vld [vmem:[%s5468_s3 + $0x52c] ss:$16 sps:$4 sm:$0xff]  }
  0xa5   :  { %2069 = vmatpush1.bf16.msra.mxu0 %v3789_v13  ;;  %v3864_v13 = vld [vmem:[%s5468_s3 + $0x528] ss:$16 sps:$4 sm:$0xff]  }
  0xa6   :  { %2070 = vmatprep.subr.bf16.mxu0 %v3797_v28  ;;  %v3869_v28 = vld [vmem:[%s5468_s3 + $0x54c] ss:$16 sps:$4 sm:$0xff]  }
  0xa7   :  { %2153 = vmatpush1.bf16.msra.mxu1 %v3798_v31  ;;  %v3867_v31 = vld [vmem:[%s5468_s3 + $0x548] ss:$16 sps:$4 sm:$0xff]  }
  0xa8   :  { %2154 = vmatprep.subr.bf16.mxu1 %v3806_v33  ;;  %v3872_v33 = vld [vmem:[%s5468_s3 + $0x56c] ss:$16 sps:$4 sm:$0xff]  }
  0xa9   :  { %2071 = vmatpush1.bf16.msra.mxu0 %v3795_v34  ;;  %v3870_v34 = vld [vmem:[%s5468_s3 + $0x568] ss:$16 sps:$4 sm:$0xff]  }
  0xaa   :  { %2072 = vmatprep.subr.bf16.mxu0 %v3803_v35  ;;  %v3875_v35 = vld [vmem:[%s5468_s3 + $0x58c] ss:$16 sps:$4 sm:$0xff]  }
  0xab   :  { %2155 = vmatpush1.bf16.msra.mxu1 %v3804_v37  ;;  %v3873_v37 = vld [vmem:[%s5468_s3 + $0x588] ss:$16 sps:$4 sm:$0xff]  }
  0xac   :  { %2156 = vmatprep.subr.bf16.mxu1 %v3812_v38  ;;  %v3878_v38 = vld [vmem:[%s5468_s3 + $0x5ac] ss:$16 sps:$4 sm:$0xff]  }
  0xad   :  { %2073 = vmatpush1.bf16.msra.mxu0 %v3801_v41  ;;  %v3876_v41 = vld [vmem:[%s5468_s3 + $0x5a8] ss:$16 sps:$4 sm:$0xff]  }
  0xae   :  { %2074 = vmatprep.subr.bf16.mxu0 %v3809_v42  ;;  %v3881_v42 = vld [vmem:[%s5468_s3 + $0x5cc] ss:$16 sps:$4 sm:$0xff]  }
  0xaf   :  { %2157 = vmatpush1.bf16.msra.mxu1 %v3810_v39  ;;  %v3879_v39 = vld [vmem:[%s5468_s3 + $0x5c8] ss:$16 sps:$4 sm:$0xff]  }
  0xb0   :  { %2158 = vmatprep.subr.bf16.mxu1 %v3818_v43  ;;  %v3884_v43 = vld [vmem:[%s5468_s3 + $0x5ec] ss:$16 sps:$4 sm:$0xff]  }
  0xb1   :  { %2075 = vmatpush1.bf16.msra.mxu0 %v3807_v46  ;;  %v3882_v46 = vld [vmem:[%s5468_s3 + $0x5e8] ss:$16 sps:$4 sm:$0xff]  }
  0xb2   :  { %2076 = vmatprep.subr.bf16.mxu0 %v3815_v47  ;;  %v3887_v47 = vld [vmem:[%s5468_s3 + $0x60c] ss:$16 sps:$4 sm:$0xff]  }
  0xb3   :  { %2159 = vmatpush1.bf16.msra.mxu1 %v3816_v50  ;;  %v3885_v50 = vld [vmem:[%s5468_s3 + $0x608] ss:$16 sps:$4 sm:$0xff]  }
  0xb4   :  { %2160 = vmatprep.subr.bf16.mxu1 %v3824_v51  ;;  %v3890_v51 = vld [vmem:[%s5468_s3 + $0x62c] ss:$16 sps:$4 sm:$0xff]  }
  0xb5   :  { %2077 = vmatpush1.bf16.msra.mxu0 %v3813_v53  ;;  %v3888_v53 = vld [vmem:[%s5468_s3 + $0x628] ss:$16 sps:$4 sm:$0xff]  }
  0xb6   :  { %2078 = vmatprep.subr.bf16.mxu0 %v3821_v54  ;;  %v3893_v54 = vld [vmem:[%s5468_s3 + $0x64c] ss:$16 sps:$4 sm:$0xff]  }
  0xb7   :  { %2161 = vmatpush1.bf16.msra.mxu1 %v3822_v59  ;;  %v3891_v59 = vld [vmem:[%s5468_s3 + $0x648] ss:$16 sps:$4 sm:$0xff]  }
  0xb8   :  { %2162 = vmatprep.subr.bf16.mxu1 %v3830_v23  ;;  %v3899_v23 = vld [vmem:[%s5468_s3 + $0x68c] ss:$16 sps:$4 sm:$0xff]  }
  0xb9   :  { %2079 = vmatpush1.bf16.msra.mxu0 %v3819_v60  ;;  %v3897_v60 = vld [vmem:[%s5468_s3 + $0x688] ss:$16 sps:$4 sm:$0xff]  }
  0xba   :  { %2080 = vmatprep.subr.bf16.mxu0 %v3827_v62  ;;  %v3902_v62 = vld [vmem:[%s5468_s3 + $0x6ac] ss:$16 sps:$4 sm:$0xff]  }
  0xbb   :  { %2163 = vmatpush1.bf16.msra.mxu1 %v3828_v63  ;;  %v3900_v63 = vld [vmem:[%s5468_s3 + $0x6a8] ss:$16 sps:$4 sm:$0xff]  }
  0xbc   :  { %2164 = vmatprep.subr.bf16.mxu1 %v3836_v1  ;;  %v3905_v1 = vld [vmem:[%s5468_s3 + $0x6cc] ss:$16 sps:$4 sm:$0xff]  }
  0xbd   :  { %2081 = vmatpush1.bf16.msra.mxu0 %v3825_v2 }
  0xbe   :  { %2082 = vmatprep.subr.bf16.mxu0 %v3833_v55 }
  0xbf   :  { %2165 = vmatpush1.bf16.msra.mxu1 %v3834_v17  ;;  %v3903_v17 = vld [vmem:[%s5468_s3 + $0x6c8] ss:$16 sps:$4 sm:$0xff]  }
  0xc0   :  { %2175 = vmatprep.subr.bf16.mxu1 %v3839_v4 }
  0xc1   :  { %2083 = vmatpush1.bf16.msra.mxu0 %v3831_v5  ;;  %v3908_v5 = vld [vmem:[%s5468_s3 + $0x6ec] ss:$16 sps:$4 sm:$0xff]  }
  0xc2   :  { %2167 = vmatmul.mubr.bf16.vlgmr.msra.gmra.mrb[4].mxu1 %v4483_v40  ;;  %v3935_v40 = vld [vmem:[%s5472_s6 + $0x4] ss:$8 sps:$4 sm:$0xff]  }
  0xc3   :  { %2176 = vmatpush1.bf16.msra.mxu1 %v3837_v6  ;;  %2207 = vmatprep.mubr.bf16.mxu1 %v4668_v14  ;;  %v3848_v14 = vld [vmem:[%s5468_s3 + $0x46c] ss:$16 sps:$4 sm:$0xff]   ;;  %v3945_v6 = vld [vmem:[%s5472_s6 + $0x40] ss:$8 sps:$4 sm:$0xff]  }
  0xc4   :  { %2177 = vmatprep.subr.bf16.mxu1 %v3842_v29  ;;  %2085 = vmatmul.mubr.bf16.vlgmr.msra.gmra.mrb[0].mxu0 %v4974_v7  ;;  %v3906_v29 = vld [vmem:[%s5468_s3 + $0x6e8] ss:$16 sps:$4 sm:$0xff]  }
  0xc5   :  { %2807 = vmatprep.subr.bf16.mxu0 %v3935_v40  ;;  %v3909_v40 = vld [vmem:[%s5468_s3 + $0x708] ss:$16 sps:$4 sm:$0xff]  }
  0xc6   :  { %2808 = vmatpush1.bf16.msra.mxu0 %v3933_v8  ;;  %v3948_v8 = vld [vmem:[%s5472_s6 + $0x50] ss:$8 sps:$4 sm:$0xff]  }
  0xc7   :  { %2178 = vmatpush1.bf16.msra.mxu1 %v3840_v58  ;;  %2809 = vmatprep.subr.bf16.mxu0 %v3938_v9  ;;  %v3911_v58 = vld [vmem:[%s5468_s3 + $0x70c] ss:$16 sps:$4 sm:$0xff]  }
  0xc8   :  { %2179 = vmatprep.subr.bf16.mxu1 %v3845_v36  ;;  %v3950_v36 = vld [vmem:[%s5472_s6 + $0x54] ss:$8 sps:$4 sm:$0xff]  }
  0xc9   :  { %v3914_v9 = vld [vmem:[%s5468_s3 + $0x72c] ss:$16 sps:$4 sm:$0xff]  }
  0xca   :  { %2810 = vmatpush1.bf16.msra.mxu0 %v3936_v27  ;;  %v3912_v27 = vld [vmem:[%s5468_s3 + $0x728] ss:$16 sps:$4 sm:$0xff]  }
  0xcb   :  { %2180 = vmatpush1.bf16.msra.mxu1 %v3843_v10  ;;  %2811 = vmatprep.subr.bf16.mxu0 %v3941_v20  ;;  %v3953_v10 = vld [vmem:[%s5472_s6 + $0x64] ss:$8 sps:$4 sm:$0xff]  }
  0xcc   :  { %2181 = vmatprep.subr.bf16.mxu1 %v3848_v14  ;;  %v3951_v14 = vld [vmem:[%s5472_s6 + $0x60] ss:$8 sps:$4 sm:$0xff]   ;;  %v3917_v20 = vld [vmem:[%s5468_s3 + $0x74c] ss:$16 sps:$4 sm:$0xff]  }
  0xce   :  { %2812 = vmatpush1.bf16.msra.mxu0 %v3939_v12  ;;  %v3954_v12 = vld [vmem:[%s5472_s6 + $0x70] ss:$8 sps:$4 sm:$0xff]  }
  0xcf   :  { %2182 = vmatpush1.bf16.msra.mxu1 %v3846_v11  ;;  %2813 = vmatprep.subr.bf16.mxu0 %v3944_v24  ;;  %v3956_v11 = vld [vmem:[%s5472_s6 + $0x74] ss:$8 sps:$4 sm:$0xff]  }
  0xd0   :  { %2183 = vmatprep.subr.bf16.mxu1 %v3851_v57  ;;  %v3915_v57 = vld [vmem:[%s5468_s3 + $0x748] ss:$16 sps:$4 sm:$0xff]   ;;  %v3920_v24 = vld [vmem:[%s5468_s3 + $0x76c] ss:$16 sps:$4 sm:$0xff]  }
  0xd2   :  { %2814 = vmatpush1.bf16.msra.mxu0 %v3942_v18  ;;  %v3957_v18 = vld [vmem:[%s5472_s6 + $0x80] ss:$8 sps:$4 sm:$0xff]  }
  0xd3   :  { %2184 = vmatpush1.bf16.msra.mxu1 %v3849_v15  ;;  %2815 = vmatprep.subr.bf16.mxu0 %v3947_v26  ;;  %v3959_v15 = vld [vmem:[%s5472_s6 + $0x84] ss:$8 sps:$4 sm:$0xff]  }
  0xd4   :  { %2185 = vmatprep.subr.bf16.mxu1 %v3854_v30  ;;  %v3918_v30 = vld [vmem:[%s5468_s3 + $0x768] ss:$16 sps:$4 sm:$0xff]  }
  0xd6   :  { %2816 = vmatpush1.bf16.msra.mxu0 %v3945_v6 }
  0xd7   :  { %2186 = vmatpush1.bf16.msra.mxu1 %v3852_v56  ;;  %2817 = vmatprep.subr.bf16.mxu0 %v3950_v36  ;;  %v3923_v56 = vld [vmem:[%s5468_s3 + $0x78c] ss:$16 sps:$4 sm:$0xff]  }
  0xd8   :  { %2187 = vmatprep.subr.bf16.mxu1 %v3857_v25  ;;  %v3962_v25 = vld [vmem:[%s5472_s6 + $0x94] ss:$8 sps:$4 sm:$0xff]  }
  0xda   :  { %2818 = vmatpush1.bf16.msra.mxu0 %v3948_v8 }
  0xdb   :  { %2188 = vmatpush1.bf16.msra.mxu1 %v3855_v52  ;;  %2819 = vmatprep.subr.bf16.mxu0 %v3953_v10  ;;  %v3960_v52 = vld [vmem:[%s5472_s6 + $0x90] ss:$8 sps:$4 sm:$0xff]  }
  0xdc   :  { %2189 = vmatprep.subr.bf16.mxu1 %v3860_v61  ;;  %v3921_v61 = vld [vmem:[%s5468_s3 + $0x788] ss:$16 sps:$4 sm:$0xff]  }
  0xde   :  { %2820 = vmatpush1.bf16.msra.mxu0 %v3951_v14 }
  0xdf   :  { %2190 = vmatpush1.bf16.msra.mxu1 %v3858_v32  ;;  %2821 = vmatprep.subr.bf16.mxu0 %v3956_v11  ;;  %v3926_v32 = vld [vmem:[%s5468_s3 + $0x7ac] ss:$16 sps:$4 sm:$0xff]  }
  0xe0   :  { %2191 = vmatprep.subr.bf16.mxu1 %v3863_v19  ;;  %v3965_v19 = vld [vmem:[%s5472_s6 + $0xa4] ss:$8 sps:$4 sm:$0xff]  }
  0xe2   :  { %2822 = vmatpush1.bf16.msra.mxu0 %v3954_v12 }
  0xe3   :  { %2192 = vmatpush1.bf16.msra.mxu1 %v3861_v21  ;;  %2823 = vmatprep.subr.bf16.mxu0 %v3959_v15  ;;  %v3963_v21 = vld [vmem:[%s5472_s6 + $0xa0] ss:$8 sps:$4 sm:$0xff]  }
  0xe4   :  { %2193 = vmatprep.subr.bf16.mxu1 %v3866_v22  ;;  %v3924_v22 = vld [vmem:[%s5468_s3 + $0x7a8] ss:$16 sps:$4 sm:$0xff]  }
  0xe6   :  { %2824 = vmatpush1.bf16.msra.mxu0 %v3957_v18 }
  0xe7   :  { %2194 = vmatpush1.bf16.msra.mxu1 %v3864_v13  ;;  %2825 = vmatprep.subr.bf16.mxu0 %v3962_v25  ;;  %v3929_v13 = vld [vmem:[%s5468_s3 + $0x7cc] ss:$16 sps:$4 sm:$0xff]  }
  0xe8   :  { %2195 = vmatprep.subr.bf16.mxu1 %v3869_v28  ;;  %v3968_v28 = vld [vmem:[%s5472_s6 + $0xb4] ss:$8 sps:$4 sm:$0xff]  }
  0xea   :  { %2826 = vmatpush1.bf16.msra.mxu0 %v3960_v52 }
  0xeb   :  { %2196 = vmatpush1.bf16.msra.mxu1 %v3867_v31  ;;  %2827 = vmatprep.subr.bf16.mxu0 %v3965_v19  ;;  %v3966_v31 = vld [vmem:[%s5472_s6 + $0xb0] ss:$8 sps:$4 sm:$0xff]  }
  0xec   :  { %2197 = vmatprep.subr.bf16.mxu1 %v3872_v33  ;;  %v3927_v33 = vld [vmem:[%s5468_s3 + $0x7c8] ss:$16 sps:$4 sm:$0xff]  }
  0xee   :  { %2828 = vmatpush1.bf16.msra.mxu0 %v3963_v21 }
  0xef   :  { %2198 = vmatpush1.bf16.msra.mxu1 %v3870_v34  ;;  %2829 = vmatprep.subr.bf16.mxu0 %v3968_v28  ;;  %v3932_v34 = vld [vmem:[%s5468_s3 + $0x7ec] ss:$16 sps:$4 sm:$0xff]  }
  0xf0   :  { %2199 = vmatprep.subr.bf16.mxu1 %v3875_v35  ;;  %v3971_v35 = vld [vmem:[%s5472_s6 + $0xc4] ss:$8 sps:$4 sm:$0xff]  }
  0xf2   :  { %2830 = vmatpush1.bf16.msra.mxu0 %v3966_v31 }
  0xf3   :  { %2200 = vmatpush1.bf16.msra.mxu1 %v3873_v37  ;;  %v3969_v37 = vld [vmem:[%s5472_s6 + $0xc0] ss:$8 sps:$4 sm:$0xff]   ;;  %2831 = vmatprep.subr.bf16.mxu0 %v3971_v35 }
  0xf4   :  { %2201 = vmatprep.subr.bf16.mxu1 %v3878_v38  ;;  %v3930_v38 = vld [vmem:[%s5468_s3 + $0x7e8] ss:$16 sps:$4 sm:$0xff]  }
  0xf6   :  { %2832 = vmatpush1.bf16.msra.mxu0 %v3969_v37 }
  0xf7   :  { %2202 = vmatpush1.bf16.msra.mxu1 %v3876_v41  ;;  %v3974_v41 = vld [vmem:[%s5472_s6 + $0xd4] ss:$8 sps:$4 sm:$0xff]  }
  0xf8   :  { %2203 = vmatprep.subr.bf16.mxu1 %v3881_v42  ;;  %v3972_v42 = vld [vmem:[%s5472_s6 + $0xd0] ss:$8 sps:$4 sm:$0xff]   ;;  %2833 = vmatprep.subr.bf16.mxu0 %v3974_v41 }
  0xfa   :  { %2834 = vmatpush1.bf16.msra.mxu0 %v3972_v42 }
  0xfb   :  { %2204 = vmatpush1.bf16.msra.mxu1 %v3879_v39  ;;  %v3977_v39 = vld [vmem:[%s5472_s6 + $0xe4] ss:$8 sps:$4 sm:$0xff]  }
  0xfc   :  { %2205 = vmatprep.subr.bf16.mxu1 %v3884_v43  ;;  %v3975_v43 = vld [vmem:[%s5472_s6 + $0xe0] ss:$8 sps:$4 sm:$0xff]   ;;  %2835 = vmatprep.subr.bf16.mxu0 %v3977_v39 }
  0xfe   :  { %2836 = vmatpush1.bf16.msra.mxu0 %v3975_v43 }
  0xff   :  { %2206 = vmatpush1.bf16.msra.mxu1 %v3882_v46  ;;  %v3980_v46 = vld [vmem:[%s5472_s6 + $0xf4] ss:$8 sps:$4 sm:$0xff]  }
 0x100   :  { %2216 = vmatprep.subr.bf16.mxu1 %v3887_v47  ;;  %v3978_v47 = vld [vmem:[%s5472_s6 + $0xf0] ss:$8 sps:$4 sm:$0xff]   ;;  %2837 = vmatprep.subr.bf16.mxu0 %v3980_v46 }
 0x102   :  { %2208 = vmatmul.mubr.bf16.vlgmr.msra.gmra.mrb[4].mxu1 %v4774_v0  ;;  %v3896_v0 = vld [vmem:[%s5468_s3 + $0x66c] ss:$16 sps:$4 sm:$0xff]   ;;  %2838 = vmatpush1.bf16.msra.mxu0 %v3978_v47 }
 0x103   :  { %2217 = vmatpush1.bf16.msra.mxu1 %v3885_v50  ;;  %2248 = vmatprep.mubr.bf16.mxu1 %v4783_v16  ;;  %v3894_v16 = vld [vmem:[%s5468_s3 + $0x668] ss:$16 sps:$4 sm:$0xff]   ;;  %v3983_v50 = vld [vmem:[%s5472_s6 + $0x104] ss:$8 sps:$4 sm:$0xff]  }
 0x104   :  { %2218 = vmatprep.subr.bf16.mxu1 %v3890_v51  ;;  %2848 = vmatprep.subr.bf16.mxu0 %v3983_v50 }
 0x107   :  { %2219 = vmatpush1.bf16.msra.mxu1 %v3888_v53 }
 0x108   :  { %2220 = vmatprep.subr.bf16.mxu1 %v3893_v54 }
 0x10b   :  { %2221 = vmatpush1.bf16.msra.mxu1 %v3891_v59 }
 0x10c   :  { %2222 = vmatprep.subr.bf16.mxu1 %v3896_v0 }
 0x10f   :  { %2223 = vmatpush1.bf16.msra.mxu1 %v3894_v16 }
 0x110   :  { %2224 = vmatprep.subr.bf16.mxu1 %v3899_v23 }
 0x113   :  { %2225 = vmatpush1.bf16.msra.mxu1 %v3897_v60 }
 0x114   :  { %2226 = vmatprep.subr.bf16.mxu1 %v3902_v62 }
 0x115   :  { %v5131_v2 = vpop.f32.mrb[0].mxu1 }
 0x116   :  { %v5133_v3 = vpop.f32.mrb[1].mxu1 }
 0x117   :  { %v1967_v55 = vpop.f32.mrb[2].mxu1  ;;  %2227 = vmatpush1.bf16.msra.mxu1 %v3900_v63 }
 0x118   :  { %v1968_v4 = vpop.f32.mrb[3].mxu1  ;;  %2228 = vmatprep.subr.bf16.mxu1 %v3905_v1 }
 0x11b   :  { %2229 = vmatpush1.bf16.msra.mxu1 %v3903_v17 }
 0x11c   :  { %2230 = vmatprep.subr.bf16.mxu1 %v3908_v5 }
 0x11f   :  { %2231 = vmatpush1.bf16.msra.mxu1 %v3906_v29 }
 0x120   :  { %2232 = vmatprep.subr.bf16.mxu1 %v3911_v58 }
 0x123   :  { %2233 = vmatpush1.bf16.msra.mxu1 %v3909_v40 }
 0x124   :  { %2234 = vmatprep.subr.bf16.mxu1 %v3914_v9 }
 0x127   :  { %2235 = vmatpush1.bf16.msra.mxu1 %v3912_v27 }
 0x128   :  { %2236 = vmatprep.subr.bf16.mxu1 %v3917_v20 }
 0x12b   :  { %2237 = vmatpush1.bf16.msra.mxu1 %v3915_v57 }
 0x12c   :  { %2238 = vmatprep.subr.bf16.mxu1 %v3920_v24 }
 0x12f   :  { %2239 = vmatpush1.bf16.msra.mxu1 %v3918_v30 }
 0x130   :  { %2240 = vmatprep.subr.bf16.mxu1 %v3923_v56 }
 0x133   :  { %2241 = vmatpush1.bf16.msra.mxu1 %v3921_v61 }
 0x134   :  { %2242 = vmatprep.subr.bf16.mxu1 %v3926_v32 }
 0x137   :  { %2243 = vmatpush1.bf16.msra.mxu1 %v3924_v22 }
 0x138   :  { %2244 = vmatprep.subr.bf16.mxu1 %v3929_v13 }
 0x13b   :  { %2245 = vmatpush1.bf16.msra.mxu1 %v3927_v33  ;;  %v5277_v33 = vld [vmem:[%s5473_s4] sm:$0xf] }
 0x13c   :  { %2246 = vmatprep.subr.bf16.mxu1 %v3932_v34  ;;  %v5282_v34 = vld [vmem:[%s5474_s5] sm:$0xf]  ;;  %v2360_v37 = vrot.slane %v5277_v33, %v4267_v49  ;;  %v2364_v42 = vrot.slane %v5277_v33, %v4252_v44 }
 0x13d   :  { %v2386_v46 = vrot.slane %v5282_v34, %v4267_v49  ;;  %v2390_v50 = vrot.slane %v5282_v34, %v4252_v44 }
 0x13f   :  { %2247 = vmatpush1.bf16.msra.mxu1 %v3930_v38 }
 0x142   :  { %2249 = vmatmul.mubr.bf16.vlgmr.msra.gmra.mrb[4].mxu1 %v4974_v7 }
 0x197   :  { %v2086_v51 = vpop.f32.mrb[0].mxu0 }
 0x198   :  { %v3522_v53 = vadd.f32 %v2086_v51, %v5131_v2  ;;  %v2088_v54 = vpop.f32.mrb[1].mxu0 }
 0x199   :  { %v3523_v7 = vadd.f32 %v2088_v54, %v5133_v3  ;;  %v2090_v59 = vpop.f32.mrb[2].mxu0 }
 0x19a   :  { %v2258_v0 = vsel %vm2257_vm2, %v3522_v53, 0.0  ;;  %v2291_v16 = vmul.f32 %v3522_v53, %v3522_v53  ;;  %v2091_v23 = vpop.f32.mrb[3].mxu0 }
 0x19b   :  { %v2259_v60 = vrot.slane %v2258_v0, 4  ;;  %v2265_v62 = vsel %vm2257_vm2, %v3523_v7, 0.0  ;;  %v2292_v63 = vmul.f32 %v3523_v7, %v3523_v7 }
 0x19c   :  { %v2295_v1 = vsel %vm2257_vm2, %v2291_v16, 0.0  ;;  %v2266_v55 = vrot.slane %v2265_v62, 4 }
 0x19d   :  { %v2260_v17 = vadd.f32 %v2259_v60, %v2258_v0  ;;  %v2296_v4 = vrot.slane %v2295_v1, 4  ;;  %v2302_v5 = vsel %vm2257_vm2, %v2292_v63, 0.0 }
 0x19e   :  { %v2267_v2 = vadd.f32 %v2266_v55, %v2265_v62  ;;  %v2303_v26 = vrot.slane %v2302_v5, 4  ;;  %v3981_v62 = vld [vmem:[%s5472_s6 + $0x100] ss:$8 sps:$4 sm:$0xff]   ;;  %v3984_v55 = vld [vmem:[%s5472_s6 + $0x110] ss:$8 sps:$4 sm:$0xff]  }
 0x19f   :  { %v2261_v6 = vrot.slane %v2260_v17, 2  ;;  %v2297_v3 = vadd.f32 %v2296_v4, %v2295_v1  ;;  %v3986_v1 = vld [vmem:[%s5472_s6 + $0x114] ss:$8 sps:$4 sm:$0xff]   ;;  %v3987_v4 = vld [vmem:[%s5472_s6 + $0x120] ss:$8 sps:$4 sm:$0xff]  }
 0x1a0   :  { %v2268_v29 = vrot.slane %v2267_v2, 2  ;;  %v2304_v58 = vadd.f32 %v2303_v26, %v2302_v5  ;;  %v3992_v5 = vld [vmem:[%s5472_s6 + $0x134] ss:$8 sps:$4 sm:$0xff]   ;;  %v3995_v26 = vld [vmem:[%s5472_s6 + $0x144] ss:$8 sps:$4 sm:$0xff]  }
 0x1a1   :  { %v2262_v36 = vadd.f32 %v2261_v6, %v2260_v17  ;;  %v2298_v8 = vrot.slane %v2297_v3, 2  ;;  %v3989_v17 = vld [vmem:[%s5472_s6 + $0x124] ss:$8 sps:$4 sm:$0xff]   ;;  %v3993_v6 = vld [vmem:[%s5472_s6 + $0x140] ss:$8 sps:$4 sm:$0xff]  }
 0x1a2   :  { %v2269_v40 = vadd.f32 %v2268_v29, %v2267_v2  ;;  %v2305_v9 = vrot.slane %v2304_v58, 2  ;;  %v3990_v2 = vld [vmem:[%s5472_s6 + $0x130] ss:$8 sps:$4 sm:$0xff]  }
 0x1a3   :  { %v2263_v10 = vrot.slane %v2262_v36, 1  ;;  %v2299_v14 = vadd.f32 %v2298_v8, %v2297_v3  ;;  %v3998_v3 = vld [vmem:[%s5472_s6 + $0x154] ss:$8 sps:$4 sm:$0xff]   ;;  %v3996_v29 = vld [vmem:[%s5472_s6 + $0x150] ss:$8 sps:$4 sm:$0xff]  }
 0x1a4   :  { %v2270_v27 = vrot.slane %v2269_v40, 1  ;;  %v2306_v20 = vadd.f32 %v2305_v9, %v2304_v58  ;;  %v4001_v58 = vld [vmem:[%s5472_s6 + $0x164] ss:$8 sps:$4 sm:$0xff]   ;;  %v4004_v8 = vld [vmem:[%s5472_s6 + $0x174] ss:$8 sps:$4 sm:$0xff]  }
 0x1a5   :  { %v2264_v11 = vadd.f32 %v2263_v10, %v2262_v36  ;;  %v2300_v12 = vrot.slane %v2299_v14, 1  ;;  %v3999_v36 = vld [vmem:[%s5472_s6 + $0x160] ss:$8 sps:$4 sm:$0xff]   ;;  %v4007_v9 = vld [vmem:[%s5472_s6 + $0x184] ss:$8 sps:$4 sm:$0xff]  }
 0x1a6   :  { %v2271_v57 = vadd.f32 %v2270_v27, %v2269_v40  ;;  %v2307_v24 = vrot.slane %v2306_v20, 1  ;;  %v4002_v40 = vld [vmem:[%s5472_s6 + $0x170] ss:$8 sps:$4 sm:$0xff]   ;;  %v4005_v10 = vld [vmem:[%s5472_s6 + $0x180] ss:$8 sps:$4 sm:$0xff]  }
 0x1a7   :  { %v2287_v15 = vmul.f32 0.5, %v2264_v11  ;;  %v2301_v18 = vadd.f32 %v2300_v12, %v2299_v14  ;;  %v4010_v14 = vld [vmem:[%s5472_s6 + $0x194] ss:$8 sps:$4 sm:$0xff]   ;;  %v4008_v27 = vld [vmem:[%s5472_s6 + $0x190] ss:$8 sps:$4 sm:$0xff]  }
 0x1a8   :  { %v2288_v30 = vmul.f32 0.5, %v2271_v57  ;;  %v2308_v56 = vadd.f32 %v2307_v24, %v2306_v20  ;;  %v4013_v20 = vld [vmem:[%s5472_s6 + $0x1a4] ss:$8 sps:$4 sm:$0xff]   ;;  %v4011_v11 = vld [vmem:[%s5472_s6 + $0x1a0] ss:$8 sps:$4 sm:$0xff]  }
 0x1a9   :  { %v2323_v25 = vmul.f32 0.5, %v2301_v18  ;;  %v2327_v52 = vmul.f32 %v2287_v15, %v2287_v15  ;;  %v2339_v35 = vsub.f32 %v3522_v53, %v2287_v15  ;;  %v4016_v12 = vld [vmem:[%s5472_s6 + $0x1b4] ss:$8 sps:$4 sm:$0xff]   ;;  %v4014_v57 = vld [vmem:[%s5472_s6 + $0x1b0] ss:$8 sps:$4 sm:$0xff]  }
 0x1aa   :  { %v2324_v61 = vmul.f32 0.5, %v2308_v56  ;;  %v2328_v32 = vmul.f32 %v2288_v30, %v2288_v30  ;;  %v2340_v41 = vsub.f32 %v3523_v7, %v2288_v30  ;;  %v4019_v24 = vld [vmem:[%s5472_s6 + $0x1c4] ss:$8 sps:$4 sm:$0xff]   ;;  %v4017_v15 = vld [vmem:[%s5472_s6 + $0x1c0] ss:$8 sps:$4 sm:$0xff]  }
 0x1ab   :  { %v2331_v19 = vsub.f32 %v2323_v25, %v2327_v52  ;;  %v4022_v18 = vld [vmem:[%s5472_s6 + $0x1d4] ss:$8 sps:$4 sm:$0xff]   ;;  %v4020_v30 = vld [vmem:[%s5472_s6 + $0x1d0] ss:$8 sps:$4 sm:$0xff]   ;;  %v4025_v56 = vld [vmem:[%s5472_s6 + $0x1e4] ss:$8 sps:$4 sm:$0xff]  }
 0x1ac   :  { %v2332_v21 = vsub.f32 %v2324_v61, %v2328_v32  ;;  %v4023_v25 = vld [vmem:[%s5472_s6 + $0x1e0] ss:$8 sps:$4 sm:$0xff]   ;;  %v4028_v52 = vld [vmem:[%s5472_s6 + $0x1f4] ss:$8 sps:$4 sm:$0xff]   ;;  %v4026_v61 = vld [vmem:[%s5472_s6 + $0x1f0] ss:$8 sps:$4 sm:$0xff]  }
 0x1ad   :  { %v2335_v22 = vmax.f32 %v2331_v19, 0.0 }
 0x1ae   :  { %v2336_v13 = vmax.f32 %v2332_v21, 0.0 }
 0x1af   :  { %v2343_v28 = vadd.f32 1e-05, %v2335_v22 }
 0x1b0   :  { %v2344_v31 = vadd.f32 1e-05, %v2336_v13 }
 0x1b1   :  { %4045 = vrsqrt.f32 %v2343_v28 }
 0x1b2   :  { %4047 = vrsqrt.f32 %v2344_v31 }
 0x1bb   :  { %v4046_v38 = vpop.eup %4045 }
 0x1bc   :  { %v4048_v39 = vpop.eup %4047  ;;  %v2351_v43 = vmul.f32 %v4046_v38, %v2339_v35 }
 0x1bd   :  { %v2352_v47 = vmul.f32 %v4048_v39, %v2340_v41 }
 0x1be   :  { %v2377_v51 = vmul.f32 %v2360_v37, %v2351_v43 }
 0x1bf   :  { %v2378_v54 = vmul.f32 %v2364_v42, %v2352_v47 }
 0x1c0   :  { %v2403_v53 = vadd.f32 %v2386_v46, %v2377_v51 }
 0x1c1   :  { %v2404_v59 = vadd.f32 %v2390_v50, %v2378_v54 }
 0x1c2   :  { %vm2407_vm3 = vcmp.gt.f32.partialorder %v2403_v53, 0.0  ;;  %v2411_v0 = vmul.f32 0.2, %v2403_v53 }
 0x1c3   :  { %vm2408_vm4 = vcmp.gt.f32.partialorder %v2404_v59, 0.0  ;;  %v2412_v7 = vmul.f32 0.2, %v2404_v59 }
 0x1c4   :  { %v2415_v16 = vsel %vm2407_vm3, %v2403_v53, %v2411_v0 }
 0x1c5   :  { %v2416_v23 = vsel %vm2408_vm4, %v2404_v59, %v2412_v7  ;;  %v2419_v63 = vpack.c.bf16 %v2415_v16, %v2415_v16 }
 0x1c6   :  { %v2420_v60 = vpack.c.bf16 %v2416_v23, %v2416_v23 }
 0x1c8   :  { %2839 = vmatprep.mubr.bf16.mxu0 %v2420_v60 }
 0x1c9   :  { %2840 = vmatmul.mubr.bf16.vlgmr.msra.gmra.mrb[4].mxu0 %v2419_v63 }
 0x1ca   :  { %2849 = vmatpush1.bf16.msra.mxu0 %v3981_v62 }
 0x1cb   :  { %2850 = vmatprep.subr.bf16.mxu0 %v3986_v1 }
 0x1ce   :  { %2851 = vmatpush1.bf16.msra.mxu0 %v3984_v55 }
 0x1cf   :  { %2852 = vmatprep.subr.bf16.mxu0 %v3989_v17 }
 0x1d2   :  { %2853 = vmatpush1.bf16.msra.mxu0 %v3987_v4 }
 0x1d3   :  { %2854 = vmatprep.subr.bf16.mxu0 %v3992_v5 }
 0x1d6   :  { %2855 = vmatpush1.bf16.msra.mxu0 %v3990_v2 }
 0x1d7   :  { %2856 = vmatprep.subr.bf16.mxu0 %v3995_v26 }
 0x1da   :  { %2857 = vmatpush1.bf16.msra.mxu0 %v3993_v6 }
 0x1db   :  { %2858 = vmatprep.subr.bf16.mxu0 %v3998_v3 }
 0x1de   :  { %2859 = vmatpush1.bf16.msra.mxu0 %v3996_v29 }
 0x1df   :  { %2860 = vmatprep.subr.bf16.mxu0 %v4001_v58 }
 0x1e2   :  { %2861 = vmatpush1.bf16.msra.mxu0 %v3999_v36 }
 0x1e3   :  { %2862 = vmatprep.subr.bf16.mxu0 %v4004_v8 }
 0x1e6   :  { %2863 = vmatpush1.bf16.msra.mxu0 %v4002_v40 }
 0x1e7   :  { %2864 = vmatprep.subr.bf16.mxu0 %v4007_v9 }
 0x1ea   :  { %2865 = vmatpush1.bf16.msra.mxu0 %v4005_v10 }
 0x1eb   :  { %2866 = vmatprep.subr.bf16.mxu0 %v4010_v14 }
 0x1ee   :  { %2867 = vmatpush1.bf16.msra.mxu0 %v4008_v27 }
 0x1ef   :  { %2868 = vmatprep.subr.bf16.mxu0 %v4013_v20 }
 0x1f2   :  { %2869 = vmatpush1.bf16.msra.mxu0 %v4011_v11  ;;  %v2368_v11 = vrot.slane %v5277_v33, %v4255_v45 }
 0x1f3   :  { %2870 = vmatprep.subr.bf16.mxu0 %v4016_v12 }
 0x1f6   :  { %2871 = vmatpush1.bf16.msra.mxu0 %v4014_v57 }
 0x1f7   :  { %2872 = vmatprep.subr.bf16.mxu0 %v4019_v24  ;;  %v2372_v24 = vrot.slane %v5277_v33, %v4264_v48 }
 0x1fa   :  { %2873 = vmatpush1.bf16.msra.mxu0 %v4017_v15 }
 0x1fb   :  { %2874 = vmatprep.subr.bf16.mxu0 %v4022_v18 }
 0x1fe   :  { %2875 = vmatpush1.bf16.msra.mxu0 %v4020_v30  ;;  %v2394_v30 = vrot.slane %v5282_v34, %v4255_v45  ;;  %v4029_v45 = vld [vmem:[%s5475_s9 + $0x40] sm:$0xff]  }
 0x1ff   :  { %2876 = vmatprep.subr.bf16.mxu0 %v4025_v56  ;;  %3500 = vmatprep.subr.bf16.mxu1 %v4029_v45  ;;  %v2937_v45 = vld [vmem:[%s5476_s7] sm:$0x3] }
 0x202   :  { %2877 = vmatpush1.bf16.msra.mxu0 %v4023_v25  ;;  %v2398_v25 = vrot.slane %v5282_v34, %v4264_v48  ;;  %v4030_v48 = vld [vmem:[%s5475_s9] sm:$0xff]   ;;  %v4031_v34 = vld [vmem:[%s5475_s9 + $0x48] sm:$0xff]  }
 0x203   :  { %2878 = vmatprep.subr.bf16.mxu0 %v4028_v52  ;;  %3501 = vmatpush3.bf16.msra.mxu1 %v4030_v48  ;;  %v2951_v48 = vld [vmem:[%s5477_s8] sm:$0x3] }
 0x204   :  { %3502 = vmatprep.subr.bf16.mxu1 %v4031_v34 }
 0x206   :  { %2879 = vmatpush1.bf16.msra.mxu0 %v4026_v61 }
 0x215   :  { %v2250_v32 = vpop.f32.mrb[4].mxu1 }
 0x216   :  { %v2272_v19 = vsel %vm2257_vm2, %v2250_v32, 0.0  ;;  %v2293_v21 = vmul.f32 %v2250_v32, %v2250_v32  ;;  %v2252_v22 = vpop.f32.mrb[5].mxu1 }
 0x217   :  { %v2273_v13 = vrot.slane %v2272_v19, 4  ;;  %v2279_v28 = vsel %vm2257_vm2, %v2252_v22, 0.0  ;;  %v2294_v31 = vmul.f32 %v2252_v22, %v2252_v22  ;;  %v2254_v35 = vpop.f32.mrb[6].mxu1 }
 0x218   :  { %v2309_v37 = vsel %vm2257_vm2, %v2293_v21, 0.0  ;;  %v2280_v38 = vrot.slane %v2279_v28, 4  ;;  %v2255_v41 = vpop.f32.mrb[7].mxu1  ;;  %v4032_v35 = vld [vmem:[%s5475_s9 + $0x8] sm:$0xff]  }
 0x219   :  { %v2274_v42 = vadd.f32 %v2273_v13, %v2272_v19  ;;  %v2310_v39 = vrot.slane %v2309_v37, 4  ;;  %v2316_v43 = vsel %vm2257_vm2, %v2294_v31, 0.0  ;;  %3503 = vmatpush3.bf16.msra.mxu1 %v4032_v35  ;;  %v4035_v41 = vld [vmem:[%s5475_s9 + $0x58] sm:$0xff]   ;;  %v2942_v35 = vrot.slane %v2937_v45, %v4267_v49 }
 0x21a   :  { %v2281_v46 = vadd.f32 %v2280_v38, %v2279_v28  ;;  %v2317_v47 = vrot.slane %v2316_v43, 4  ;;  %v4034_v38 = vld [vmem:[%s5475_s9 + $0x10] sm:$0xff]  }
 0x21b   :  { %v2275_v50 = vrot.slane %v2274_v42, 2  ;;  %v2311_v51 = vadd.f32 %v2310_v39, %v2309_v37  ;;  %v4033_v37 = vld [vmem:[%s5475_s9 + $0x50] sm:$0xff]   ;;  %v4037_v39 = vld [vmem:[%s5475_s9 + $0x60] sm:$0xff]  }
 0x21c   :  { %v2282_v54 = vrot.slane %v2281_v46, 2  ;;  %v2318_v53 = vadd.f32 %v2317_v47, %v2316_v43  ;;  %3504 = vmatprep.subr.bf16.mxu1 %v4033_v37  ;;  %v4038_v43 = vld [vmem:[%s5475_s9 + $0x20] sm:$0xff]   ;;  %v4040_v47 = vld [vmem:[%s5475_s9 + $0x28] sm:$0xff]  }
 0x21d   :  { %v2276_v59 = vadd.f32 %v2275_v50, %v2274_v42  ;;  %v2312_v0 = vrot.slane %v2311_v51, 2  ;;  %3505 = vmatpush3.bf16.msra.mxu1 %v4034_v38  ;;  %v4036_v42 = vld [vmem:[%s5475_s9 + $0x18] sm:$0xff]   ;;  %v4041_v50 = vld [vmem:[%s5475_s9 + $0x70] sm:$0xff]  }
 0x21e   :  { %v2283_v7 = vadd.f32 %v2282_v54, %v2281_v46  ;;  %v2319_v16 = vrot.slane %v2318_v53, 2  ;;  %3506 = vmatprep.subr.bf16.mxu1 %v4035_v41  ;;  %v4039_v46 = vld [vmem:[%s5475_s9 + $0x68] sm:$0xff]   ;;  %v4043_v54 = vld [vmem:[%s5475_s9 + $0x78] sm:$0xff]   ;;  %v2946_v41 = vrot.slane %v2937_v45, %v4252_v44 }
 0x21f   :  { %v2277_v23 = vrot.slane %v2276_v59, 1  ;;  %v2313_v60 = vadd.f32 %v2312_v0, %v2311_v51  ;;  %v4042_v51 = vld [vmem:[%s5475_s9 + $0x30] sm:$0xff]  }
 0x220   :  { %v2284_v62 = vrot.slane %v2283_v7, 1  ;;  %v2320_v63 = vadd.f32 %v2319_v16, %v2318_v53  ;;  %v4044_v53 = vld [vmem:[%s5475_s9 + $0x38] sm:$0xff]  }
 0x221   :  { %v2278_v1 = vadd.f32 %v2277_v23, %v2276_v59  ;;  %v2314_v55 = vrot.slane %v2313_v60, 1  ;;  %3507 = vmatpush3.bf16.msra.mxu1 %v4036_v42 }
 0x222   :  { %v2285_v17 = vadd.f32 %v2284_v62, %v2283_v7  ;;  %v2321_v4 = vrot.slane %v2320_v63, 1  ;;  %3508 = vmatprep.subr.bf16.mxu1 %v4037_v39 }
 0x223   :  { %v2289_v5 = vmul.f32 0.5, %v2278_v1  ;;  %v2315_v2 = vadd.f32 %v2314_v55, %v2313_v60 }
 0x224   :  { %v2290_v26 = vmul.f32 0.5, %v2285_v17  ;;  %v2322_v6 = vadd.f32 %v2321_v4, %v2320_v63 }
 0x225   :  { %v2325_v3 = vmul.f32 0.5, %v2315_v2  ;;  %v2329_v29 = vmul.f32 %v2289_v5, %v2289_v5  ;;  %v2341_v20 = vsub.f32 %v2250_v32, %v2289_v5  ;;  %3509 = vmatpush3.bf16.msra.mxu1 %v4038_v43  ;;  %v2956_v43 = vrot.slane %v2951_v48, %v4267_v49  ;;  %v3482_v49 = vld [vmem:[%s5478_s10] ss:$0 sm:$0xff] }
 0x226   :  { %v2326_v58 = vmul.f32 0.5, %v2322_v6  ;;  %v2330_v36 = vmul.f32 %v2290_v26, %v2290_v26  ;;  %v2342_v57 = vsub.f32 %v2252_v22, %v2290_v26  ;;  %3510 = vmatprep.subr.bf16.mxu1 %v4039_v46 }
 0x227   :  { %v2333_v8 = vsub.f32 %v2325_v3, %v2329_v29 }
 0x228   :  { %v2334_v40 = vsub.f32 %v2326_v58, %v2330_v36 }
 0x229   :  { %v2337_v9 = vmax.f32 %v2333_v8, 0.0  ;;  %3511 = vmatpush3.bf16.msra.mxu1 %v4040_v47  ;;  %v2960_v47 = vrot.slane %v2951_v48, %v4252_v44 }
 0x22a   :  { %v2338_v10 = vmax.f32 %v2334_v40, 0.0  ;;  %3512 = vmatprep.subr.bf16.mxu1 %v4041_v50 }
 0x22b   :  { %v2345_v14 = vadd.f32 1e-05, %v2337_v9 }
 0x22c   :  { %v2346_v27 = vadd.f32 1e-05, %v2338_v10 }
 0x22d   :  { %4049 = vrsqrt.f32 %v2345_v14  ;;  %3513 = vmatpush3.bf16.msra.mxu1 %v4042_v51 }
 0x22e   :  { %4051 = vrsqrt.f32 %v2346_v27  ;;  %3514 = vmatprep.subr.bf16.mxu1 %v4043_v54 }
 0x231   :  { %3515 = vmatpush3.bf16.msra.mxu1 %v4044_v53 }
 0x237   :  { %v4050_v12 = vpop.eup %4049 }
 0x238   :  { %v4052_v15 = vpop.eup %4051  ;;  %v2353_v18 = vmul.f32 %v4050_v12, %v2341_v20 }
 0x239   :  { %v2354_v56 = vmul.f32 %v4052_v15, %v2342_v57 }
 0x23a   :  { %v2379_v52 = vmul.f32 %v2368_v11, %v2353_v18 }
 0x23b   :  { %v2380_v61 = vmul.f32 %v2372_v24, %v2354_v56 }
 0x23c   :  { %v2405_v32 = vadd.f32 %v2394_v30, %v2379_v52 }
 0x23d   :  { %v2406_v19 = vadd.f32 %v2398_v25, %v2380_v61 }
 0x23e   :  { %vm2409_vm5 = vcmp.gt.f32.partialorder %v2405_v32, 0.0  ;;  %v2413_v21 = vmul.f32 0.2, %v2405_v32 }
 0x23f   :  { %vm2410_vm6 = vcmp.gt.f32.partialorder %v2406_v19, 0.0  ;;  %v2414_v22 = vmul.f32 0.2, %v2406_v19 }
 0x240   :  { %v2417_v13 = vsel %vm2409_vm5, %v2405_v32, %v2413_v21 }
 0x241   :  { %v2418_v28 = vsel %vm2410_vm6, %v2406_v19, %v2414_v22  ;;  %v2421_v31 = vpack.c.bf16 %v2417_v13, %v2417_v13 }
 0x242   :  { %v2422_v33 = vpack.c.bf16 %v2418_v28, %v2418_v28 }
 0x244   :  { %2880 = vmatprep.mubr.bf16.mxu0 %v2422_v33 }
 0x245   :  { %2881 = vmatmul.mubr.bf16.vlgmr.msra.gmra.mrb[4].mxu0 %v2421_v31 }
 0x318   :  { %v2882_v59 = vpop.f32.mrb[4].mxu0 }
 0x319   :  { %v2889_v0 = vsel %vm2257_vm2, %v2882_v59, 0.0  ;;  %v2905_v7 = vmul.f32 %v2882_v59, %v2882_v59  ;;  %v2884_v16 = vpop.f32.mrb[5].mxu0 }
 0x31a   :  { %v2890_v23 = vrot.slane %v2889_v0, 4  ;;  %v2896_v60 = vsel %vm2257_vm2, %v2884_v16, 0.0  ;;  %v2906_v62 = vmul.f32 %v2884_v16, %v2884_v16  ;;  %v2886_v63 = vpop.f32.mrb[6].mxu0 }
 0x31b   :  { %v2907_v1 = vsel %vm2257_vm2, %v2905_v7, 0.0  ;;  %v2897_v55 = vrot.slane %v2896_v60, 4  ;;  %v2887_v17 = vpop.f32.mrb[7].mxu0 }
 0x31c   :  { %v2891_v4 = vadd.f32 %v2890_v23, %v2889_v0  ;;  %v2908_v5 = vrot.slane %v2907_v1, 4  ;;  %v2914_v2 = vsel %vm2257_vm2, %v2906_v62, 0.0 }
 0x31d   :  { %v2898_v26 = vadd.f32 %v2897_v55, %v2896_v60  ;;  %v2915_v6 = vrot.slane %v2914_v2, 4  ;;  %v3499_v55 = vld [vmem:[%s5479_s11] ss:$0 sm:$0xff] }
 0x31e   :  { %v2892_v3 = vrot.slane %v2891_v4, 2  ;;  %v2909_v29 = vadd.f32 %v2908_v5, %v2907_v1 }
 0x31f   :  { %v2899_v58 = vrot.slane %v2898_v26, 2  ;;  %v2916_v36 = vadd.f32 %v2915_v6, %v2914_v2 }
 0x320   :  { %v2893_v8 = vadd.f32 %v2892_v3, %v2891_v4  ;;  %v2910_v40 = vrot.slane %v2909_v29, 2 }
 0x321   :  { %v2900_v9 = vadd.f32 %v2899_v58, %v2898_v26  ;;  %v2917_v10 = vrot.slane %v2916_v36, 2 }
 0x322   :  { %v2894_v14 = vrot.slane %v2893_v8, 1  ;;  %v2911_v27 = vadd.f32 %v2910_v40, %v2909_v29 }
 0x323   :  { %v2901_v20 = vrot.slane %v2900_v9, 1  ;;  %v2918_v11 = vadd.f32 %v2917_v10, %v2916_v36 }
 0x324   :  { %v2895_v12 = vadd.f32 %v2894_v14, %v2893_v8  ;;  %v2912_v57 = vrot.slane %v2911_v27, 1 }
 0x325   :  { %v2902_v24 = vadd.f32 %v2901_v20, %v2900_v9  ;;  %v2919_v15 = vrot.slane %v2918_v11, 1 }
 0x326   :  { %v2903_v18 = vmul.f32 0.5, %v2895_v12  ;;  %v2913_v30 = vadd.f32 %v2912_v57, %v2911_v27 }
 0x327   :  { %v2904_v56 = vmul.f32 0.5, %v2902_v24  ;;  %v2920_v25 = vadd.f32 %v2919_v15, %v2918_v11 }
 0x328   :  { %v2921_v52 = vmul.f32 0.5, %v2913_v30  ;;  %v2923_v61 = vmul.f32 %v2903_v18, %v2903_v18  ;;  %v2929_v34 = vsub.f32 %v2882_v59, %v2903_v18 }
 0x329   :  { %v2922_v32 = vmul.f32 0.5, %v2920_v25  ;;  %v2924_v19 = vmul.f32 %v2904_v56, %v2904_v56  ;;  %v2930_v38 = vsub.f32 %v2884_v16, %v2904_v56 }
 0x32a   :  { %v2925_v21 = vsub.f32 %v2921_v52, %v2923_v61 }
 0x32b   :  { %v2926_v22 = vsub.f32 %v2922_v32, %v2924_v19 }
 0x32c   :  { %v2927_v13 = vmax.f32 %v2925_v21, 0.0 }
 0x32d   :  { %v2928_v28 = vmax.f32 %v2926_v22, 0.0 }
 0x32e   :  { %v2931_v33 = vadd.f32 1e-05, %v2927_v13 }
 0x32f   :  { %v2932_v31 = vadd.f32 1e-05, %v2928_v28 }
 0x330   :  { %4053 = vrsqrt.f32 %v2931_v33 }
 0x331   :  { %4055 = vrsqrt.f32 %v2932_v31 }
 0x33a   :  { %v4054_v37 = vpop.eup %4053 }
 0x33b   :  { %v4056_v42 = vpop.eup %4055  ;;  %v2935_v39 = vmul.f32 %v4054_v37, %v2929_v34 }
 0x33c   :  { %v2936_v46 = vmul.f32 %v4056_v42, %v2930_v38 }
 0x33d   :  { %v2949_v50 = vmul.f32 %v2942_v35, %v2935_v39 }
 0x33e   :  { %v2950_v51 = vmul.f32 %v2946_v41, %v2936_v46 }
 0x33f   :  { %v2963_v54 = vadd.f32 %v2956_v43, %v2949_v50 }
 0x340   :  { %v2964_v53 = vadd.f32 %v2960_v47, %v2950_v51 }
 0x341   :  { %vm2965_vm7 = vcmp.gt.f32.partialorder %v2963_v54, 0.0  ;;  %v2967_v0 = vmul.f32 0.2, %v2963_v54 }
 0x342   :  { %vm2966_vm8 = vcmp.gt.f32.partialorder %v2964_v53, 0.0  ;;  %v2968_v59 = vmul.f32 0.2, %v2964_v53 }
 0x343   :  { %v2969_v7 = vsel %vm2965_vm7, %v2963_v54, %v2967_v0 }
 0x344   :  { %v2970_v23 = vsel %vm2966_vm8, %v2964_v53, %v2968_v59  ;;  %v2971_v60 = vpack.c.bf16 %v2969_v7, %v2969_v7 }
 0x345   :  { %v2972_v16 = vpack.c.bf16 %v2970_v23, %v2970_v23 }
 0x347   :  { %3140 = vmatprep.mubr.bf16.mxu1 %v2972_v16 }
 0x348   :  { %3141 = vmatmul.mubr.bf16.vlgmr.msra.gmra.mrb[8].mxu1 %v2971_v60 }
 0x41b   :  { %v3516_v62 = vpop.f32.mrb[8].mxu1 }
 0x41c   :  { %v3517_v44 = vpop.f32.mrb[9].mxu1 }
 0x41d   :  { %v3518_v63 = vadd.f32 %v3517_v44, %v3516_v62  ;;  %v3519_v1 = vpop.f32.mrb[10].mxu1 }
 0x41e   :  { %v3520_v17 = vpop.f32.mrb[11].mxu1 }
 0x41f   :  { %v3143_v4 = vadd.f32 %v3518_v63, %v3482_v49 }
 0x421   :  { %v3155_v5 = vadd.f32 %v3499_v55, %v3143_v4 }
 0x423   :  { %3157 = vst.msk [vmem:[%s5480_s12] sm:$0x3] %vm3156_vm9, %v3155_v5 }

</bundles_post_ra>
